<compile_context>
chip_gen: v5e
topology: v5e:2x2
jax: 0.10.0
libtpu: 0.0.40
codegen_flags: <defaults>
</compile_context>

<pallas_src>
import functools

import jax
import jax.numpy as jnp
from jax.experimental import pallas as pl
from jax.experimental.pallas import tpu as pltpu


SOFTMAX_ALPHA = 100.0  # self.softmax_alpha in the PyTorch module
IN_EPS = 1e-5          # InstanceNorm2d default eps
LRELU_SLOPE = 0.01     # nn.LeakyReLU default negative_slope


def _symmetry_attention_kernel(fa_ref, fb_ref, araw_ref, braw_ref,
                               wa_ref, ba_ref, wb_ref, bb_ref,
                               corr_ab_ref, corr_ba_ref, awarp_ref, bwarp_ref,
                               fa_feat_ref, fb_feat_ref,
                               *, alpha, tq, mm_dtype):
    # fa_ref/fb_ref:   (1, Cin, HW)   native channel-major features (no wrapper transpose)
    # araw/braw_ref:   (1, Craw, tq)  raw-feature columns for this row tile
    # w*_ref:          (Cmid, Cin)    1x1-conv weight (PyTorch (O, I) layout, used directly)
    # b*_ref:          (Cmid, 1)      conv bias
    # corr_*_ref:      (1, tq, HW)    this tile's correspondence rows (lane-dense in HW)
    # *warp_ref:       (1, Craw, HW)  warp accumulators (resident across the row-tile axis)
    # f*_feat_ref:     (HW, Cmid)     normalized feature scratch, computed at row tile 0
    t = pl.program_id(1)

    def features(x_ref, w_ref, b_ref, scale):
        # (Cmid,Cin) @ (Cin,HW) -> (Cmid,HW): HW stays on lanes for the whole epilogue.
        x = x_ref[0].astype(jnp.float32)
        h = jax.lax.dot_general(
            w_ref[...].astype(jnp.float32), x,
            dimension_numbers=(((1,), (0,)), ((), ())),
            preferred_element_type=jnp.float32)
        h = h + b_ref[...].astype(jnp.float32)              # (Cmid,1) bias broadcast over HW
        # InstanceNorm2d(affine=False): per-channel stats over HW, biased variance.
        m = jnp.mean(h, axis=1, keepdims=True)
        c = h - m
        v = jnp.mean(c * c, axis=1, keepdims=True)
        h = c * jax.lax.rsqrt(v + IN_EPS)
        # LeakyReLU(0.01)
        h = jnp.where(h >= 0.0, h, LRELU_SLOPE * h)
        # warp() preprocessing: re-center over HW, L2-normalize over channels per position.
        h = h - jnp.mean(h, axis=1, keepdims=True)
        # TODO(synk): no eps in the per-position L2 norm, matching the PyTorch reference
        # (a degenerate all-zero feature column would produce NaN there too).
        rs = jax.lax.rsqrt(jnp.sum(h * h, axis=0, keepdims=True))
        if scale != 1.0:
            rs = rs * scale                                  # fold softmax_alpha into fb
        return h * rs                                        # (Cmid, HW)

    @pl.when(t == 0)
    def _init():
        # Normalized features stored (HW, Cmid) so per-tile rows are sublane slices.
        fa_feat_ref[...] = features(fa_ref, wa_ref, ba_ref, 1.0).T
        fb_feat_ref[...] = features(fb_ref, wb_ref, bb_ref, alpha).T
        awarp_ref[...] = jnp.zeros_like(awarp_ref)
        bwarp_ref[...] = jnp.zeros_like(bwarp_ref)

    def softmax_rows(e):
        m = jnp.max(e, axis=-1, keepdims=True)
        p = jnp.exp(e - m)
        inv = pl.reciprocal(jnp.sum(p, axis=-1, keepdims=True), approx=False)
        return p * inv

    row0 = pl.multiple_of(t * tq, tq)
    fa_all = fa_feat_ref[...]                                # (HW, Cmid)
    fb_all = fb_feat_ref[...]
    fa_rows = fa_feat_ref[pl.ds(row0, tq), :]                # (tq, Cmid)
    fb_rows = fb_feat_ref[pl.ds(row0, tq), :]

    qk_dims = (((1,), (1,)), ((), ()))                       # 'qd,kd->qk' (rhs-transposed)

    # a->b direction: rows of corr_ab_T index fb positions, softmax over fa positions.
    corr_ab = softmax_rows(jax.lax.dot_general(
        fb_rows, fa_all, dimension_numbers=qk_dims,
        preferred_element_type=jnp.float32))                 # (tq, HW), alpha already applied
    corr_ab_ref[0] = corr_ab.astype(corr_ab_ref.dtype)
    bwarp_ref[0] += jnp.dot(braw_ref[0].astype(mm_dtype), corr_ab.astype(mm_dtype),
                            preferred_element_type=jnp.float32)

    # b->a direction.
    corr_ba = softmax_rows(jax.lax.dot_general(
        fa_rows, fb_all, dimension_numbers=qk_dims,
        preferred_element_type=jnp.float32))                 # (tq, HW)
    corr_ba_ref[0] = corr_ba.astype(corr_ba_ref.dtype)
    awarp_ref[0] += jnp.dot(araw_ref[0].astype(mm_dtype), corr_ba.astype(mm_dtype),
                            preferred_element_type=jnp.float32)


def symmetry_attention(fa, fb, a_raw, b_raw, wa, ba, wb, bb,
                       alpha=SOFTMAX_ALPHA,
                       warp_matmul_dtype=jnp.bfloat16,   # bf16 MXU operands on v6e/v7x
                       corr_dtype=jnp.float32):
    """fa/fb: (N, Cin, H, W); a_raw/b_raw: (N, Craw, H, W);
    wa/wb: (Cmid, Cin) 1x1-conv weights (PyTorch (O, I, 1, 1) squeezed); ba/bb: (Cmid,).
    Returns (corr_ab_T, corr_ba_T, a_warp, b_warp) exactly as the PyTorch forward."""
    n, c_in, h, w = fa.shape
    raw_c = a_raw.shape[1]
    c_mid = wa.reshape(-1, c_in).shape[0]
    hw = h * w

    # Pure reshapes only -- no extra HBM transpose passes.
    fa_f = fa.reshape(n, c_in, hw)
    fb_f = fb.reshape(n, c_in, hw)
    a_raw_f = a_raw.reshape(n, raw_c, hw)
    b_raw_f = b_raw.reshape(n, raw_c, hw)
    wa2 = wa.reshape(c_mid, c_in)
    wb2 = wb.reshape(c_mid, c_in)
    ba2 = ba.reshape(c_mid, 1)
    bb2 = bb.reshape(c_mid, 1)

    # Row-tile size: a multiple of 128 dividing HW, preferring >=2 tiles so corr writeback
    # pipelines and both v7x TensorCores get multiple steps even at tiny batch.
    tq = hw
    for cand in (512, 256, 128):
        if hw % cand == 0 and hw // cand >= 2:
            tq = cand
            break
    nt = hw // tq

    # VMEM working-set estimate; only raise the scoped limit when actually needed
    # (matters for the real module sizes, irrelevant at the toy shapes below).
    def _rup(x, m):
        return (x + m - 1) // m * m
    est = 4 * (2 * 2 * c_in * hw            # fa, fb input blocks (double-buffered)
               + 2 * 2 * raw_c * tq         # raw-feature tiles
               + 2 * (c_mid * c_in + c_mid * 128)
               + 2 * 2 * tq * hw            # corr output tiles (double-buffered)
               + 2 * 2 * raw_c * hw         # warp accumulators
               + 2 * hw * _rup(c_mid, 128)  # feature scratch (lane-padded)
               )
    vmem_limit = None if est <= (16 << 20) else min(max(2 * est, 32 << 20), 64 << 20)

    kernel = functools.partial(_symmetry_attention_kernel, alpha=float(alpha),
                               tq=tq, mm_dtype=warp_matmul_dtype)

    out_shape = (
        jax.ShapeDtypeStruct((n, hw, hw), corr_dtype),       # corr_ab_T
        jax.ShapeDtypeStruct((n, hw, hw), corr_dtype),       # corr_ba_T
        jax.ShapeDtypeStruct((n, raw_c, hw), jnp.float32),   # a_warp (flat)
        jax.ShapeDtypeStruct((n, raw_c, hw), jnp.float32),   # b_warp (flat)
    )

    corr_ab, corr_ba, a_warp, b_warp = pl.pallas_call(
        kernel,
        out_shape=out_shape,
        grid_spec=pltpu.PrefetchScalarGridSpec(
            num_scalar_prefetch=0,
            grid=(n, nt),
            in_specs=[
                pl.BlockSpec((1, c_in, hw), lambda b, t: (b, 0, 0)),     # fa (resident over t)
                pl.BlockSpec((1, c_in, hw), lambda b, t: (b, 0, 0)),     # fb
                pl.BlockSpec((1, raw_c, tq), lambda b, t: (b, 0, t)),    # a_raw tile
                pl.BlockSpec((1, raw_c, tq), lambda b, t: (b, 0, t)),    # b_raw tile
                pl.BlockSpec((c_mid, c_in), lambda b, t: (0, 0)),        # wa
                pl.BlockSpec((c_mid, 1), lambda b, t: (0, 0)),           # ba
                pl.BlockSpec((c_mid, c_in), lambda b, t: (0, 0)),        # wb
                pl.BlockSpec((c_mid, 1), lambda b, t: (0, 0)),           # bb
            ],
            out_specs=(
                pl.BlockSpec((1, tq, hw), lambda b, t: (b, t, 0)),       # corr_ab_T rows
                pl.BlockSpec((1, tq, hw), lambda b, t: (b, t, 0)),       # corr_ba_T rows
                pl.BlockSpec((1, raw_c, hw), lambda b, t: (b, 0, 0)),    # a_warp accumulator
                pl.BlockSpec((1, raw_c, hw), lambda b, t: (b, 0, 0)),    # b_warp accumulator
            ),
            scratch_shapes=[
                pltpu.VMEM((hw, c_mid), jnp.float32),   # fa normalized features
                pltpu.VMEM((hw, c_mid), jnp.float32),   # fb normalized features (alpha folded)
            ],
        ),
        compiler_params=pltpu.CompilerParams(
            dimension_semantics=("parallel", "arbitrary"),
            vmem_limit_bytes=vmem_limit),
    )(fa_f, fb_f, a_raw_f, b_raw_f, wa2, ba2, wb2, bb2)

    return (corr_ab, corr_ba,
            a_warp.reshape(n, raw_c, h, w),
            b_warp.reshape(n, raw_c, h, w))


def reference_forward(fa, fb, a_raw, b_raw, wa, ba, wb, bb, alpha=SOFTMAX_ALPHA):
    """Pure-JAX reference matching the PyTorch module semantics."""
    P = jax.lax.Precision.HIGHEST

    def lrelu_conv_1x1(x, w, b):
        # ReflectionPad2d(0) is a no-op. Conv2d 1x1 + bias, InstanceNorm2d(affine=False),
        # LeakyReLU(0.01).
        y = jnp.einsum('nchw,oc->nohw', x, w, precision=P) + b[None, :, None, None]
        m = jnp.mean(y, axis=(2, 3), keepdims=True)
        v = jnp.mean((y - m) ** 2, axis=(2, 3), keepdims=True)  # biased, like InstanceNorm2d
        y = (y - m) / jnp.sqrt(v + IN_EPS)
        return jnp.where(y >= 0, y, LRELU_SLOPE * y)

    fa = lrelu_conv_1x1(fa, wa, ba)
    fb = lrelu_conv_1x1(fb, wb, bb)

    n, c, h, w = fa.shape
    raw_c = a_raw.shape[1]
    fa = fa - jnp.mean(fa, axis=(2, 3), keepdims=True)
    fb = fb - jnp.mean(fb, axis=(2, 3), keepdims=True)
    fa = fa.reshape(n, c, h * w)
    fb = fb.reshape(n, c, h * w)
    fa = fa / jnp.linalg.norm(fa, axis=1, keepdims=True)
    fb = fb / jnp.linalg.norm(fb, axis=1, keepdims=True)

    energy_ab_T = jnp.einsum('nci,ncj->nij', fb, fa, precision=P) * alpha
    corr_ab_T = jax.nn.softmax(energy_ab_T, axis=2)
    b_warp = jnp.einsum('nri,nij->nrj', b_raw.reshape(n, raw_c, h * w), corr_ab_T,
                        precision=P).reshape(n, raw_c, h, w)

    energy_ba_T = jnp.einsum('nci,ncj->nij', fa, fb, precision=P) * alpha
    corr_ba_T = jax.nn.softmax(energy_ba_T, axis=2)
    a_warp = jnp.einsum('nri,nij->nrj', a_raw.reshape(n, raw_c, h * w), corr_ba_T,
                        precision=P).reshape(n, raw_c, h, w)
    return corr_ab_T, corr_ba_T, a_warp, b_warp


if __name__ == "__main__":
    # Small shapes consistent with the module (the real module uses in_dim=1088, mid=136);
    # chosen so every kernel tile is (8,128)-aligned: Cin=128, HW=256, Cmid=16, Craw=32.
    n, c_in, h, w = 2, 128, 16, 16
    c_mid = c_in // 8
    raw_c = 32

    key = jax.random.PRNGKey(0)
    kfa, kfb, kar, kbr, kwa, kba, kwb, kbb = jax.random.split(key, 8)
    fa = jax.random.normal(kfa, (n, c_in, h, w), dtype=jnp.float32)
    fb = jax.random.normal(kfb, (n, c_in, h, w), dtype=jnp.float32)
    a_raw = jax.random.normal(kar, (n, raw_c, h, w), dtype=jnp.float32)
    b_raw = jax.random.normal(kbr, (n, raw_c, h, w), dtype=jnp.float32)
    wa = jax.random.normal(kwa, (c_mid, c_in), dtype=jnp.float32) / jnp.sqrt(c_in)
    ba = jax.random.normal(kba, (c_mid,), dtype=jnp.float32) * 0.1
    wb = jax.random.normal(kwb, (c_mid, c_in), dtype=jnp.float32) / jnp.sqrt(c_in)
    bb = jax.random.normal(kbb, (c_mid,), dtype=jnp.float32) * 0.1

    outs = jax.block_until_ready(
        symmetry_attention(fa, fb, a_raw, b_raw, wa, ba, wb, bb))
    refs = jax.block_until_ready(
        reference_forward(fa, fb, a_raw, b_raw, wa, ba, wb, bb))

    # corr_* are computed fully in f32 (tight tolerance); warps use bf16 MXU operands with
    # f32 accumulation (slightly looser tolerance).
    tols = {"corr_ab_T": (3e-3, 3e-3), "corr_ba_T": (3e-3, 3e-3),
            "a_warp": (2e-2, 2e-2), "b_warp": (2e-2, 2e-2)}
    for name, o, r in zip(("corr_ab_T", "corr_ba_T", "a_warp", "b_warp"), outs, refs):
        rtol, atol = tols[name]
        assert o.shape == r.shape, (name, o.shape, r.shape)
        assert jnp.allclose(o, r, rtol=rtol, atol=atol), f"mismatch vs reference in {name}"

    print("KERNEL_OK")
</pallas_src>

<mosaic_0001>
module attributes {stable_mosaic.version = 11 : i64} {
  func.func @_symmetry_attention_kernel(%arg0: i32, %arg1: i32, %arg2: memref<1x128x256xf32, #tpu.memory_space<vmem>>, %arg3: memref<1x128x256xf32, #tpu.memory_space<vmem>>, %arg4: memref<1x32x128xf32, #tpu.memory_space<vmem>>, %arg5: memref<1x32x128xf32, #tpu.memory_space<vmem>>, %arg6: memref<16x128xf32, #tpu.memory_space<vmem>>, %arg7: memref<16x1xf32, #tpu.memory_space<vmem>>, %arg8: memref<16x128xf32, #tpu.memory_space<vmem>>, %arg9: memref<16x1xf32, #tpu.memory_space<vmem>>, %arg10: memref<1x128x256xf32, #tpu.memory_space<vmem>>, %arg11: memref<1x128x256xf32, #tpu.memory_space<vmem>>, %arg12: memref<1x32x256xf32, #tpu.memory_space<vmem>>, %arg13: memref<1x32x256xf32, #tpu.memory_space<vmem>>, %arg14: memref<256x16xf32, #tpu.memory_space<vmem>>, %arg15: memref<256x16xf32, #tpu.memory_space<vmem>>) attributes {dimension_semantics = [#tpu.dimension_semantics<parallel>, #tpu.dimension_semantics<arbitrary>], iteration_bounds = array<i64: 2, 2>, scalar_prefetch = 0 : i64, scratch_operands = 2 : i64, tpu.core_type = #tpu.core_type<tc>, window_params = [{transform_indices = @transform_0, window_bounds = array<i64: 1, 128, 256>}, {transform_indices = @transform_1, window_bounds = array<i64: 1, 128, 256>}, {transform_indices = @transform_2, window_bounds = array<i64: 1, 32, 128>}, {transform_indices = @transform_3, window_bounds = array<i64: 1, 32, 128>}, {pipeline_mode = #tpu.pipeline_mode<synchronous>, transform_indices = @transform_4, window_bounds = array<i64: 16, 128>}, {pipeline_mode = #tpu.pipeline_mode<synchronous>, transform_indices = @transform_5, window_bounds = array<i64: 16, 1>}, {pipeline_mode = #tpu.pipeline_mode<synchronous>, transform_indices = @transform_6, window_bounds = array<i64: 16, 128>}, {pipeline_mode = #tpu.pipeline_mode<synchronous>, transform_indices = @transform_7, window_bounds = array<i64: 16, 1>}, {transform_indices = @transform_8, window_bounds = array<i64: 1, 128, 256>}, {transform_indices = @transform_9, window_bounds = array<i64: 1, 128, 256>}, {transform_indices = @transform_10, window_bounds = array<i64: 1, 32, 256>}, {transform_indices = @transform_11, window_bounds = array<i64: 1, 32, 256>}]} {
    %c0_i32 = arith.constant 0 : i32
    %0 = arith.cmpi eq, %arg1, %c0_i32 : i32
    %1 = arith.extui %0 : i1 to i32
    %c0_i32_0 = arith.constant 0 : i32
    %2 = arith.cmpi ne, %1, %c0_i32_0 : i32
    scf.if %2 {
      %c0_37 = arith.constant 0 : index
      %c0_38 = arith.constant 0 : index
      %c0_39 = arith.constant 0 : index
      %61 = vector.load %arg2[%c0_37, %c0_38, %c0_39] : memref<1x128x256xf32, #tpu.memory_space<vmem>>, vector<1x128x256xf32>
      %62 = vector.shape_cast %61 : vector<1x128x256xf32> to vector<128x256xf32>
      %c0_40 = arith.constant 0 : index
      %c0_41 = arith.constant 0 : index
      %63 = vector.load %arg6[%c0_40, %c0_41] : memref<16x128xf32, #tpu.memory_space<vmem>>, vector<16x128xf32>
      %cst_42 = arith.constant dense<0.000000e+00> : vector<16x256xf32>
      %64 = tpu.matmul %63, %62, %cst_42 {dimension_numbers = #tpu.dot_dimension_numbers<[1], [0], [0], [1], [0, 0, 1, 1], [], []>} : vector<16x128xf32>, vector<128x256xf32>, vector<16x256xf32> -> vector<16x256xf32>
      %c0_43 = arith.constant 0 : index
      %c0_44 = arith.constant 0 : index
      %65 = vector.load %arg7[%c0_43, %c0_44] : memref<16x1xf32, #tpu.memory_space<vmem>>, vector<16x1xf32>
      %66 = vector.broadcast %65 : vector<16x1xf32> to vector<16x256xf32>
      %67 = arith.addf %64, %66 : vector<16x256xf32>
      %cst_45 = arith.constant dense<0.000000e+00> : vector<16xf32>
      %68 = vector.multi_reduction <add>, %67, %cst_45 [1] : vector<16x256xf32> to vector<16xf32>
      %69 = vector.shape_cast %68 : vector<16xf32> to vector<16x1xf32>
      %cst_46 = arith.constant 2.560000e+02 : f32
      %70 = vector.broadcast %cst_46 : f32 to vector<16x1xf32>
      %71 = arith.divf %69, %70 : vector<16x1xf32>
      %72 = vector.broadcast %71 : vector<16x1xf32> to vector<16x256xf32>
      %73 = arith.subf %67, %72 : vector<16x256xf32>
      %74 = arith.mulf %73, %73 : vector<16x256xf32>
      %cst_47 = arith.constant dense<0.000000e+00> : vector<16xf32>
      %75 = vector.multi_reduction <add>, %74, %cst_47 [1] : vector<16x256xf32> to vector<16xf32>
      %76 = vector.shape_cast %75 : vector<16xf32> to vector<16x1xf32>
      %cst_48 = arith.constant 2.560000e+02 : f32
      %77 = vector.broadcast %cst_48 : f32 to vector<16x1xf32>
      %78 = arith.divf %76, %77 : vector<16x1xf32>
      %cst_49 = arith.constant 9.99999974E-6 : f32
      %79 = vector.broadcast %cst_49 : f32 to vector<16x1xf32>
      %80 = arith.addf %78, %79 : vector<16x1xf32>
      %81 = math.rsqrt %80 : vector<16x1xf32>
      %82 = vector.broadcast %81 : vector<16x1xf32> to vector<16x256xf32>
      %83 = arith.mulf %73, %82 : vector<16x256xf32>
      %cst_50 = arith.constant 0.000000e+00 : f32
      %84 = vector.broadcast %cst_50 : f32 to vector<16x256xf32>
      %85 = arith.cmpf oge, %83, %84 : vector<16x256xf32>
      %cst_51 = arith.constant 0.00999999977 : f32
      %86 = vector.broadcast %cst_51 : f32 to vector<16x256xf32>
      %87 = arith.mulf %86, %83 : vector<16x256xf32>
      %88 = arith.select %85, %83, %87 : vector<16x256xi1>, vector<16x256xf32>
      %cst_52 = arith.constant dense<0.000000e+00> : vector<16xf32>
      %89 = vector.multi_reduction <add>, %88, %cst_52 [1] : vector<16x256xf32> to vector<16xf32>
      %90 = vector.shape_cast %89 : vector<16xf32> to vector<16x1xf32>
      %cst_53 = arith.constant 2.560000e+02 : f32
      %91 = vector.broadcast %cst_53 : f32 to vector<16x1xf32>
      %92 = arith.divf %90, %91 : vector<16x1xf32>
      %93 = vector.broadcast %92 : vector<16x1xf32> to vector<16x256xf32>
      %94 = arith.subf %88, %93 : vector<16x256xf32>
      %95 = arith.mulf %94, %94 : vector<16x256xf32>
      %cst_54 = arith.constant dense<0.000000e+00> : vector<256xf32>
      %96 = vector.multi_reduction <add>, %95, %cst_54 [0] : vector<16x256xf32> to vector<256xf32>
      %97 = vector.shape_cast %96 : vector<256xf32> to vector<1x256xf32>
      %98 = math.rsqrt %97 : vector<1x256xf32>
      %99 = vector.broadcast %98 : vector<1x256xf32> to vector<16x256xf32>
      %100 = arith.mulf %94, %99 : vector<16x256xf32>
      %101 = tpu.transpose %100, [1, 0] : vector<16x256xf32> -> vector<256x16xf32>
      %c0_55 = arith.constant 0 : index
      %c0_56 = arith.constant 0 : index
      %102 = vector.load %arg14[%c0_55, %c0_56] : memref<256x16xf32, #tpu.memory_space<vmem>>, vector<256x16xf32>
      tpu.vector_store %arg14[%c0_55, %c0_56], %101 {strides = array<i32>} : memref<256x16xf32, #tpu.memory_space<vmem>>, vector<256x16xf32>,
      %c0_57 = arith.constant 0 : index
      %c0_58 = arith.constant 0 : index
      %c0_59 = arith.constant 0 : index
      %103 = vector.load %arg3[%c0_57, %c0_58, %c0_59] : memref<1x128x256xf32, #tpu.memory_space<vmem>>, vector<1x128x256xf32>
      %104 = vector.shape_cast %103 : vector<1x128x256xf32> to vector<128x256xf32>
      %c0_60 = arith.constant 0 : index
      %c0_61 = arith.constant 0 : index
      %105 = vector.load %arg8[%c0_60, %c0_61] : memref<16x128xf32, #tpu.memory_space<vmem>>, vector<16x128xf32>
      %cst_62 = arith.constant dense<0.000000e+00> : vector<16x256xf32>
      %106 = tpu.matmul %105, %104, %cst_62 {dimension_numbers = #tpu.dot_dimension_numbers<[1], [0], [0], [1], [0, 0, 1, 1], [], []>} : vector<16x128xf32>, vector<128x256xf32>, vector<16x256xf32> -> vector<16x256xf32>
      %c0_63 = arith.constant 0 : index
      %c0_64 = arith.constant 0 : index
      %107 = vector.load %arg9[%c0_63, %c0_64] : memref<16x1xf32, #tpu.memory_space<vmem>>, vector<16x1xf32>
      %108 = vector.broadcast %107 : vector<16x1xf32> to vector<16x256xf32>
      %109 = arith.addf %106, %108 : vector<16x256xf32>
      %cst_65 = arith.constant dense<0.000000e+00> : vector<16xf32>
      %110 = vector.multi_reduction <add>, %109, %cst_65 [1] : vector<16x256xf32> to vector<16xf32>
      %111 = vector.shape_cast %110 : vector<16xf32> to vector<16x1xf32>
      %cst_66 = arith.constant 2.560000e+02 : f32
      %112 = vector.broadcast %cst_66 : f32 to vector<16x1xf32>
      %113 = arith.divf %111, %112 : vector<16x1xf32>
      %114 = vector.broadcast %113 : vector<16x1xf32> to vector<16x256xf32>
      %115 = arith.subf %109, %114 : vector<16x256xf32>
      %116 = arith.mulf %115, %115 : vector<16x256xf32>
      %cst_67 = arith.constant dense<0.000000e+00> : vector<16xf32>
      %117 = vector.multi_reduction <add>, %116, %cst_67 [1] : vector<16x256xf32> to vector<16xf32>
      %118 = vector.shape_cast %117 : vector<16xf32> to vector<16x1xf32>
      %cst_68 = arith.constant 2.560000e+02 : f32
      %119 = vector.broadcast %cst_68 : f32 to vector<16x1xf32>
      %120 = arith.divf %118, %119 : vector<16x1xf32>
      %cst_69 = arith.constant 9.99999974E-6 : f32
      %121 = vector.broadcast %cst_69 : f32 to vector<16x1xf32>
      %122 = arith.addf %120, %121 : vector<16x1xf32>
      %123 = math.rsqrt %122 : vector<16x1xf32>
      %124 = vector.broadcast %123 : vector<16x1xf32> to vector<16x256xf32>
      %125 = arith.mulf %115, %124 : vector<16x256xf32>
      %cst_70 = arith.constant 0.000000e+00 : f32
      %126 = vector.broadcast %cst_70 : f32 to vector<16x256xf32>
      %127 = arith.cmpf oge, %125, %126 : vector<16x256xf32>
      %cst_71 = arith.constant 0.00999999977 : f32
      %128 = vector.broadcast %cst_71 : f32 to vector<16x256xf32>
      %129 = arith.mulf %128, %125 : vector<16x256xf32>
      %130 = arith.select %127, %125, %129 : vector<16x256xi1>, vector<16x256xf32>
      %cst_72 = arith.constant dense<0.000000e+00> : vector<16xf32>
      %131 = vector.multi_reduction <add>, %130, %cst_72 [1] : vector<16x256xf32> to vector<16xf32>
      %132 = vector.shape_cast %131 : vector<16xf32> to vector<16x1xf32>
      %cst_73 = arith.constant 2.560000e+02 : f32
      %133 = vector.broadcast %cst_73 : f32 to vector<16x1xf32>
      %134 = arith.divf %132, %133 : vector<16x1xf32>
      %135 = vector.broadcast %134 : vector<16x1xf32> to vector<16x256xf32>
      %136 = arith.subf %130, %135 : vector<16x256xf32>
      %137 = arith.mulf %136, %136 : vector<16x256xf32>
      %cst_74 = arith.constant dense<0.000000e+00> : vector<256xf32>
      %138 = vector.multi_reduction <add>, %137, %cst_74 [0] : vector<16x256xf32> to vector<256xf32>
      %139 = vector.shape_cast %138 : vector<256xf32> to vector<1x256xf32>
      %140 = math.rsqrt %139 : vector<1x256xf32>
      %cst_75 = arith.constant 1.000000e+02 : f32
      %141 = vector.broadcast %cst_75 : f32 to vector<1x256xf32>
      %142 = arith.mulf %140, %141 : vector<1x256xf32>
      %143 = vector.broadcast %142 : vector<1x256xf32> to vector<16x256xf32>
      %144 = arith.mulf %136, %143 : vector<16x256xf32>
      %145 = tpu.transpose %144, [1, 0] : vector<16x256xf32> -> vector<256x16xf32>
      %c0_76 = arith.constant 0 : index
      %c0_77 = arith.constant 0 : index
      %146 = vector.load %arg15[%c0_76, %c0_77] : memref<256x16xf32, #tpu.memory_space<vmem>>, vector<256x16xf32>
      tpu.vector_store %arg15[%c0_76, %c0_77], %145 {strides = array<i32>} : memref<256x16xf32, #tpu.memory_space<vmem>>, vector<256x16xf32>,
      %cst_78 = arith.constant 0.000000e+00 : f32
      %147 = vector.broadcast %cst_78 : f32 to vector<1x32x256xf32>
      %c0_79 = arith.constant 0 : index
      %c0_80 = arith.constant 0 : index
      %c0_81 = arith.constant 0 : index
      %148 = vector.load %arg12[%c0_79, %c0_80, %c0_81] : memref<1x32x256xf32, #tpu.memory_space<vmem>>, vector<1x32x256xf32>
      tpu.vector_store %arg12[%c0_79, %c0_80, %c0_81], %147 {strides = array<i32>} : memref<1x32x256xf32, #tpu.memory_space<vmem>>, vector<1x32x256xf32>,
      %cst_82 = arith.constant 0.000000e+00 : f32
      %149 = vector.broadcast %cst_82 : f32 to vector<1x32x256xf32>
      %c0_83 = arith.constant 0 : index
      %c0_84 = arith.constant 0 : index
      %c0_85 = arith.constant 0 : index
      %150 = vector.load %arg13[%c0_83, %c0_84, %c0_85] : memref<1x32x256xf32, #tpu.memory_space<vmem>>, vector<1x32x256xf32>
      tpu.vector_store %arg13[%c0_83, %c0_84, %c0_85], %149 {strides = array<i32>} : memref<1x32x256xf32, #tpu.memory_space<vmem>>, vector<1x32x256xf32>,
    } else {
    }
    %c128_i32 = arith.constant 128 : i32
    %3 = arith.muli %arg1, %c128_i32 : i32
    %4 = tpu.assume_multiple %3, 128 : i32
    %c0 = arith.constant 0 : index
    %c0_1 = arith.constant 0 : index
    %5 = vector.load %arg14[%c0, %c0_1] : memref<256x16xf32, #tpu.memory_space<vmem>>, vector<256x16xf32>
    %c0_2 = arith.constant 0 : index
    %c0_3 = arith.constant 0 : index
    %6 = vector.load %arg15[%c0_2, %c0_3] : memref<256x16xf32, #tpu.memory_space<vmem>>, vector<256x16xf32>
    %7 = arith.index_cast %4 : i32 to index
    %c0_4 = arith.constant 0 : index
    %8 = vector.load %arg14[%7, %c0_4] : memref<256x16xf32, #tpu.memory_space<vmem>>, vector<128x16xf32>
    %9 = arith.index_cast %4 : i32 to index
    %c0_5 = arith.constant 0 : index
    %10 = vector.load %arg15[%9, %c0_5] : memref<256x16xf32, #tpu.memory_space<vmem>>, vector<128x16xf32>
    %cst = arith.constant dense<0.000000e+00> : vector<128x256xf32>
    %11 = tpu.matmul %10, %5, %cst {dimension_numbers = #tpu.dot_dimension_numbers<[1], [1], [0], [0], [0, 0, 1, 0], [], []>} : vector<128x16xf32>, vector<256x16xf32>, vector<128x256xf32> -> vector<128x256xf32>
    %cst_6 = arith.constant dense<0xFF800000> : vector<128xf32>
    %12 = vector.multi_reduction <maximumf>, %11, %cst_6 [1] : vector<128x256xf32> to vector<128xf32>
    %13 = vector.shape_cast %12 : vector<128xf32> to vector<128x1xf32>
    %14 = vector.broadcast %13 : vector<128x1xf32> to vector<128x256xf32>
    %15 = arith.subf %11, %14 : vector<128x256xf32>
    %16 = math.exp %15 : vector<128x256xf32>
    %cst_7 = arith.constant dense<0.000000e+00> : vector<128xf32>
    %17 = vector.multi_reduction <add>, %16, %cst_7 [1] : vector<128x256xf32> to vector<128xf32>
    %18 = vector.shape_cast %17 : vector<128xf32> to vector<128x1xf32>
    %19 = tpu.reciprocal %18 : vector<128x1xf32> -> vector<128x1xf32>
    %20 = vector.broadcast %19 : vector<128x1xf32> to vector<128x256xf32>
    %21 = arith.mulf %16, %20 : vector<128x256xf32>
    %c0_8 = arith.constant 0 : index
    %c0_9 = arith.constant 0 : index
    %c0_10 = arith.constant 0 : index
    %22 = vector.load %arg10[%c0_8, %c0_9, %c0_10] : memref<1x128x256xf32, #tpu.memory_space<vmem>>, vector<1x128x256xf32>
    %23 = vector.shape_cast %22 : vector<1x128x256xf32> to vector<128x256xf32>
    %24 = vector.shape_cast %21 : vector<128x256xf32> to vector<1x128x256xf32>
    tpu.vector_store %arg10[%c0_8, %c0_9, %c0_10], %24 {strides = array<i32>} : memref<1x128x256xf32, #tpu.memory_space<vmem>>, vector<1x128x256xf32>,
    %c0_11 = arith.constant 0 : index
    %c0_12 = arith.constant 0 : index
    %c0_13 = arith.constant 0 : index
    %25 = vector.load %arg13[%c0_11, %c0_12, %c0_13] : memref<1x32x256xf32, #tpu.memory_space<vmem>>, vector<1x32x256xf32>
    %26 = vector.shape_cast %25 : vector<1x32x256xf32> to vector<32x256xf32>
    %c0_14 = arith.constant 0 : index
    %c0_15 = arith.constant 0 : index
    %c0_16 = arith.constant 0 : index
    %27 = vector.load %arg5[%c0_14, %c0_15, %c0_16] : memref<1x32x128xf32, #tpu.memory_space<vmem>>, vector<1x32x128xf32>
    %28 = vector.shape_cast %27 : vector<1x32x128xf32> to vector<32x128xf32>
    %29 = arith.truncf %28 : vector<32x128xf32> to vector<32x128xbf16>
    %30 = arith.truncf %21 : vector<128x256xf32> to vector<128x256xbf16>
    %cst_17 = arith.constant dense<0.000000e+00> : vector<32x256xf32>
    %31 = tpu.matmul %29, %30, %cst_17 {dimension_numbers = #tpu.dot_dimension_numbers<[1], [0], [0], [1], [0, 0, 1, 1], [], []>} : vector<32x128xbf16>, vector<128x256xbf16>, vector<32x256xf32> -> vector<32x256xf32>
    %32 = arith.addf %26, %31 : vector<32x256xf32>
    %c0_18 = arith.constant 0 : index
    %c0_19 = arith.constant 0 : index
    %c0_20 = arith.constant 0 : index
    %33 = vector.load %arg13[%c0_18, %c0_19, %c0_20] : memref<1x32x256xf32, #tpu.memory_space<vmem>>, vector<1x32x256xf32>
    %34 = vector.shape_cast %33 : vector<1x32x256xf32> to vector<32x256xf32>
    %35 = vector.shape_cast %32 : vector<32x256xf32> to vector<1x32x256xf32>
    tpu.vector_store %arg13[%c0_18, %c0_19, %c0_20], %35 {strides = array<i32>} : memref<1x32x256xf32, #tpu.memory_space<vmem>>, vector<1x32x256xf32>,
    %cst_21 = arith.constant dense<0.000000e+00> : vector<128x256xf32>
    %36 = tpu.matmul %8, %6, %cst_21 {dimension_numbers = #tpu.dot_dimension_numbers<[1], [1], [0], [0], [0, 0, 1, 0], [], []>} : vector<128x16xf32>, vector<256x16xf32>, vector<128x256xf32> -> vector<128x256xf32>
    %cst_22 = arith.constant dense<0xFF800000> : vector<128xf32>
    %37 = vector.multi_reduction <maximumf>, %36, %cst_22 [1] : vector<128x256xf32> to vector<128xf32>
    %38 = vector.shape_cast %37 : vector<128xf32> to vector<128x1xf32>
    %39 = vector.broadcast %38 : vector<128x1xf32> to vector<128x256xf32>
    %40 = arith.subf %36, %39 : vector<128x256xf32>
    %41 = math.exp %40 : vector<128x256xf32>
    %cst_23 = arith.constant dense<0.000000e+00> : vector<128xf32>
    %42 = vector.multi_reduction <add>, %41, %cst_23 [1] : vector<128x256xf32> to vector<128xf32>
    %43 = vector.shape_cast %42 : vector<128xf32> to vector<128x1xf32>
    %44 = tpu.reciprocal %43 : vector<128x1xf32> -> vector<128x1xf32>
    %45 = vector.broadcast %44 : vector<128x1xf32> to vector<128x256xf32>
    %46 = arith.mulf %41, %45 : vector<128x256xf32>
    %c0_24 = arith.constant 0 : index
    %c0_25 = arith.constant 0 : index
    %c0_26 = arith.constant 0 : index
    %47 = vector.load %arg11[%c0_24, %c0_25, %c0_26] : memref<1x128x256xf32, #tpu.memory_space<vmem>>, vector<1x128x256xf32>
    %48 = vector.shape_cast %47 : vector<1x128x256xf32> to vector<128x256xf32>
    %49 = vector.shape_cast %46 : vector<128x256xf32> to vector<1x128x256xf32>
    tpu.vector_store %arg11[%c0_24, %c0_25, %c0_26], %49 {strides = array<i32>} : memref<1x128x256xf32, #tpu.memory_space<vmem>>, vector<1x128x256xf32>,
    %c0_27 = arith.constant 0 : index
    %c0_28 = arith.constant 0 : index
    %c0_29 = arith.constant 0 : index
    %50 = vector.load %arg12[%c0_27, %c0_28, %c0_29] : memref<1x32x256xf32, #tpu.memory_space<vmem>>, vector<1x32x256xf32>
    %51 = vector.shape_cast %50 : vector<1x32x256xf32> to vector<32x256xf32>
    %c0_30 = arith.constant 0 : index
    %c0_31 = arith.constant 0 : index
    %c0_32 = arith.constant 0 : index
    %52 = vector.load %arg4[%c0_30, %c0_31, %c0_32] : memref<1x32x128xf32, #tpu.memory_space<vmem>>, vector<1x32x128xf32>
    %53 = vector.shape_cast %52 : vector<1x32x128xf32> to vector<32x128xf32>
    %54 = arith.truncf %53 : vector<32x128xf32> to vector<32x128xbf16>
    %55 = arith.truncf %46 : vector<128x256xf32> to vector<128x256xbf16>
    %cst_33 = arith.constant dense<0.000000e+00> : vector<32x256xf32>
    %56 = tpu.matmul %54, %55, %cst_33 {dimension_numbers = #tpu.dot_dimension_numbers<[1], [0], [0], [1], [0, 0, 1, 1], [], []>} : vector<32x128xbf16>, vector<128x256xbf16>, vector<32x256xf32> -> vector<32x256xf32>
    %57 = arith.addf %51, %56 : vector<32x256xf32>
    %c0_34 = arith.constant 0 : index
    %c0_35 = arith.constant 0 : index
    %c0_36 = arith.constant 0 : index
    %58 = vector.load %arg12[%c0_34, %c0_35, %c0_36] : memref<1x32x256xf32, #tpu.memory_space<vmem>>, vector<1x32x256xf32>
    %59 = vector.shape_cast %58 : vector<1x32x256xf32> to vector<32x256xf32>
    %60 = vector.shape_cast %57 : vector<32x256xf32> to vector<1x32x256xf32>
    tpu.vector_store %arg12[%c0_34, %c0_35, %c0_36], %60 {strides = array<i32>} : memref<1x32x256xf32, #tpu.memory_space<vmem>>, vector<1x32x256xf32>,
    return
  }
  func.func @transform_0(%arg0: i32, %arg1: i32) -> (i32, i32, i32) {
    %c0_i32 = arith.constant 0 : i32
    %c0_i32_0 = arith.constant 0 : i32
    %c0_i32_1 = arith.constant 0 : i32
    return %arg0, %c0_i32, %c0_i32_0 : i32, i32, i32
  }
  func.func @transform_1(%arg0: i32, %arg1: i32) -> (i32, i32, i32) {
    %c0_i32 = arith.constant 0 : i32
    %c0_i32_0 = arith.constant 0 : i32
    %c0_i32_1 = arith.constant 0 : i32
    return %arg0, %c0_i32, %c0_i32_0 : i32, i32, i32
  }
  func.func @transform_2(%arg0: i32, %arg1: i32) -> (i32, i32, i32) {
    %c0_i32 = arith.constant 0 : i32
    %c0_i32_0 = arith.constant 0 : i32
    return %arg0, %c0_i32, %arg1 : i32, i32, i32
  }
  func.func @transform_3(%arg0: i32, %arg1: i32) -> (i32, i32, i32) {
    %c0_i32 = arith.constant 0 : i32
    %c0_i32_0 = arith.constant 0 : i32
    return %arg0, %c0_i32, %arg1 : i32, i32, i32
  }
  func.func @transform_4(%arg0: i32, %arg1: i32) -> (i32, i32) {
    %c0_i32 = arith.constant 0 : i32
    %c0_i32_0 = arith.constant 0 : i32
    %c0_i32_1 = arith.constant 0 : i32
    return %c0_i32, %c0_i32_0 : i32, i32
  }
  func.func @transform_5(%arg0: i32, %arg1: i32) -> (i32, i32) {
    %c0_i32 = arith.constant 0 : i32
    %c0_i32_0 = arith.constant 0 : i32
    %c0_i32_1 = arith.constant 0 : i32
    return %c0_i32, %c0_i32_0 : i32, i32
  }
  func.func @transform_6(%arg0: i32, %arg1: i32) -> (i32, i32) {
    %c0_i32 = arith.constant 0 : i32
    %c0_i32_0 = arith.constant 0 : i32
    %c0_i32_1 = arith.constant 0 : i32
    return %c0_i32, %c0_i32_0 : i32, i32
  }
  func.func @transform_7(%arg0: i32, %arg1: i32) -> (i32, i32) {
    %c0_i32 = arith.constant 0 : i32
    %c0_i32_0 = arith.constant 0 : i32
    %c0_i32_1 = arith.constant 0 : i32
    return %c0_i32, %c0_i32_0 : i32, i32
  }
  func.func @transform_8(%arg0: i32, %arg1: i32) -> (i32, i32, i32) {
    %c0_i32 = arith.constant 0 : i32
    %c0_i32_0 = arith.constant 0 : i32
    return %arg0, %arg1, %c0_i32 : i32, i32, i32
  }
  func.func @transform_9(%arg0: i32, %arg1: i32) -> (i32, i32, i32) {
    %c0_i32 = arith.constant 0 : i32
    %c0_i32_0 = arith.constant 0 : i32
    return %arg0, %arg1, %c0_i32 : i32, i32, i32
  }
  func.func @transform_10(%arg0: i32, %arg1: i32) -> (i32, i32, i32) {
    %c0_i32 = arith.constant 0 : i32
    %c0_i32_0 = arith.constant 0 : i32
    %c0_i32_1 = arith.constant 0 : i32
    return %arg0, %c0_i32, %c0_i32_0 : i32, i32, i32
  }
  func.func @transform_11(%arg0: i32, %arg1: i32) -> (i32, i32, i32) {
    %c0_i32 = arith.constant 0 : i32
    %c0_i32_0 = arith.constant 0 : i32
    %c0_i32_1 = arith.constant 0 : i32
    return %arg0, %c0_i32, %c0_i32_0 : i32, i32, i32
  }
}

</mosaic_0001>

<bundles_post_ra>
// kernel: tpu_custom_call.1
= control target key start
LH: loop header
LB: loop body
LE: loop exit
PB: predicated region body
PF: predicated region fallthrough
CT: control target
= control target key end

     0   :  { %s6405_s0 = inlined_call_operand.hbm [shape: f32[2,128,256], index: 0, kind: input, shape index: {}]   ;;  %s6406_s1 = inlined_call_operand.hbm [shape: f32[2,128,256], index: 1, kind: input, shape index: {}]   ;;  %s6407_s2 = inlined_call_operand.hbm [shape: f32[2,32,256], index: 2, kind: input, shape index: {}]   ;;  %s6408_s3 = inlined_call_operand.hbm [shape: f32[2,32,256], index: 3, kind: input, shape index: {}]   ;;  %s6409_s4 = inlined_call_operand.vmem [shape: f32[16,128], index: 4, kind: input, shape index: {}]   ;;  %s6410_s5 = inlined_call_operand.vmem [shape: f32[16,1], index: 5, kind: input, shape index: {}]   ;;  %s6411_s6 = inlined_call_operand.vmem [shape: f32[16,128], index: 6, kind: input, shape index: {}]   ;;  %s6412_s7 = inlined_call_operand.vmem [shape: f32[16,1], index: 7, kind: input, shape index: {}]   ;;  %s6413_s8 = inlined_call_operand.hbm [shape: f32[2,256,256], index: 8, kind: output, shape index: {0}]   ;;  %s6414_s9 = inlined_call_operand.hbm [shape: f32[2,256,256], index: 9, kind: output, shape index: {1}]   ;;  %s6415_s10 = inlined_call_operand.hbm [shape: f32[2,32,256], index: 10, kind: output, shape index: {2}]   ;;  %s6416_s11 = inlined_call_operand.hbm [shape: f32[2,32,256], index: 11, kind: output, shape index: {3}]  }
   0x1   :  { %6450 = sst [smem:[#allocation44_spill]] %s6405_s0 }
   0x2   :  { %6451 = sst [smem:[#allocation45_spill]] %s6406_s1 }
   0x3   :  { %6452 = sst [smem:[#allocation46_spill]] %s6407_s2 }
   0x4   :  { %6453 = sst [smem:[#allocation47_spill]] %s6408_s3 }
   0x5   :  { %6454 = sst [smem:[#allocation48_spill]] %s6409_s4 }
   0x6   :  { %6455 = sst [smem:[#allocation49_spill]] %s6410_s5 }
   0x7   :  { %6456 = sst [smem:[#allocation50_spill]] %s6411_s6 }
   0x8   :  { %6457 = sst [smem:[#allocation51_spill]] %s6412_s7 }
   0x9   :  { %6458 = sst [smem:[#allocation52_spill]] %s6413_s8 }
   0xa   :  { %6459 = sst [smem:[#allocation53_spill]] %s6414_s9 }
   0xb   :  { %6460 = sst [smem:[#allocation54_spill]] %s6415_s10 }
   0xc   :  { %6461 = sst [smem:[#allocation55_spill]] %s6416_s11 }
   0xd   :  { %17 = vsyncpa [#allocation5], 0 }
   0xe   :  { %19 = vsyncpa [#allocation5 + $0x1], 0 }
   0xf   :  { %20 = vsyncpa [#allocation8], 0 }
  0x10   :  { %22 = vsyncpa [#allocation8 + $0x1], 0 }
  0x11   :  { %23 = vsyncpa [#allocation11], 0 }
  0x12   :  { %25 = vsyncpa [#allocation11 + $0x1], 0 }
  0x13   :  { %26 = vsyncpa [#allocation6], 0 }
  0x14   :  { %28 = vsyncpa [#allocation6 + $0x1], 0 }
  0x15   :  { %29 = vsyncpa [#allocation14], 0 }
  0x16   :  { %31 = vsyncpa [#allocation14 + $0x1], 0 }
  0x17   :  { %32 = vsyncpa [#allocation17], 0 }
  0x18   :  { %34 = vsyncpa [#allocation17 + $0x1], 0  ;;  %s4297_s17 = smov 0   ;;  %s4299_s18 = smov 0  }
  0x19   :  { %s4301_s19 = smov 0   ;;  %s4303_s20 = smov 0  }
  0x1a   :  { %s4305_s21 = smov 0   ;;  %s4307_s22 = smov 0  }
  0x1b   :  { %s4309_s23 = smov 0   ;;  %s4311_s24 = smov 0  }
  0x1c   :  { %s4313_s25 = smov 0   ;;  %s4315_s26 = smov 0  }
  0x1d   :  { %s4317_s27 = smov 0  }
  0x1e LB: > { %6462 = sst [smem:[#allocation26_spill]] %s4186_s17  ;;  %s4353_s28 = sadd.s32 4294967295, %s4226_s27   ;;  %s4226_s27 = sphi %s4317_s27, %s40_s27   ;;  %s4222_s26 = sphi %s4315_s26, %s6612_s26   ;;  %s4218_s25 = sphi %s4313_s25, %s6611_s25   ;;  %s4214_s24 = sphi %s4311_s24, %s6610_s24   ;;  %s4210_s23 = sphi %s4309_s23, %s6609_s23   ;;  %s4206_s22 = sphi %s4307_s22, %s6602_s22   ;;  %s4202_s21 = sphi %s4305_s21, %s6608_s21   ;;  %s4198_s20 = sphi %s4303_s20, %s6607_s20   ;;  %s4194_s19 = sphi %s4301_s19, %s6606_s19   ;;  %s4190_s18 = sphi %s4299_s18, %s6605_s18   ;;  %s4186_s17 = sphi %s4297_s17, %s6599_s17  }
  0x1f   : > { %6463 = sst [smem:[#allocation27_spill]] %s4190_s18  ;;  %s49_s30 = sadd.s32 1, %s4218_s25 }
  0x20   : > { %6464 = sst [smem:[#allocation28_spill]] %s4198_s20  ;;  %s52_s12 = sadd.s32 1, %s4222_s26 }
  0x21   : > { %6465 = sst [smem:[#allocation29_spill]] %s4206_s22  ;;  %p50_p0 = scmp.ge.s32.totalorder %s49_s30, 2 }
  0x22   : > { %6466 = sst [smem:[#allocation30_spill]] %s4210_s23  ;;  %s59_s13 = sadd.s32 1, %s4206_s22 }
  0x23   : > { %6467 = sst [smem:[#allocation31_spill]] %s4214_s24  ;;  %p66_p1 = scmp.ne.s32.totalorder %s4206_s22, %s4202_s21 }
  0x24   : > { %6468 = sst [smem:[#allocation32_spill]] %s4226_s27  ;;  %p67_p2 = scmp.eq.s32.totalorder %s4226_s27, 0 }
  0x25   : > { %s6614_s30 = smov (%p50_p0, %s49_s30), 0  ;;  %s6616_s12 = smov (!%p50_p0, %s52_s12), %s4222_s26 }
  0x26   : > { %6469 = sst [smem:[#allocation33_spill]] %s6614_s30  ;;  %p4370_p3 = por %p67_p2, %p66_p1 }
  0x27   : > { %p6423_p4 = scmp.ne.s32.totalorder %s4202_s21, %s4198_s20  ;;  %p54_p5 = scmp.ge.s32.totalorder %s6616_s12, 2 }
  0x28   : > { %p73_p6 = scmp.eq.s32.totalorder %s4353_s28, 0  ;;  %s109_s15 = ssub.s32 %s4218_s25, %s6614_s30 }
  0x29   : > { %s113_s16 = sadd.s32 1, %s4194_s19  ;;  %s6618_s12 = smov (%p54_p5, %s6616_s12), 0 }
  0x2a   : > { %6471 = sst [smem:[#allocation34_spill]] %s6618_s12  ;;  %p4387_p7 = por %p73_p6, %p6423_p4 }
  0x2b   : > { %p120_p8 = scmp.ne.s32.totalorder %s4194_s19, %s4190_s18  ;;  %s56_s10 = ssub.s32 %s4222_s26, %s6618_s12 }
  0x2c   : > { %p126_p9 = scmp.ne.s32.totalorder %s4190_s18, %s4186_s17  ;;  %p57_p10 = scmp.eq.s32.totalorder %s56_s10, 0 }
  0x2d   : > { %s110_s30 = sor.u32 %s109_s15, %s56_s10  ;;  %p4399_p12 = por %p120_p8, %p67_p2 }
  0x2e   : > { %p111_p11 = scmp.eq.s32.totalorder %s110_s30, 0  ;;  %p4411_p13 = por %p126_p9, %p73_p6 }
  0x2f   : > { %s4404_s8 = scalar_select %p57_p10, %s4206_s22, %s59_s13  }
  0x30   : > { %s4407_s9 = scalar_select %p111_p11, %s4194_s19, %s113_s16  }
  0x31   : > { %6474 = sst [smem:[#allocation35_spill]] %s4404_s8  ;;  %p264_p0 = scmp.eq.s32.totalorder %s4353_s28, 3 }
  0x32   : > { %6475 = sst [smem:[#allocation36_spill]] %s4407_s9  ;;  %s6478_s10 = sadd.s32 4294967294, %s4226_s27  }
  0x33   : > { %s6476_s12 = scalar_select %p4411_p13, 1, 0 }
  0x34   : > { %p270_p5 = scmp.eq.s32.totalorder %s6478_s10, 3  ;;  %p4418_p4 = por %p264_p0, %p120_p8 }
  0x35   : > { %6477 = sst [smem:[#allocation37_spill]] %s6476_s12  ;;  %p4425_p2 = por %p264_p0, %p66_p1 }
  0x36   : > { %s6479_s30 = scalar_select %p4418_p4, 1, 0 }
  0x37   : > { %s6481_s15 = scalar_select %p4425_p2, 1, 0 }
  0x38   : > { %6480 = sst [smem:[#allocation38_spill]] %s6479_s30  ;;  %p4429_p10 = por %p270_p5, %p126_p9 }
  0x39   : > { %6482 = sst [smem:[#allocation39_spill]] %s6481_s15  ;;  %p6485_p6 = scmp.ne.s32.totalorder %s4202_s21, %s4198_s20 }
  0x3a   : > { %s6483_s13 = scalar_select %p4429_p10, 1, 0 }
  0x3b   : > { %p4436_p11 = por %p270_p5, %p6485_p6  ;;  %p3565_p13 = scmp.lt.s32.totalorder %s4226_s27, 4 }
  0x3c   : > { %6484 = sst [smem:[#allocation40_spill]] %s6483_s13  ;;  %s382_s10 = sand.u32 1, %s4206_s22  }
  0x3d   : > { %s6486_s16 = scalar_select %p4436_p11, 1, 0 }
  0x3e   : > { %s3348_s8 = sshll.u32 %s382_s10, 8  ;;  %s3517_s9 = sshll.u32 %s4222_s26, 8 }
  0x3f   : > { %6487 = sst [smem:[#allocation41_spill]] %s6486_s16  ;;  %p4447_p1 = pnand %p3565_p13, %p4370_p3 }
  0x40   : > { %s404_s20 = sand.u32 1, %s4226_s27   ;;  %s6489_s1 = sld [smem:[#allocation45_spill]] }
  0x41   : > { %s408_s24 = scalar_lea.vmem [#allocation7], %s3348_s8  ;;  %s4455_s22 = scalar_lea.sflag [#allocation8], %s404_s20 }
  0x42   : > { %s416_s7 = sshll.u32 %s408_s24, 4  ;;  %s4228_s14 = smov 256   ;;  %s417_s7 = int_to_ptr.vmem [resolvable:$true] %s416_s7 }
  0x43   : > { %s4229_s5 = smov 16   ;;  %p4466_p3 = pnand %p3565_p13, %p4399_p12 }
  0x44   : > { %p3360_p8 = scmp.ge.s32.totalorder %s4226_s27, 1  ;;  %p470_p9 = scmp.lt.s32.totalorder %s4226_s27, 5 }
  0x45   : > { %s6492_s0 = sld [smem:[#allocation44_spill]]  ;;  %s386_s6 = scalar_lea.vmem [#allocation4], %s3348_s8 }
  0x46   : > { %s413_s16 = scalar_lea.hbm %s6489_s1, %s3517_s9  ;;  %p4472_p0 = pnand %p3360_p8, %p470_p9 }
  0x47   : > { %s414_s30 = sshll.u32 %s413_s16, 4  ;;  %s383_s11 = scalar_lea.sflag [#allocation5], %s382_s10  ;;  %s415_s30 = int_to_ptr.hbm [resolvable:$true] %s414_s30 }
  0x48   : > { %3545 = dma.hbm_to_vmem [thread:$0]  (!%p4447_p1), %s415_s30, 4096, %s417_s7, %s4455_s22, %s4228_s14, %s4228_s14, %s4229_s5  }
  0x49   : > { %s394_s7 = sshll.u32 %s386_s6, 4  ;;  %s428_s30 = sand.u32 1, %s4194_s19   ;;  %s395_s7 = int_to_ptr.vmem [resolvable:$true] %s394_s7 }
  0x4a   : > { %s3355_s27 = sshll.u32 %s4222_s26, 3  ;;  %s3354_s4 = sshll.u32 %s428_s30, 5 }
  0x4b   : > { %s391_s16 = scalar_lea.hbm %s6492_s0, %s3517_s9  ;;  %s434_s23 = sadd.s32 %s4218_s25, %s3355_s27 }
  0x4c   : > { %s392_s1 = sshll.u32 %s391_s16, 4  ;;  %s3356_s12 = sshll.u32 %s434_s23, 3  ;;  %s393_s1 = int_to_ptr.hbm [resolvable:$true] %s392_s1 }
  0x4d   : > { %3542 = dma.hbm_to_vmem [thread:$0]  (!%p4447_p1), %s393_s1, 4096, %s395_s7, %s383_s11, %s4228_s14, %s4228_s14, %s4229_s5  }
  0x4e   : > { %s6493_s2 = sld [smem:[#allocation46_spill]]  ;;  %s430_s6 = scalar_lea.vmem [#allocation9], %s3354_s4 }
  0x4f   : > { %s439_s8 = sshll.u32 %s430_s6, 4  ;;  %s4230_s10 = smov 128   ;;  %s440_s8 = int_to_ptr.vmem [resolvable:$true] %s439_s8 }
  0x50   : > { %s4231_s17 = smov 8   ;;  %s6494_s3 = sld [smem:[#allocation47_spill]] }
  0x51   : > { %s453_s16 = scalar_lea.vmem [#allocation10], %s3354_s4  ;;  %s450_s18 = scalar_lea.sflag [#allocation11], %s428_s30 }
  0x52   : > { %s462_s7 = sshll.u32 %s453_s16, 4  ;;  %s463_s7 = int_to_ptr.vmem [resolvable:$true] %s462_s7 }
  0x54   : > { %s436_s9 = scalar_lea.hbm %s6493_s2, %s3356_s12 }
  0x55   : > { %s437_s13 = sshll.u32 %s436_s9, 4  ;;  %474 = sbr.rel (%p4472_p0) target bundleno = 2537 (0x9e9), region = 52  ;;  %s438_s13 = int_to_ptr.hbm [resolvable:$true] %s437_s13 }
  0x56   : > { %3548 = dma.hbm_to_vmem [thread:$0]  (!%p4466_p3), %s438_s13, 512, %s440_s8, %s4455_s22, %s4228_s14, %s4230_s10, %s4231_s17  }
  0x57   : > { %s459_s27 = scalar_lea.hbm %s6494_s3, %s3356_s12 }
  0x58   : > { %s460_s23 = sshll.u32 %s459_s27, 4  ;;  %s461_s23 = int_to_ptr.hbm [resolvable:$true] %s460_s23 }
  0x59   : > { %3551 = dma.hbm_to_vmem [thread:$0]  (!%p4466_p3), %s461_s23, 512, %s463_s7, %s450_s18, %s4228_s14, %s4230_s10, %s4231_s17  }
  0x5a   : > { %s4502_s11 = sand.u32 1, %s4202_s21  }
  0x5b   : > { %s3361_s22 = sshll.u32 %s4502_s11, 8  ;;  %s477_s12 = scalar_lea.sflag [#allocation5], %s4502_s11 }
  0x5c   : > { %s4506_s24 = scalar_lea.vmem [#allocation4], %s3361_s22 }
  0x5d   : > { %4153 = dma.done.wait (%p4387_p7), %s477_s12, 4096  }
  0x5e   : > { %4155 = vsyncadd (%p4387_p7), %s477_s12, 4294963200  ;;  %s6446_s4 = sand.u32 1, %s4353_s28   ;;  %s4515_s15 = scalar_lea.vmem [#allocation7], %s3361_s22 }
  0x5f   : > { %s487_s14 = scalar_lea.sflag [#allocation8], %s6446_s4 }
  0x60   : > { %4157 = dma.done.wait (%p4387_p7), %s487_s14, 4096  }
  0x61   : > { %4159 = vsyncadd (%p4387_p7), %s487_s14, 4294963200  ;;  %s6495_s20 = sld [smem:[#allocation27_spill]] }
  0x62   : > { %s6496_s30 = sld [smem:[#allocation37_spill]] }
  0x67   : > { %s4522_s9 = sand.u32 1, %s6495_s20  }
  0x68   : > { %s3363_s6 = sshll.u32 %s4522_s9, 5  ;;  %p6497_p12 = scmp.ne.s32.totalorder %s6496_s30, 0 }
  0x69   : > { %s4525_s8 = scalar_lea.vmem [#allocation9], %s3363_s6 }
  0x6a   : > { %4161 = dma.done.wait (%p6497_p12), %s487_s14, 512  }
  0x6b   : > { %4163 = vsyncadd (%p6497_p12), %s487_s14, 4294966784  ;;  %s507_s13 = scalar_lea.sflag [#allocation11], %s4522_s9  ;;  %s4532_s10 = scalar_lea.vmem [#allocation10], %s3363_s6 }
  0x6c   : > { %4165 = dma.done.wait (%p6497_p12), %s507_s13, 512  }
  0x6d   : > { %4167 = vsyncadd (%p6497_p12), %s507_s13, 4294966784  ;;  %s3365_s29 = sshll.u32 %s4522_s9, 8  ;;  %s3367_s17 = sshll.u32 %s4502_s11, 6 }
  0x6e   : > { %s4540_s1 = scalar_lea.vmem [#allocation12], %s3365_s29  ;;  %s4542_s5 = scalar_lea.vmem [#allocation13], %s3365_s29 }
  0x6f   : > { %s4544_s27 = scalar_lea.vmem [#allocation15], %s3367_s17  ;;  %s4546_s23 = scalar_lea.vmem [#allocation16], %s3367_s17 }
  0x70   : > { %s6498_s16 = sld [smem:[#allocation30_spill]] }
  0x76   : > { %p3369_p7 = scmp.ne.s32.totalorder %s6498_s16, 0 }
  0x77   : > { %s6499_s22 = sld [smem:[#allocation48_spill]] (!%p3369_p7) }
  0x78   : > { %585 = sbr.rel (%p3369_p7) target bundleno = 1143 (0x477), region = 72  ;;  %s6501_s30 = sld [smem:[#allocation50_spill]] (!%p3369_p7) }
  0x79   : > { %s6502_s13 = sld [smem:[#allocation49_spill]] (!%p3369_p7) }
  0x7a   : > { %s6503_s17 = sld [smem:[#allocation51_spill]] (!%p3369_p7) }
  0x7d   : > { %v616_v0 = vld [vmem:[%s4506_s24 + $0xf0] sm:$0xff]  ;;  %v617_v1 = vld [vmem:[%s4506_s24 + $0xf8] sm:$0xff]  ;;  %v4232_v3 = vmov 0.0   ;;  %v614_v5 = vld [vmem:[%s4506_s24 + $0xe0] sm:$0xff]  ;;  %s6500_s12 = smov %s6499_s22 }
  0x7e   : > { %v928_v2 = vld [vmem:[%s4515_s15 + $0xf0] sm:$0xff]  ;;  %632 = vmatpush.msra.mxu0 %v616_v0  ;;  %655 = vmatpush.msra.mxu1 %v617_v1  ;;  %1204 = vst [vmem:[%s4544_s27] sm:$0xff] %v4232_v3  ;;  %v929_v4 = vld [vmem:[%s4515_s15 + $0xf8] sm:$0xff]  ;;  %v615_v6 = vld [vmem:[%s4506_s24 + $0xe8] sm:$0xff] }
  0x7f   : > { %944 = vmatpush.msra.mxu2 %v928_v2  ;;  %1205 = vst [vmem:[%s4544_s27 + $0x8] sm:$0xff] %v4232_v3  ;;  %967 = vmatpush.msra.mxu3 %v929_v4  ;;  %v926_v7 = vld [vmem:[%s4515_s15 + $0xe0] sm:$0xff]  ;;  %v927_v8 = vld [vmem:[%s4515_s15 + $0xe8] sm:$0xff]  ;;  %v612_v9 = vld [vmem:[%s4506_s24 + $0xd0] sm:$0xff] }
  0x80   : > { %1206 = vst [vmem:[%s4544_s27 + $0x10] sm:$0xff] %v4232_v3  ;;  %633 = vmatpush.msra.mxu0 %v614_v5  ;;  %656 = vmatpush.msra.mxu1 %v615_v6  ;;  %v613_v10 = vld [vmem:[%s4506_s24 + $0xd8] sm:$0xff]  ;;  %v924_v11 = vld [vmem:[%s4515_s15 + $0xd0] sm:$0xff]  ;;  %v610_v13 = vld [vmem:[%s4506_s24 + $0xc0] sm:$0xff]  ;;  %s6504_s16 = smov %s6503_s17  ;;  %v4233_v5 = vmov 0  }
  0x81   : > { %v925_v12 = vld [vmem:[%s4515_s15 + $0xd8] sm:$0xff]  ;;  %1207 = vst [vmem:[%s4544_s27 + $0x18] sm:$0xff] %v4232_v3  ;;  %945 = vmatpush.msra.mxu2 %v926_v7  ;;  %968 = vmatpush.msra.mxu3 %v927_v8  ;;  %v611_v14 = vld [vmem:[%s4506_s24 + $0xc8] sm:$0xff]  ;;  %v922_v15 = vld [vmem:[%s4515_s15 + $0xc0] sm:$0xff] }
  0x82   : > { %1208 = vst [vmem:[%s4544_s27 + $0x20] sm:$0xff] %v4232_v3  ;;  %634 = vmatpush.msra.mxu0 %v612_v9  ;;  %657 = vmatpush.msra.mxu1 %v613_v10  ;;  %v923_v16 = vld [vmem:[%s4515_s15 + $0xc8] sm:$0xff]  ;;  %v608_v17 = vld [vmem:[%s4506_s24 + $0xb0] sm:$0xff]  ;;  %v609_v18 = vld [vmem:[%s4506_s24 + $0xb8] sm:$0xff] }
  0x83   : > { %1209 = vst [vmem:[%s4544_s27 + $0x28] sm:$0xff] %v4232_v3  ;;  %946 = vmatpush.msra.mxu2 %v924_v11  ;;  %969 = vmatpush.msra.mxu3 %v925_v12  ;;  %v920_v19 = vld [vmem:[%s4515_s15 + $0xb0] sm:$0xff]  ;;  %v921_v20 = vld [vmem:[%s4515_s15 + $0xb8] sm:$0xff]  ;;  %v606_v21 = vld [vmem:[%s4506_s24 + $0xa0] sm:$0xff] }
  0x84   : > { %1210 = vst [vmem:[%s4544_s27 + $0x30] sm:$0xff] %v4232_v3  ;;  %635 = vmatpush.msra.mxu0 %v610_v13  ;;  %658 = vmatpush.msra.mxu1 %v611_v14  ;;  %v607_v22 = vld [vmem:[%s4506_s24 + $0xa8] sm:$0xff]  ;;  %v918_v23 = vld [vmem:[%s4515_s15 + $0xa0] sm:$0xff]  ;;  %v604_v25 = vld [vmem:[%s4506_s24 + $0x90] sm:$0xff] }
  0x85   : > { %1211 = vst [vmem:[%s4544_s27 + $0x38] sm:$0xff] %v4232_v3  ;;  %947 = vmatpush.msra.mxu2 %v922_v15  ;;  %970 = vmatpush.msra.mxu3 %v923_v16  ;;  %v919_v24 = vld [vmem:[%s4515_s15 + $0xa8] sm:$0xff]  ;;  %v605_v26 = vld [vmem:[%s4506_s24 + $0x98] sm:$0xff]  ;;  %v916_v27 = vld [vmem:[%s4515_s15 + $0x90] sm:$0xff] }
  0x86   : > { %1212 = vst [vmem:[%s4546_s23] sm:$0xff] %v4232_v3  ;;  %636 = vmatpush.msra.mxu0 %v608_v17  ;;  %659 = vmatpush.msra.mxu1 %v609_v18  ;;  %v917_v28 = vld [vmem:[%s4515_s15 + $0x98] sm:$0xff]  ;;  %v602_v29 = vld [vmem:[%s4506_s24 + $0x80] sm:$0xff]  ;;  %v603_v30 = vld [vmem:[%s4506_s24 + $0x88] sm:$0xff] }
  0x87   : > { %1213 = vst [vmem:[%s4546_s23 + $0x8] sm:$0xff] %v4232_v3  ;;  %948 = vmatpush.msra.mxu2 %v920_v19  ;;  %971 = vmatpush.msra.mxu3 %v921_v20  ;;  %v914_v31 = vld [vmem:[%s4515_s15 + $0x80] sm:$0xff]  ;;  %v915_v32 = vld [vmem:[%s4515_s15 + $0x88] sm:$0xff]  ;;  %v600_v33 = vld [vmem:[%s4506_s24 + $0x70] sm:$0xff] }
  0x88   : > { %1214 = vst [vmem:[%s4546_s23 + $0x10] sm:$0xff] %v4232_v3  ;;  %637 = vmatpush.msra.mxu0 %v606_v21  ;;  %660 = vmatpush.msra.mxu1 %v607_v22  ;;  %v601_v34 = vld [vmem:[%s4506_s24 + $0x78] sm:$0xff]  ;;  %v912_v35 = vld [vmem:[%s4515_s15 + $0x70] sm:$0xff]  ;;  %v598_v37 = vld [vmem:[%s4506_s24 + $0x60] sm:$0xff] }
  0x89   : > { %1215 = vst [vmem:[%s4546_s23 + $0x18] sm:$0xff] %v4232_v3  ;;  %949 = vmatpush.msra.mxu2 %v918_v23  ;;  %972 = vmatpush.msra.mxu3 %v919_v24  ;;  %v913_v36 = vld [vmem:[%s4515_s15 + $0x78] sm:$0xff]  ;;  %v599_v38 = vld [vmem:[%s4506_s24 + $0x68] sm:$0xff]  ;;  %v910_v39 = vld [vmem:[%s4515_s15 + $0x60] sm:$0xff] }
  0x8a   : > { %1216 = vst [vmem:[%s4546_s23 + $0x20] sm:$0xff] %v4232_v3  ;;  %638 = vmatpush.msra.mxu0 %v604_v25  ;;  %661 = vmatpush.msra.mxu1 %v605_v26  ;;  %v911_v40 = vld [vmem:[%s4515_s15 + $0x68] sm:$0xff]  ;;  %v596_v41 = vld [vmem:[%s4506_s24 + $0x50] sm:$0xff]  ;;  %v597_v42 = vld [vmem:[%s4506_s24 + $0x58] sm:$0xff] }
  0x8b   : > { %1217 = vst [vmem:[%s4546_s23 + $0x28] sm:$0xff] %v4232_v3  ;;  %950 = vmatpush.msra.mxu2 %v916_v27  ;;  %973 = vmatpush.msra.mxu3 %v917_v28  ;;  %v908_v43 = vld [vmem:[%s4515_s15 + $0x50] sm:$0xff]  ;;  %v909_v44 = vld [vmem:[%s4515_s15 + $0x58] sm:$0xff]  ;;  %v594_v45 = vld [vmem:[%s4506_s24 + $0x40] sm:$0xff] }
  0x8c   : > { %1218 = vst [vmem:[%s4546_s23 + $0x30] sm:$0xff] %v4232_v3  ;;  %639 = vmatpush.msra.mxu0 %v602_v29  ;;  %662 = vmatpush.msra.mxu1 %v603_v30  ;;  %v595_v46 = vld [vmem:[%s4506_s24 + $0x48] sm:$0xff]  ;;  %v906_v47 = vld [vmem:[%s4515_s15 + $0x40] sm:$0xff]  ;;  %v592_v49 = vld [vmem:[%s4506_s24 + $0x30] sm:$0xff] }
  0x8d   : > { %1219 = vst [vmem:[%s4546_s23 + $0x38] sm:$0xff] %v4232_v3  ;;  %951 = vmatpush.msra.mxu2 %v914_v31  ;;  %974 = vmatpush.msra.mxu3 %v915_v32  ;;  %v907_v48 = vld [vmem:[%s4515_s15 + $0x48] sm:$0xff]  ;;  %v593_v50 = vld [vmem:[%s4506_s24 + $0x38] sm:$0xff]  ;;  %v904_v51 = vld [vmem:[%s4515_s15 + $0x30] sm:$0xff] }
  0x8e   : > { %640 = vmatpush.msra.mxu0 %v600_v33  ;;  %663 = vmatpush.msra.mxu1 %v601_v34  ;;  %v905_v52 = vld [vmem:[%s4515_s15 + $0x38] sm:$0xff]  ;;  %v590_v53 = vld [vmem:[%s4506_s24 + $0x20] sm:$0xff]  ;;  %v591_v54 = vld [vmem:[%s4506_s24 + $0x28] sm:$0xff]  ;;  %v4234_v34 = vmov 256.0  }
  0x8f   : > { %952 = vmatpush.msra.mxu2 %v912_v35  ;;  %975 = vmatpush.msra.mxu3 %v913_v36  ;;  %v902_v55 = vld [vmem:[%s4515_s15 + $0x20] sm:$0xff]  ;;  %v903_v56 = vld [vmem:[%s4515_s15 + $0x28] sm:$0xff]  ;;  %v588_v57 = vld [vmem:[%s4506_s24 + $0x10] sm:$0xff]  ;;  %3666 = vrcp.f32 %v4234_v34 }
  0x90   : > { %641 = vmatpush.msra.mxu0 %v598_v37  ;;  %664 = vmatpush.msra.mxu1 %v599_v38  ;;  %v589_v58 = vld [vmem:[%s4506_s24 + $0x18] sm:$0xff]  ;;  %v900_v59 = vld [vmem:[%s4515_s15 + $0x10] sm:$0xff]  ;;  %v586_v61 = vld [vmem:[%s4506_s24] sm:$0xff] }
  0x91   : > { %953 = vmatpush.msra.mxu2 %v910_v39  ;;  %976 = vmatpush.msra.mxu3 %v911_v40  ;;  %v901_v60 = vld [vmem:[%s4515_s15 + $0x18] sm:$0xff]  ;;  %v587_v62 = vld [vmem:[%s4506_s24 + $0x8] sm:$0xff]  ;;  %v898_v63 = vld [vmem:[%s4515_s15] sm:$0xff] }
  0x92   : > { %642 = vmatpush.msra.mxu0 %v596_v41  ;;  %665 = vmatpush.msra.mxu1 %v597_v42  ;;  %v899_v0 = vld [vmem:[%s4515_s15 + $0x8] sm:$0xff]  ;;  %v618_v1 = vld [vmem:[%s6499_s22] sm:$0xff] }
  0x93   : > { %954 = vmatpush.msra.mxu2 %v908_v43  ;;  %977 = vmatpush.msra.mxu3 %v909_v44  ;;  %v930_v2 = vld [vmem:[%s6501_s30] sm:$0xff]  ;;  %v619_v6 = vld [vmem:[%s6500_s12 + $0x8] sm:$0xff] }
  0x94   : > { %643 = vmatpush.msra.mxu0 %v594_v45  ;;  %666 = vmatpush.msra.mxu1 %v595_v46  ;;  %v620_v3 = vld [vmem:[%s6502_s13] sm:$0xff]  ;;  %v931_v7 = vld [vmem:[%s6501_s30 + $0x8] sm:$0xff] }
  0x95   : > { %955 = vmatpush.msra.mxu2 %v906_v47  ;;  %978 = vmatpush.msra.mxu3 %v907_v48  ;;  %v932_v4 = vld [vmem:[%s6503_s17] sm:$0xff]  ;;  %v621_v8 = vld [vmem:[%s6502_s13 + $0x8] sm:$0xff]  ;;  %v3667_v35 = vpop.eup %3666 }
  0x96   : > { %644 = vmatpush.msra.mxu0 %v592_v49  ;;  %667 = vmatpush.msra.mxu1 %v593_v50  ;;  %v933_v9 = vld [vmem:[%s6504_s16 + $0x8] sm:$0xff]  ;;  %v685_v36 = vmul.f32 256.0, %v3667_v35  ;;  %vm689_vm0 = vweird.f32 %v3667_v35 }
  0x97   : > { %956 = vmatpush.msra.mxu2 %v904_v51  ;;  %979 = vmatpush.msra.mxu3 %v905_v52 }
  0x98   : > { %645 = vmatpush.msra.mxu0 %v590_v53  ;;  %668 = vmatpush.msra.mxu1 %v591_v54  ;;  %v686_v37 = vsub.f32 1.0, %v685_v36 }
  0x99   : > { %957 = vmatpush.msra.mxu2 %v902_v55  ;;  %980 = vmatpush.msra.mxu3 %v903_v56 }
  0x9a   : > { %646 = vmatpush.msra.mxu0 %v588_v57  ;;  %669 = vmatpush.msra.mxu1 %v589_v58  ;;  %v687_v38 = vmul.f32 %v3667_v35, %v686_v37 }
  0x9b   : > { %958 = vmatpush.msra.mxu2 %v900_v59  ;;  %981 = vmatpush.msra.mxu3 %v901_v60 }
  0x9c   : > { %647 = vmatpush.msra.mxu0 %v586_v61  ;;  %670 = vmatpush.msra.mxu1 %v587_v62  ;;  %v688_v39 = vadd.f32 %v3667_v35, %v687_v38 }
  0x9d   : > { %959 = vmatpush.msra.mxu2 %v898_v63  ;;  %982 = vmatpush.msra.mxu3 %v899_v0 }
  0x9e   : > { %648 = vmatmul.f32.vlgmr.msra.gmra.mxu0 %v618_v1  ;;  %671 = vmatmul.f32.vlgmr.msra.gmra.mxu1 %v618_v1  ;;  %v4669_v40 = vsel %vm689_vm0, %v3667_v35, %v688_v39 }
  0x9f   : > { %960 = vmatmul.f32.vlgmr.msra.gmra.mxu2 %v930_v2  ;;  %983 = vmatmul.f32.vlgmr.msra.gmra.mxu3 %v930_v2 }
  0xa0   : > { %3665 = vset.pattern.permute.xlu1 %v4233_v5  ;;  %3664 = vset.pattern.permute.xlu0 %v4233_v5 }
  0xa1   : > { %624 = vperm.xlu1 %3665, %v620_v3   ;;  %936 = vperm.xlu0 %3664, %v932_v4  }
  0xa6   : > { %651 = vmatmul.f32.gmra.mxu0 %v619_v6  ;;  %674 = vmatmul.f32.gmra.mxu1 %v619_v6 }
  0xa7   : > { %963 = vmatmul.f32.gmra.mxu2 %v931_v7  ;;  %986 = vmatmul.f32.gmra.mxu3 %v931_v7 }
  0xa9   : > { %629 = vperm.xlu1 %3665, %v621_v8   ;;  %941 = vperm.xlu0 %3664, %v933_v9  }
 0x113   : > { %v625_v10 = vpop.permute.xlu1 %624  ;;  %v937_v15 = vpop.permute.xlu0 %936 }
 0x11b   : > { %v649_v11 = vpop.f32.mrf.mxu0  ;;  %v672_v13 = vpop.f32.mrf.mxu1 }
 0x11c   : > { %v650_v12 = vadd.f32 %v649_v11, %v625_v10  ;;  %v673_v14 = vadd.f32 %v672_v13, %v625_v10  ;;  %v630_v19 = vpop.permute.xlu1 %629  ;;  %v942_v28 = vpop.permute.xlu0 %941 }
 0x11e   : > { %v678_v16 = vadd.f32 %v673_v14, %v650_v12 }
 0x120   : > { %679 = vadd.xlane.f32.xlu0 %v678_v16 }
 0x122   : > { %v961_v17 = vpop.f32.mrf.mxu2  ;;  %v984_v18 = vpop.f32.mrf.mxu3 }
 0x123   : > { %v962_v20 = vadd.f32 %v961_v17, %v937_v15  ;;  %v985_v21 = vadd.f32 %v984_v18, %v937_v15  ;;  %v652_v22 = vpop.f32.mrf.mxu0  ;;  %v675_v24 = vpop.f32.mrf.mxu1 }
 0x124   : > { %v653_v23 = vadd.f32 %v652_v22, %v630_v19  ;;  %v676_v25 = vadd.f32 %v675_v24, %v630_v19 }
 0x125   : > { %v990_v26 = vadd.f32 %v985_v21, %v962_v20 }
 0x126   : > { %v681_v27 = vadd.f32 %v676_v25, %v653_v23 }
 0x127   : > { %991 = vadd.xlane.f32.xlu2 %v990_v26 }
 0x128   : > { %682 = vadd.xlane.f32.xlu1 %v681_v27 }
 0x12a   : > { %v964_v29 = vpop.f32.mrf.mxu2  ;;  %v987_v30 = vpop.f32.mrf.mxu3 }
 0x12b   : > { %v965_v31 = vadd.f32 %v964_v29, %v942_v28  ;;  %v988_v32 = vadd.f32 %v987_v30, %v942_v28 }
 0x12d   : > { %v993_v33 = vadd.f32 %v988_v32, %v965_v31 }
 0x12f   : > { %994 = vadd.xlane.f32.xlu2 %v993_v33 }
 0x193   : > { %v680_v41 = vpop.xlane.xlu0 %679 }
 0x194   : > { %v691_v42 = vmul.f32 %v4669_v40, %v680_v41 }
 0x196   : > { %v693_v43 = vsub.f32 %v650_v12, %v691_v42  ;;  %v694_v44 = vsub.f32 %v673_v14, %v691_v42 }
 0x198   : > { %v697_v45 = vmul.f32 %v693_v43, %v693_v43  ;;  %v698_v46 = vmul.f32 %v694_v44, %v694_v44 }
 0x19a   : > { %v992_v47 = vpop.xlane.xlu2 %991  ;;  %v701_v49 = vadd.f32 %v698_v46, %v697_v45 }
 0x19b   : > { %v996_v48 = vmul.f32 %v992_v47, %v4669_v40  ;;  %v683_v50 = vpop.xlane.xlu1 %682 }
 0x19c   : > { %702 = vadd.xlane.f32.xlu2 %v701_v49  ;;  %v692_v53 = vmul.f32 %v4669_v40, %v683_v50 }
 0x19d   : > { %v4673_v51 = vsub.f32 %v962_v20, %v996_v48  ;;  %v4675_v52 = vsub.f32 %v985_v21, %v996_v48 }
 0x19e   : > { %v4682_v56 = vsub.f32 %v653_v23, %v692_v53  ;;  %v4684_v57 = vsub.f32 %v676_v25, %v692_v53 }
 0x19f   : > { %v1002_v54 = vmul.f32 %v4673_v51, %v4673_v51  ;;  %v1003_v55 = vmul.f32 %v4675_v52, %v4675_v52 }
 0x1a0   : > { %v699_v61 = vmul.f32 %v4682_v56, %v4682_v56  ;;  %v700_v62 = vmul.f32 %v4684_v57, %v4684_v57 }
 0x1a1   : > { %v1006_v58 = vadd.f32 %v1003_v55, %v1002_v54 }
 0x1a2   : > { %v995_v59 = vpop.xlane.xlu2 %994  ;;  %v704_v1 = vadd.f32 %v700_v62, %v699_v61 }
 0x1a3   : > { %v997_v60 = vmul.f32 %v995_v59, %v4669_v40 }
 0x1a4   : > { %1007 = vadd.xlane.f32.xlu2 %v1006_v58 }
 0x1a5   : > { %v4691_v63 = vsub.f32 %v965_v31, %v997_v60  ;;  %v4693_v0 = vsub.f32 %v988_v32, %v997_v60 }
 0x1a7   : > { %v1004_v2 = vmul.f32 %v4691_v63, %v4691_v63  ;;  %v1005_v3 = vmul.f32 %v4693_v0, %v4693_v0 }
 0x1a9   : > { %v1009_v4 = vadd.f32 %v1005_v3, %v1004_v2 }
 0x1ac   : > { %705 = vadd.xlane.f32.xlu2 %v704_v1 }
 0x1b4   : > { %1010 = vadd.xlane.f32.xlu2 %v1009_v4 }
 0x20f   : > { %v703_v5 = vpop.xlane.xlu2 %702 }
 0x210   : > { %v707_v6 = vmul.f32 %v703_v5, %v4669_v40 }
 0x212   : > { %v709_v7 = vadd.f32 1e-05, %v707_v6 }
 0x214   : > { %3668 = vrsqrt.f32 %v709_v7  ;;  %vm717_vm2 = vweird.f32 %v709_v7 }
 0x217   : > { %v1008_v8 = vpop.xlane.xlu2 %1007 }
 0x218   : > { %v1012_v9 = vmul.f32 %v1008_v8, %v4669_v40 }
 0x21a   : > { %v3669_v10 = vpop.eup %3668  ;;  %v1014_v11 = vadd.f32 1e-05, %v1012_v9 }
 0x21b   : > { %v712_v12 = vmul.f32 %v3669_v10, %v709_v7  ;;  %vm718_vm1 = vweird.f32 %v3669_v10 }
 0x21c   : > { %3670 = vrsqrt.f32 %v1014_v11  ;;  %vm719_vm3 = vmor %vm717_vm2, %vm718_vm1  ;;  %vm1022_vm8 = vweird.f32 %v1014_v11 }
 0x21d   : > { %v713_v13 = vmul.f32 %v3669_v10, %v712_v12 }
 0x21f   : > { %v714_v14 = vmul.f32 0.5, %v713_v13  ;;  %v706_v15 = vpop.xlane.xlu2 %705 }
 0x220   : > { %v708_v16 = vmul.f32 %v706_v15, %v4669_v40 }
 0x221   : > { %v715_v17 = vsub.f32 1.5, %v714_v14 }
 0x222   : > { %v3671_v18 = vpop.eup %3670  ;;  %v710_v19 = vadd.f32 1e-05, %v708_v16 }
 0x223   : > { %v716_v20 = vmul.f32 %v3669_v10, %v715_v17  ;;  %v1017_v21 = vmul.f32 %v3671_v18, %v1014_v11  ;;  %vm1023_vm6 = vweird.f32 %v3671_v18 }
 0x224   : > { %3672 = vrsqrt.f32 %v710_v19  ;;  %vm1024_vm9 = vmor %vm1022_vm8, %vm1023_vm6  ;;  %vm727_vm10 = vweird.f32 %v710_v19 }
 0x225   : > { %v1018_v22 = vmul.f32 %v3671_v18, %v1017_v21  ;;  %v720_v23 = vsel %vm719_vm3, %v3669_v10, %v716_v20 }
 0x226   : > { %v731_v24 = vmul.f32 %v720_v23, %v693_v43  ;;  %v732_v25 = vmul.f32 %v720_v23, %v694_v44 }
 0x227   : > { %v1019_v26 = vmul.f32 0.5, %v1018_v22  ;;  %v1011_v27 = vpop.xlane.xlu2 %1010 }
 0x228   : > { %v1013_v28 = vmul.f32 %v1011_v27, %v4669_v40  ;;  %vm735_vm4 = vcmp.ge.f32.partialorder %v731_v24, 0.0  ;;  %vm736_vm5 = vcmp.ge.f32.partialorder %v732_v25, 0.0  ;;  %v739_v29 = vmul.f32 0.01, %v731_v24 }
 0x229   : > { %v740_v30 = vmul.f32 0.01, %v732_v25  ;;  %v1020_v36 = vsub.f32 1.5, %v1019_v26 }
 0x22a   : > { %v3673_v31 = vpop.eup %3672  ;;  %v1015_v32 = vadd.f32 1e-05, %v1013_v28  ;;  %v4703_v33 = vsel %vm735_vm4, %v731_v24, %v739_v29 }
 0x22b   : > { %v722_v34 = vmul.f32 %v3673_v31, %v710_v19  ;;  %v744_v35 = vsel %vm736_vm5, %v732_v25, %v740_v30  ;;  %v1021_v41 = vmul.f32 %v3671_v18, %v1020_v36  ;;  %vm728_vm7 = vweird.f32 %v3673_v31 }
 0x22c   : > { %3674 = vrsqrt.f32 %v1015_v32  ;;  %v747_v37 = vadd.f32 %v744_v35, %v4703_v33  ;;  %vm729_vm11 = vmor %vm727_vm10, %vm728_vm7  ;;  %vm1032_vm15 = vweird.f32 %v1015_v32 }
 0x22d   : > { %v723_v38 = vmul.f32 %v3673_v31, %v722_v34  ;;  %v1025_v46 = vsel %vm1024_vm9, %v3671_v18, %v1021_v41 }
 0x22e   : > { %748 = vadd.xlane.f32.xlu2 %v747_v37  ;;  %v1036_v54 = vmul.f32 %v1025_v46, %v4673_v51  ;;  %v1037_v55 = vmul.f32 %v1025_v46, %v4675_v52 }
 0x22f   : > { %v724_v39 = vmul.f32 0.5, %v723_v38 }
 0x230   : > { %v1045_v3 = vmul.f32 0.01, %v1037_v55  ;;  %vm1040_vm1 = vcmp.ge.f32.partialorder %v1036_v54, 0.0  ;;  %vm1041_vm2 = vcmp.ge.f32.partialorder %v1037_v55, 0.0 }
 0x231   : > { %v725_v42 = vsub.f32 1.5, %v724_v39 }
 0x232   : > { %v3675_v43 = vpop.eup %3674  ;;  %v1049_v52 = vsel %vm1041_vm2, %v1037_v55, %v1045_v3 }
 0x233   : > { %v726_v44 = vmul.f32 %v3673_v31, %v725_v42  ;;  %v1027_v45 = vmul.f32 %v3675_v43, %v1015_v32  ;;  %vm1033_vm14 = vweird.f32 %v3675_v43 }
 0x234   : > { %vm1034_vm0 = vmor %vm1032_vm15, %vm1033_vm14 }
 0x235   : > { %v1028_v47 = vmul.f32 %v3675_v43, %v1027_v45  ;;  %v730_v48 = vsel %vm729_vm11, %v3673_v31, %v726_v44 }
 0x236   : > { %v733_v49 = vmul.f32 %v730_v48, %v4682_v56  ;;  %v734_v50 = vmul.f32 %v730_v48, %v4684_v57  ;;  %v1044_v56 = vmul.f32 0.01, %v1036_v54 }
 0x237   : > { %v1029_v53 = vmul.f32 0.5, %v1028_v47 }
 0x238   : > { %vm737_vm12 = vcmp.ge.f32.partialorder %v733_v49, 0.0  ;;  %vm738_vm13 = vcmp.ge.f32.partialorder %v734_v50, 0.0  ;;  %v741_v58 = vmul.f32 0.01, %v733_v49  ;;  %v742_v59 = vmul.f32 0.01, %v734_v50 }
 0x239   : > { %v1030_v60 = vsub.f32 1.5, %v1029_v53  ;;  %v1048_v57 = vsel %vm1040_vm1, %v1036_v54, %v1044_v56  ;;  %vm865_vm1 = vcmask 130048  }
 0x23a   : > { %v745_v61 = vsel %vm737_vm12, %v733_v49, %v741_v58  ;;  %v746_v62 = vsel %vm738_vm13, %v734_v50, %v742_v59  ;;  %v1052_v6 = vadd.f32 %v1049_v52, %v1048_v57 }
 0x23b   : > { %v1031_v1 = vmul.f32 %v3675_v43, %v1030_v60  ;;  %v750_v2 = vadd.f32 %v746_v62, %v745_v61 }
 0x23d   : > { %751 = vadd.xlane.f32.xlu2 %v750_v2  ;;  %v1035_v51 = vsel %vm1034_vm0, %v3675_v43, %v1031_v1 }
 0x23e   : > { %v1038_v4 = vmul.f32 %v1035_v51, %v4691_v63  ;;  %v1039_v5 = vmul.f32 %v1035_v51, %v4693_v0 }
 0x240   : > { %v1046_v7 = vmul.f32 0.01, %v1038_v4  ;;  %v1047_v8 = vmul.f32 0.01, %v1039_v5  ;;  %vm1042_vm3 = vcmp.ge.f32.partialorder %v1038_v4, 0.0  ;;  %vm1043_vm4 = vcmp.ge.f32.partialorder %v1039_v5, 0.0 }
 0x242   : > { %v1050_v9 = vsel %vm1042_vm3, %v1038_v4, %v1046_v7  ;;  %v1051_v10 = vsel %vm1043_vm4, %v1039_v5, %v1047_v8 }
 0x243   : > { %v1055_v11 = vadd.f32 %v1051_v10, %v1050_v9 }
 0x245   : > { %1053 = vadd.xlane.f32.xlu2 %v1052_v6 }
 0x24d   : > { %1056 = vadd.xlane.f32.xlu2 %v1055_v11 }
 0x2a1   : > { %v749_v12 = vpop.xlane.xlu2 %748 }
 0x2a2   : > { %v753_v13 = vmul.f32 %v749_v12, %v4669_v40 }
 0x2a4   : > { %v4714_v15 = vsub.f32 %v4703_v33, %v753_v13  ;;  %v4716_v63 = vsub.f32 %v744_v35, %v753_v13 }
 0x2a6   : > { %v759_v18 = vmul.f32 %v4714_v15, %v4714_v15  ;;  %v760_v19 = vmul.f32 %v4716_v63, %v4716_v63 }
 0x2b0   : > { %v752_v14 = vpop.xlane.xlu2 %751 }
 0x2b1   : > { %v754_v0 = vmul.f32 %v752_v14, %v4669_v40 }
 0x2b3   : > { %v4719_v16 = vsub.f32 %v745_v61, %v754_v0  ;;  %v4721_v17 = vsub.f32 %v746_v62, %v754_v0 }
 0x2b5   : > { %v761_v20 = vmul.f32 %v4719_v16, %v4719_v16  ;;  %v762_v21 = vmul.f32 %v4721_v17, %v4721_v17 }
 0x2b7   : > { %v763_v22 = vadd.f32 %v761_v20, %v759_v18  ;;  %v770_v23 = vadd.f32 %v762_v21, %v760_v19 }
 0x2b8   : > { %v1054_v24 = vpop.xlane.xlu2 %1053 }
 0x2b9   : > { %v764_v25 = vrot.slane %v763_v22, 4  ;;  %v771_v26 = vrot.slane %v770_v23, 4  ;;  %v1058_v31 = vmul.f32 %v1054_v24, %v4669_v40 }
 0x2bb   : > { %v765_v27 = vadd.f32 %v764_v25, %v763_v22  ;;  %v772_v28 = vadd.f32 %v771_v26, %v770_v23  ;;  %v4732_v37 = vsub.f32 %v1048_v57, %v1058_v31  ;;  %v4735_v39 = vsub.f32 %v1049_v52, %v1058_v31 }
 0x2bd   : > { %v766_v29 = vrot.slane %v765_v27, 2  ;;  %v773_v30 = vrot.slane %v772_v28, 2  ;;  %v1064_v45 = vmul.f32 %v4732_v37, %v4732_v37  ;;  %v1065_v47 = vmul.f32 %v4735_v39, %v4735_v39 }
 0x2bf   : > { %v767_v32 = vadd.f32 %v766_v29, %v765_v27  ;;  %v774_v33 = vadd.f32 %v773_v30, %v772_v28 }
 0x2c0   : > { %v1057_v34 = vpop.xlane.xlu2 %1056 }
 0x2c1   : > { %v768_v35 = vrot.slane %v767_v32, 1  ;;  %v775_v36 = vrot.slane %v774_v33, 1  ;;  %v1059_v38 = vmul.f32 %v1057_v34, %v4669_v40 }
 0x2c3   : > { %v769_v41 = vadd.f32 %v768_v35, %v767_v32  ;;  %v776_v42 = vadd.f32 %v775_v36, %v774_v33  ;;  %v4737_v43 = vsub.f32 %v1050_v9, %v1059_v38  ;;  %v4739_v44 = vsub.f32 %v1051_v10, %v1059_v38 }
 0x2c5   : > { %3676 = vrsqrt.f32 %v769_v41  ;;  %v1066_v46 = vmul.f32 %v4737_v43, %v4737_v43  ;;  %v1067_v40 = vmul.f32 %v4739_v44, %v4739_v44  ;;  %vm783_vm7 = vweird.f32 %v769_v41 }
 0x2c6   : > { %3678 = vrsqrt.f32 %v776_v42  ;;  %vm793_vm9 = vweird.f32 %v776_v42 }
 0x2c7   : > { %v1068_v48 = vadd.f32 %v1066_v46, %v1064_v45  ;;  %v1075_v49 = vadd.f32 %v1067_v40, %v1065_v47 }
 0x2c9   : > { %v1069_v50 = vrot.slane %v1068_v48, 4  ;;  %v1076_v53 = vrot.slane %v1075_v49, 4 }
 0x2cb   : > { %v3677_v54 = vpop.eup %3676  ;;  %v1070_v55 = vadd.f32 %v1069_v50, %v1068_v48  ;;  %v1077_v60 = vadd.f32 %v1076_v53, %v1075_v49 }
 0x2cc   : > { %v3679_v58 = vpop.eup %3678  ;;  %v778_v59 = vmul.f32 %v3677_v54, %v769_v41  ;;  %vm784_vm5 = vweird.f32 %v3677_v54 }
 0x2cd   : > { %v788_v61 = vmul.f32 %v3679_v58, %v776_v42  ;;  %v1071_v62 = vrot.slane %v1070_v55, 2  ;;  %v1078_v2 = vrot.slane %v1077_v60, 2  ;;  %vm794_vm6 = vweird.f32 %v3679_v58  ;;  %vm785_vm8 = vmor %vm783_vm7, %vm784_vm5 }
 0x2ce   : > { %v779_v1 = vmul.f32 %v3677_v54, %v778_v59  ;;  %vm795_vm10 = vmor %vm793_vm9, %vm794_vm6 }
 0x2cf   : > { %v789_v56 = vmul.f32 %v3679_v58, %v788_v61  ;;  %v1072_v3 = vadd.f32 %v1071_v62, %v1070_v55  ;;  %v1079_v57 = vadd.f32 %v1078_v2, %v1077_v60 }
 0x2d0   : > { %v780_v51 = vmul.f32 0.5, %v779_v1 }
 0x2d1   : > { %v790_v52 = vmul.f32 0.5, %v789_v56  ;;  %v1073_v4 = vrot.slane %v1072_v3, 1  ;;  %v1080_v6 = vrot.slane %v1079_v57, 1 }
 0x2d2   : > { %v781_v5 = vsub.f32 1.5, %v780_v51 }
 0x2d3   : > { %v791_v7 = vsub.f32 1.5, %v790_v52  ;;  %v1074_v8 = vadd.f32 %v1073_v4, %v1072_v3  ;;  %v1081_v10 = vadd.f32 %v1080_v6, %v1079_v57 }
 0x2d4   : > { %v782_v9 = vmul.f32 %v3677_v54, %v781_v5 }
 0x2d5   : > { %v792_v11 = vmul.f32 %v3679_v58, %v791_v7  ;;  %3680 = vrsqrt.f32 %v1074_v8  ;;  %vm1088_vm13 = vweird.f32 %v1074_v8  ;;  %vm1098_vm14 = vweird.f32 %v1081_v10 }
 0x2d6   : > { %v786_v12 = vsel %vm785_vm8, %v3677_v54, %v782_v9  ;;  %3682 = vrsqrt.f32 %v1081_v10 }
 0x2d7   : > { %v796_v13 = vsel %vm795_vm10, %v3679_v58, %v792_v11  ;;  %v797_v14 = vmul.f32 %v786_v12, %v4714_v15  ;;  %v799_v23 = vmul.f32 %v786_v12, %v4719_v16 }
 0x2d8   : > { %v798_v0 = vmul.f32 %v796_v13, %v4716_v63  ;;  %v800_v25 = vmul.f32 %v796_v13, %v4721_v17 }
 0x2d9   : > { %801 = vxpose.xlu0.b32.start [1/2] (short) %v797_v14, 128 }
 0x2da   : > { %833 = vxpose.xlu1.b32.start [1/2] (short) %v798_v0, 128 }
 0x2db   : > { %v3681_v18 = vpop.eup %3680 }
 0x2dc   : > { %v3683_v19 = vpop.eup %3682  ;;  %v1083_v20 = vmul.f32 %v3681_v18, %v1074_v8  ;;  %vm1089_vm11 = vweird.f32 %v3681_v18 }
 0x2dd   : > { %v1093_v21 = vmul.f32 %v3683_v19, %v1081_v10  ;;  %vm1099_vm12 = vweird.f32 %v3683_v19  ;;  %vm1090_vm15 = vmor %vm1088_vm13, %vm1089_vm11 }
 0x2de   : > { %v1084_v22 = vmul.f32 %v3681_v18, %v1083_v20  ;;  %vm1100_vm0 = vmor %vm1098_vm14, %vm1099_vm12 }
 0x2df   : > { %v1094_v24 = vmul.f32 %v3683_v19, %v1093_v21 }
 0x2e0   : > { %v1085_v26 = vmul.f32 0.5, %v1084_v22 }
 0x2e1   : > { %v1095_v27 = vmul.f32 0.5, %v1094_v24  ;;  %802 = vxpose.xlu0.b32.end [2/2] (short) %v799_v23, 128 }
 0x2e2   : > { %834 = vxpose.xlu1.b32.end [2/2] (short) %v800_v25, 128  ;;  %v1086_v28 = vsub.f32 1.5, %v1085_v26 }
 0x2e3   : > { %v1096_v15 = vsub.f32 1.5, %v1095_v27 }
 0x2e4   : > { %v1087_v63 = vmul.f32 %v3681_v18, %v1086_v28 }
 0x2e5   : > { %v1097_v29 = vmul.f32 %v3683_v19, %v1096_v15 }
 0x2e6   : > { %v1091_v30 = vsel %vm1090_vm15, %v3681_v18, %v1087_v63 }
 0x2e7   : > { %v1101_v31 = vsel %vm1100_vm0, %v3683_v19, %v1097_v29  ;;  %v1102_v16 = vmul.f32 100.0, %v1091_v30 }
 0x2e8   : > { %v1103_v32 = vmul.f32 100.0, %v1101_v31 }
 0x2e9   : > { %v1104_v17 = vmul.f32 %v1102_v16, %v4732_v37  ;;  %v1106_v35 = vmul.f32 %v1102_v16, %v4737_v43 }
 0x2ea   : > { %v1107_v33 = vmul.f32 %v1103_v32, %v4739_v44  ;;  %v1105_v34 = vmul.f32 %v1103_v32, %v4735_v39 }
 0x2eb   : > { %1108 = vxpose.xlu2.b32.start [1/2] (short) %v1104_v17, 128 }
 0x2f3   : > { %1109 = vxpose.xlu2.b32.end [2/2] (short) %v1106_v35, 128 }
 0x359   : > { %1140 = vxpose.xlu0.b32.start [1/2] (short) %v1105_v34, 128 }
 0x361   : > { %1141 = vxpose.xlu0.b32.end [2/2] (short) %v1107_v33, 128 }
 0x37d   : > { %v817_v36 = vpop.trf.xlu0 }
 0x37e   : > { %866 = vst.msk [vmem:[#allocation2] sm:$0xff] %vm865_vm1, %v817_v36  ;;  %v849_v48 = vpop.trf.xlu1 }
 0x37f   : > { %882 = vst.msk [vmem:[#allocation2 + $0x80] sm:$0xff] %vm865_vm1, %v849_v48 }
 0x384   : > { %v1124_v50 = vpop.trf.xlu2 }
 0x385   : > { %v818_v38 = vpop.trf.xlu0  ;;  %1172 = vst.msk [vmem:[#allocation3] sm:$0xff] %vm865_vm1, %v1124_v50 }
 0x386   : > { %867 = vst.msk [vmem:[#allocation2 + $0x8] sm:$0xff] %vm865_vm1, %v818_v38  ;;  %v850_v53 = vpop.trf.xlu1 }
 0x387   : > { %883 = vst.msk [vmem:[#allocation2 + $0x88] sm:$0xff] %vm865_vm1, %v850_v53 }
 0x38c   : > { %v1125_v55 = vpop.trf.xlu2 }
 0x38d   : > { %v819_v41 = vpop.trf.xlu0  ;;  %1173 = vst.msk [vmem:[#allocation3 + $0x8] sm:$0xff] %vm865_vm1, %v1125_v55 }
 0x38e   : > { %868 = vst.msk [vmem:[#allocation2 + $0x10] sm:$0xff] %vm865_vm1, %v819_v41  ;;  %v851_v58 = vpop.trf.xlu1 }
 0x38f   : > { %884 = vst.msk [vmem:[#allocation2 + $0x90] sm:$0xff] %vm865_vm1, %v851_v58 }
 0x394   : > { %v1126_v60 = vpop.trf.xlu2 }
 0x395   : > { %v820_v37 = vpop.trf.xlu0  ;;  %1174 = vst.msk [vmem:[#allocation3 + $0x10] sm:$0xff] %vm865_vm1, %v1126_v60 }
 0x396   : > { %869 = vst.msk [vmem:[#allocation2 + $0x18] sm:$0xff] %vm865_vm1, %v820_v37  ;;  %v852_v61 = vpop.trf.xlu1 }
 0x397   : > { %885 = vst.msk [vmem:[#allocation2 + $0x98] sm:$0xff] %vm865_vm1, %v852_v61 }
 0x39c   : > { %v1127_v1 = vpop.trf.xlu2 }
 0x39d   : > { %v821_v39 = vpop.trf.xlu0  ;;  %1175 = vst.msk [vmem:[#allocation3 + $0x18] sm:$0xff] %vm865_vm1, %v1127_v1 }
 0x39e   : > { %870 = vst.msk [vmem:[#allocation2 + $0x20] sm:$0xff] %vm865_vm1, %v821_v39  ;;  %v853_v2 = vpop.trf.xlu1 }
 0x39f   : > { %886 = vst.msk [vmem:[#allocation2 + $0xa0] sm:$0xff] %vm865_vm1, %v853_v2 }
 0x3a4   : > { %v1128_v3 = vpop.trf.xlu2 }
 0x3a5   : > { %v822_v42 = vpop.trf.xlu0  ;;  %1176 = vst.msk [vmem:[#allocation3 + $0x20] sm:$0xff] %vm865_vm1, %v1128_v3 }
 0x3a6   : > { %871 = vst.msk [vmem:[#allocation2 + $0x28] sm:$0xff] %vm865_vm1, %v822_v42  ;;  %v854_v51 = vpop.trf.xlu1 }
 0x3a7   : > { %887 = vst.msk [vmem:[#allocation2 + $0xa8] sm:$0xff] %vm865_vm1, %v854_v51 }
 0x3ac   : > { %v1129_v52 = vpop.trf.xlu2 }
 0x3ad   : > { %v823_v43 = vpop.trf.xlu0  ;;  %1177 = vst.msk [vmem:[#allocation3 + $0x28] sm:$0xff] %vm865_vm1, %v1129_v52 }
 0x3ae   : > { %872 = vst.msk [vmem:[#allocation2 + $0x30] sm:$0xff] %vm865_vm1, %v823_v43  ;;  %v855_v4 = vpop.trf.xlu1 }
 0x3af   : > { %888 = vst.msk [vmem:[#allocation2 + $0xb0] sm:$0xff] %vm865_vm1, %v855_v4 }
 0x3b4   : > { %v1130_v6 = vpop.trf.xlu2 }
 0x3b5   : > { %v824_v44 = vpop.trf.xlu0  ;;  %1178 = vst.msk [vmem:[#allocation3 + $0x30] sm:$0xff] %vm865_vm1, %v1130_v6 }
 0x3b6   : > { %873 = vst.msk [vmem:[#allocation2 + $0x38] sm:$0xff] %vm865_vm1, %v824_v44  ;;  %v856_v7 = vpop.trf.xlu1 }
 0x3b7   : > { %889 = vst.msk [vmem:[#allocation2 + $0xb8] sm:$0xff] %vm865_vm1, %v856_v7 }
 0x3bc   : > { %v1131_v9 = vpop.trf.xlu2 }
 0x3bd   : > { %v825_v45 = vpop.trf.xlu0  ;;  %1179 = vst.msk [vmem:[#allocation3 + $0x38] sm:$0xff] %vm865_vm1, %v1131_v9 }
 0x3be   : > { %874 = vst.msk [vmem:[#allocation2 + $0x40] sm:$0xff] %vm865_vm1, %v825_v45  ;;  %v857_v10 = vpop.trf.xlu1 }
 0x3bf   : > { %890 = vst.msk [vmem:[#allocation2 + $0xc0] sm:$0xff] %vm865_vm1, %v857_v10 }
 0x3c4   : > { %v1132_v12 = vpop.trf.xlu2 }
 0x3c5   : > { %v826_v46 = vpop.trf.xlu0  ;;  %1180 = vst.msk [vmem:[#allocation3 + $0x40] sm:$0xff] %vm865_vm1, %v1132_v12 }
 0x3c6   : > { %875 = vst.msk [vmem:[#allocation2 + $0x48] sm:$0xff] %vm865_vm1, %v826_v46  ;;  %v858_v13 = vpop.trf.xlu1 }
 0x3c7   : > { %891 = vst.msk [vmem:[#allocation2 + $0xc8] sm:$0xff] %vm865_vm1, %v858_v13 }
 0x3cc   : > { %v1133_v0 = vpop.trf.xlu2 }
 0x3cd   : > { %v827_v47 = vpop.trf.xlu0  ;;  %1181 = vst.msk [vmem:[#allocation3 + $0x48] sm:$0xff] %vm865_vm1, %v1133_v0 }
 0x3ce   : > { %876 = vst.msk [vmem:[#allocation2 + $0x50] sm:$0xff] %vm865_vm1, %v827_v47  ;;  %v859_v18 = vpop.trf.xlu1 }
 0x3cf   : > { %892 = vst.msk [vmem:[#allocation2 + $0xd0] sm:$0xff] %vm865_vm1, %v859_v18 }
 0x3d4   : > { %v1134_v20 = vpop.trf.xlu2 }
 0x3d5   : > { %v828_v40 = vpop.trf.xlu0  ;;  %1182 = vst.msk [vmem:[#allocation3 + $0x50] sm:$0xff] %vm865_vm1, %v1134_v20 }
 0x3d6   : > { %877 = vst.msk [vmem:[#allocation2 + $0x58] sm:$0xff] %vm865_vm1, %v828_v40  ;;  %v860_v21 = vpop.trf.xlu1 }
 0x3d7   : > { %893 = vst.msk [vmem:[#allocation2 + $0xd8] sm:$0xff] %vm865_vm1, %v860_v21 }
 0x3dc   : > { %v1135_v23 = vpop.trf.xlu2 }
 0x3dd   : > { %v829_v49 = vpop.trf.xlu0  ;;  %1183 = vst.msk [vmem:[#allocation3 + $0x58] sm:$0xff] %vm865_vm1, %v1135_v23 }
 0x3de   : > { %878 = vst.msk [vmem:[#allocation2 + $0x60] sm:$0xff] %vm865_vm1, %v829_v49  ;;  %v861_v24 = vpop.trf.xlu1 }
 0x3df   : > { %894 = vst.msk [vmem:[#allocation2 + $0xe0] sm:$0xff] %vm865_vm1, %v861_v24 }
 0x3e4   : > { %v1136_v26 = vpop.trf.xlu2 }
 0x3e5   : > { %v830_v54 = vpop.trf.xlu0  ;;  %1184 = vst.msk [vmem:[#allocation3 + $0x60] sm:$0xff] %vm865_vm1, %v1136_v26 }
 0x3e6   : > { %879 = vst.msk [vmem:[#allocation2 + $0x68] sm:$0xff] %vm865_vm1, %v830_v54  ;;  %v862_v27 = vpop.trf.xlu1 }
 0x3e7   : > { %895 = vst.msk [vmem:[#allocation2 + $0xe8] sm:$0xff] %vm865_vm1, %v862_v27 }
 0x3ec   : > { %v1137_v15 = vpop.trf.xlu2 }
 0x3ed   : > { %v831_v59 = vpop.trf.xlu0  ;;  %1185 = vst.msk [vmem:[#allocation3 + $0x68] sm:$0xff] %vm865_vm1, %v1137_v15 }
 0x3ee   : > { %880 = vst.msk [vmem:[#allocation2 + $0x70] sm:$0xff] %vm865_vm1, %v831_v59  ;;  %v863_v63 = vpop.trf.xlu1 }
 0x3ef   : > { %896 = vst.msk [vmem:[#allocation2 + $0xf0] sm:$0xff] %vm865_vm1, %v863_v63 }
 0x3f4   : > { %v1138_v30 = vpop.trf.xlu2 }
 0x3f5   : > { %v832_v62 = vpop.trf.xlu0  ;;  %1186 = vst.msk [vmem:[#allocation3 + $0x70] sm:$0xff] %vm865_vm1, %v1138_v30 }
 0x3f6   : > { %881 = vst.msk [vmem:[#allocation2 + $0x78] sm:$0xff] %vm865_vm1, %v832_v62  ;;  %v864_v31 = vpop.trf.xlu1 }
 0x3f7   : > { %897 = vst.msk [vmem:[#allocation2 + $0xf8] sm:$0xff] %vm865_vm1, %v864_v31 }
 0x3fc   : > { %v1139_v32 = vpop.trf.xlu2 }
 0x3fd   : > { %v1156_v56 = vpop.trf.xlu0  ;;  %1187 = vst.msk [vmem:[#allocation3 + $0x78] sm:$0xff] %vm865_vm1, %v1139_v32 }
 0x3fe   : > { %1188 = vst.msk [vmem:[#allocation3 + $0x80] sm:$0xff] %vm865_vm1, %v1156_v56 }
 0x405   : > { %v1157_v57 = vpop.trf.xlu0 }
 0x406   : > { %1189 = vst.msk [vmem:[#allocation3 + $0x88] sm:$0xff] %vm865_vm1, %v1157_v57 }
 0x40d   : > { %v1158_v5 = vpop.trf.xlu0 }
 0x40e   : > { %1190 = vst.msk [vmem:[#allocation3 + $0x90] sm:$0xff] %vm865_vm1, %v1158_v5 }
 0x415   : > { %v1159_v8 = vpop.trf.xlu0 }
 0x416   : > { %1191 = vst.msk [vmem:[#allocation3 + $0x98] sm:$0xff] %vm865_vm1, %v1159_v8 }
 0x41d   : > { %v1160_v11 = vpop.trf.xlu0 }
 0x41e   : > { %1192 = vst.msk [vmem:[#allocation3 + $0xa0] sm:$0xff] %vm865_vm1, %v1160_v11 }
 0x425   : > { %v1161_v14 = vpop.trf.xlu0 }
 0x426   : > { %1193 = vst.msk [vmem:[#allocation3 + $0xa8] sm:$0xff] %vm865_vm1, %v1161_v14 }
 0x42d   : > { %v1162_v19 = vpop.trf.xlu0 }
 0x42e   : > { %1194 = vst.msk [vmem:[#allocation3 + $0xb0] sm:$0xff] %vm865_vm1, %v1162_v19 }
 0x435   : > { %v1163_v22 = vpop.trf.xlu0 }
 0x436   : > { %1195 = vst.msk [vmem:[#allocation3 + $0xb8] sm:$0xff] %vm865_vm1, %v1163_v22 }
 0x43d   : > { %v1164_v25 = vpop.trf.xlu0 }
 0x43e   : > { %1196 = vst.msk [vmem:[#allocation3 + $0xc0] sm:$0xff] %vm865_vm1, %v1164_v25 }
 0x445   : > { %v1165_v28 = vpop.trf.xlu0 }
 0x446   : > { %1197 = vst.msk [vmem:[#allocation3 + $0xc8] sm:$0xff] %vm865_vm1, %v1165_v28 }
 0x44d   : > { %v1166_v29 = vpop.trf.xlu0 }
 0x44e   : > { %1198 = vst.msk [vmem:[#allocation3 + $0xd0] sm:$0xff] %vm865_vm1, %v1166_v29 }
 0x455   : > { %v1167_v16 = vpop.trf.xlu0 }
 0x456   : > { %1199 = vst.msk [vmem:[#allocation3 + $0xd8] sm:$0xff] %vm865_vm1, %v1167_v16 }
 0x45d   : > { %v1168_v17 = vpop.trf.xlu0 }
 0x45e   : > { %1200 = vst.msk [vmem:[#allocation3 + $0xe0] sm:$0xff] %vm865_vm1, %v1168_v17 }
 0x465   : > { %v1169_v33 = vpop.trf.xlu0 }
 0x466   : > { %1201 = vst.msk [vmem:[#allocation3 + $0xe8] sm:$0xff] %vm865_vm1, %v1169_v33 }
 0x46d   : > { %v1170_v34 = vpop.trf.xlu0 }
 0x46e   : > { %1202 = vst.msk [vmem:[#allocation3 + $0xf0] sm:$0xff] %vm865_vm1, %v1170_v34 }
 0x475   : > { %v1171_v35 = vpop.trf.xlu0 }
 0x476   : > { %1203 = vst.msk [vmem:[#allocation3 + $0xf8] sm:$0xff] %vm865_vm1, %v1171_v35 }
 0x477 PF: > { %v1236_v36 = vld [vmem:[#allocation2 + $0x78] sm:$0xff]  ;;  %vm1319_vm2 = vcmask 130048   ;;  %v1235_v41 = vld [vmem:[#allocation2 + $0x70] sm:$0xff]  ;;  %v1234_v39 = vld [vmem:[#allocation2 + $0x68] sm:$0xff]  ;;  %s6505_s29 = sld [smem:[#allocation30_spill]]  ;;  %s3047_s15 = sshll.u32 %s4542_s5, 4  ;;  %s3048_s15 = int_to_ptr.vmem [resolvable:$true] %s3047_s15 }
 0x478   : > { %v1252_v38 = vld [vmem:[#allocation2 + $0xf8] sm:$0xff]  ;;  %3371 = vmatpush.xpose.msk.msra.mxu0 %vm1319_vm2, %v1236_v36  ;;  %v1251_v37 = vld [vmem:[#allocation2 + $0xf0] sm:$0xff]  ;;  %v1250_v42 = vld [vmem:[#allocation2 + $0xe8] sm:$0xff]  ;;  %s6584_s18 = sld [smem:[#allocation31_spill]]  ;;  %s6588_s13 = sand.u32 1, %s4353_s28  }
 0x479   : > { %3403 = vmatpush.xpose.msk.msra.mxu1 %vm1319_vm2, %v1252_v38  ;;  %v1233_v43 = vld [vmem:[#allocation2 + $0x60] sm:$0xff]  ;;  %v1232_v45 = vld [vmem:[#allocation2 + $0x58] sm:$0xff]  ;;  %v1231_v47 = vld [vmem:[#allocation2 + $0x50] sm:$0xff]  ;;  %s6587_s3 = sld [smem:[#allocation52_spill]]  ;;  %s6278_s16 = scalar_lea.sflag [#allocation14], %s6588_s13 }
 0x47a   : > { %v1249_v44 = vld [vmem:[#allocation2 + $0xe0] sm:$0xff]  ;;  %v1248_v46 = vld [vmem:[#allocation2 + $0xd8] sm:$0xff]  ;;  %v1247_v40 = vld [vmem:[#allocation2 + $0xd0] sm:$0xff] }
 0x47b   : > { %v1230_v48 = vld [vmem:[#allocation2 + $0x48] sm:$0xff]  ;;  %v1229_v50 = vld [vmem:[#allocation2 + $0x40] sm:$0xff]  ;;  %v1228_v54 = vld [vmem:[#allocation2 + $0x38] sm:$0xff] }
 0x47c   : > { %3372 = vmatpush.xpose.msk.msra.mxu0 %vm1319_vm2, %v1235_v41  ;;  %v1246_v49 = vld [vmem:[#allocation2 + $0xc8] sm:$0xff]  ;;  %v1245_v53 = vld [vmem:[#allocation2 + $0xc0] sm:$0xff]  ;;  %v1244_v55 = vld [vmem:[#allocation2 + $0xb8] sm:$0xff] }
 0x47d   : > { %3404 = vmatpush.xpose.msk.msra.mxu1 %vm1319_vm2, %v1251_v37  ;;  %v1227_v58 = vld [vmem:[#allocation2 + $0x30] sm:$0xff]  ;;  %v1226_v60 = vld [vmem:[#allocation2 + $0x28] sm:$0xff]  ;;  %v1225_v62 = vld [vmem:[#allocation2 + $0x20] sm:$0xff]  ;;  %s3370_s17 = sshll.u32 %s6505_s29, 7  ;;  %s3519_s14 = sshll.u32 %s6505_s29, 5 }
 0x47e   : > { %v1243_v59 = vld [vmem:[#allocation2 + $0xb0] sm:$0xff]  ;;  %v1242_v61 = vld [vmem:[#allocation2 + $0xa8] sm:$0xff]  ;;  %v1241_v1 = vld [vmem:[#allocation2 + $0xa0] sm:$0xff]  ;;  %s4856_s7 = scalar_lea.vmem [#allocation3], %s3370_s17  ;;  %s6266_s20 = sshll.u32 %s6584_s18, 6 }
 0x47f   : > { %v1224_v2 = vld [vmem:[#allocation2 + $0x18] sm:$0xff]  ;;  %v1223_v3 = vld [vmem:[#allocation2 + $0x10] sm:$0xff]  ;;  %v1222_v57 = vld [vmem:[#allocation2 + $0x8] sm:$0xff]  ;;  %s3024_s24 = sadd.s32 %s3519_s14, %s6266_s20 }
 0x480   : > { %3373 = vmatpush.xpose.msk.msra.mxu0 %vm1319_vm2, %v1234_v39  ;;  %v1240_v56 = vld [vmem:[#allocation2 + $0x98] sm:$0xff]  ;;  %v1239_v51 = vld [vmem:[#allocation2 + $0x90] sm:$0xff]  ;;  %v1238_v52 = vld [vmem:[#allocation2 + $0x88] sm:$0xff]  ;;  %s3506_s6 = sshll.u32 %s3024_s24, 3 }
 0x481   : > { %3405 = vmatpush.xpose.msk.msra.mxu1 %vm1319_vm2, %v1250_v42  ;;  %v1221_v4 = vld [vmem:[#allocation2] sm:$0xff]  ;;  %v1304_v7 = vld [vmem:[%s4856_s7 + $0x8] sm:$0xff]  ;;  %v1305_v8 = vld [vmem:[%s4856_s7 + $0x10] sm:$0xff]  ;;  %s3026_s12 = scalar_lea.hbm %s6587_s3, %s3506_s6 }
 0x482   : > { %v1237_v5 = vld [vmem:[#allocation2 + $0x80] sm:$0xff]  ;;  %v1306_v9 = vld [vmem:[%s4856_s7 + $0x18] sm:$0xff]  ;;  %v1308_v11 = vld [vmem:[%s4856_s7 + $0x28] sm:$0xff] }
 0x483   : > { %v1303_v6 = vld [vmem:[%s4856_s7] sm:$0xff]  ;;  %v1309_v12 = vld [vmem:[%s4856_s7 + $0x30] sm:$0xff]  ;;  %v1310_v13 = vld [vmem:[%s4856_s7 + $0x38] sm:$0xff] }
 0x484   : > { %3374 = vmatpush.xpose.msk.msra.mxu0 %vm1319_vm2, %v1233_v43  ;;  %v1307_v10 = vld [vmem:[%s4856_s7 + $0x20] sm:$0xff]  ;;  %v1312_v0 = vld [vmem:[%s4856_s7 + $0x48] sm:$0xff]  ;;  %v1313_v18 = vld [vmem:[%s4856_s7 + $0x50] sm:$0xff] }
 0x485   : > { %3406 = vmatpush.xpose.msk.msra.mxu1 %vm1319_vm2, %v1249_v44  ;;  %v1311_v14 = vld [vmem:[%s4856_s7 + $0x40] sm:$0xff]  ;;  %v1314_v19 = vld [vmem:[%s4856_s7 + $0x58] sm:$0xff]  ;;  %v1316_v21 = vld [vmem:[%s4856_s7 + $0x68] sm:$0xff] }
 0x486   : > { %v1315_v20 = vld [vmem:[%s4856_s7 + $0x60] sm:$0xff]  ;;  %v1317_v22 = vld [vmem:[%s4856_s7 + $0x70] sm:$0xff]  ;;  %v1318_v23 = vld [vmem:[%s4856_s7 + $0x78] sm:$0xff] }
 0x488   : > { %3375 = vmatpush.xpose.msk.msra.mxu0 %vm1319_vm2, %v1232_v45 }
 0x489   : > { %3407 = vmatpush.xpose.msk.msra.mxu1 %vm1319_vm2, %v1248_v46 }
 0x48c   : > { %3376 = vmatpush.xpose.msk.msra.mxu0 %vm1319_vm2, %v1231_v47 }
 0x48d   : > { %3408 = vmatpush.xpose.msk.msra.mxu1 %vm1319_vm2, %v1247_v40 }
 0x490   : > { %3377 = vmatpush.xpose.msk.msra.mxu0 %vm1319_vm2, %v1230_v48 }
 0x491   : > { %3409 = vmatpush.xpose.msk.msra.mxu1 %vm1319_vm2, %v1246_v49 }
 0x494   : > { %3378 = vmatpush.xpose.msk.msra.mxu0 %vm1319_vm2, %v1229_v50 }
 0x495   : > { %3410 = vmatpush.xpose.msk.msra.mxu1 %vm1319_vm2, %v1245_v53 }
 0x498   : > { %3379 = vmatpush.xpose.msk.msra.mxu0 %vm1319_vm2, %v1228_v54 }
 0x499   : > { %3411 = vmatpush.xpose.msk.msra.mxu1 %vm1319_vm2, %v1244_v55 }
 0x49c   : > { %3380 = vmatpush.xpose.msk.msra.mxu0 %vm1319_vm2, %v1227_v58 }
 0x49d   : > { %3412 = vmatpush.xpose.msk.msra.mxu1 %vm1319_vm2, %v1243_v59 }
 0x4a0   : > { %3381 = vmatpush.xpose.msk.msra.mxu0 %vm1319_vm2, %v1226_v60 }
 0x4a1   : > { %3413 = vmatpush.xpose.msk.msra.mxu1 %vm1319_vm2, %v1242_v61 }
 0x4a4   : > { %3382 = vmatpush.xpose.msk.msra.mxu0 %vm1319_vm2, %v1225_v62 }
 0x4a5   : > { %3414 = vmatpush.xpose.msk.msra.mxu1 %vm1319_vm2, %v1241_v1 }
 0x4a8   : > { %3383 = vmatpush.xpose.msk.msra.mxu0 %vm1319_vm2, %v1224_v2 }
 0x4a9   : > { %3415 = vmatpush.xpose.msk.msra.mxu1 %vm1319_vm2, %v1240_v56 }
 0x4ac   : > { %3384 = vmatpush.xpose.msk.msra.mxu0 %vm1319_vm2, %v1223_v3 }
 0x4ad   : > { %3416 = vmatpush.xpose.msk.msra.mxu1 %vm1319_vm2, %v1239_v51 }
 0x4b0   : > { %3385 = vmatpush.xpose.msk.msra.mxu0 %vm1319_vm2, %v1222_v57 }
 0x4b1   : > { %3417 = vmatpush.xpose.msk.msra.mxu1 %vm1319_vm2, %v1238_v52 }
 0x4b4   : > { %3386 = vmatpush.xpose.msk.msra.mxu0 %vm1319_vm2, %v1221_v4 }
 0x4b5   : > { %3418 = vmatpush.xpose.msk.msra.mxu1 %vm1319_vm2, %v1237_v5 }
 0x4b7   : > { %3387 = vmatmul.msk.f32.vlgmr.msra.gmra.mxu0 %vm1319_vm2, %v1303_v6 }
 0x4b8   : > { %3419 = vmatmul.msk.f32.vlgmr.msra.gmra.mxu1 %vm1319_vm2, %v1303_v6 }
 0x4bf   : > { %3388 = vmatmul.msk.f32.gmra.mxu0 %vm1319_vm2, %v1304_v7 }
 0x4c0   : > { %3420 = vmatmul.msk.f32.gmra.mxu1 %vm1319_vm2, %v1304_v7 }
 0x4c7   : > { %3389 = vmatmul.msk.f32.gmra.mxu0 %vm1319_vm2, %v1305_v8 }
 0x4c8   : > { %3421 = vmatmul.msk.f32.gmra.mxu1 %vm1319_vm2, %v1305_v8 }
 0x4cf   : > { %3390 = vmatmul.msk.f32.gmra.mxu0 %vm1319_vm2, %v1306_v9 }
 0x4d0   : > { %3422 = vmatmul.msk.f32.gmra.mxu1 %vm1319_vm2, %v1306_v9 }
 0x4d7   : > { %3391 = vmatmul.msk.f32.gmra.mxu0 %vm1319_vm2, %v1307_v10 }
 0x4d8   : > { %3423 = vmatmul.msk.f32.gmra.mxu1 %vm1319_vm2, %v1307_v10 }
 0x4df   : > { %3392 = vmatmul.msk.f32.gmra.mxu0 %vm1319_vm2, %v1308_v11 }
 0x4e0   : > { %3424 = vmatmul.msk.f32.gmra.mxu1 %vm1319_vm2, %v1308_v11 }
 0x4e7   : > { %3393 = vmatmul.msk.f32.gmra.mxu0 %vm1319_vm2, %v1309_v12 }
 0x4e8   : > { %3425 = vmatmul.msk.f32.gmra.mxu1 %vm1319_vm2, %v1309_v12 }
 0x4ef   : > { %3394 = vmatmul.msk.f32.gmra.mxu0 %vm1319_vm2, %v1310_v13 }
 0x4f0   : > { %3426 = vmatmul.msk.f32.gmra.mxu1 %vm1319_vm2, %v1310_v13 }
 0x4f7   : > { %3395 = vmatmul.msk.f32.gmra.mxu0 %vm1319_vm2, %v1311_v14 }
 0x4f8   : > { %3427 = vmatmul.msk.f32.gmra.mxu1 %vm1319_vm2, %v1311_v14 }
 0x4ff   : > { %3396 = vmatmul.msk.f32.gmra.mxu0 %vm1319_vm2, %v1312_v0 }
 0x500   : > { %3428 = vmatmul.msk.f32.gmra.mxu1 %vm1319_vm2, %v1312_v0 }
 0x507   : > { %3397 = vmatmul.msk.f32.gmra.mxu0 %vm1319_vm2, %v1313_v18 }
 0x508   : > { %3429 = vmatmul.msk.f32.gmra.mxu1 %vm1319_vm2, %v1313_v18 }
 0x50f   : > { %3398 = vmatmul.msk.f32.gmra.mxu0 %vm1319_vm2, %v1314_v19 }
 0x510   : > { %3430 = vmatmul.msk.f32.gmra.mxu1 %vm1319_vm2, %v1314_v19 }
 0x517   : > { %3399 = vmatmul.msk.f32.gmra.mxu0 %vm1319_vm2, %v1315_v20 }
 0x518   : > { %3431 = vmatmul.msk.f32.gmra.mxu1 %vm1319_vm2, %v1315_v20 }
 0x51f   : > { %3400 = vmatmul.msk.f32.gmra.mxu0 %vm1319_vm2, %v1316_v21 }
 0x520   : > { %3432 = vmatmul.msk.f32.gmra.mxu1 %vm1319_vm2, %v1316_v21 }
 0x527   : > { %3401 = vmatmul.msk.f32.gmra.mxu0 %vm1319_vm2, %v1317_v22 }
 0x528   : > { %3433 = vmatmul.msk.f32.gmra.mxu1 %vm1319_vm2, %v1317_v22 }
 0x52f   : > { %3402 = vmatmul.msk.f32.gmra.mxu0 %vm1319_vm2, %v1318_v23 }
 0x530   : > { %3434 = vmatmul.msk.f32.gmra.mxu1 %vm1319_vm2, %v1318_v23 }
 0x534   : > { %v4906_v24 = vpop.f32.mrf.mxu0 }
 0x535   : > { %v4908_v25 = vpop.f32.mrf.mxu1 }
 0x536   : > { %v1594_v60 = vmax.f32 %v4906_v24, %v4908_v25 }
 0x53c   : > { %v4910_v26 = vpop.f32.mrf.mxu0 }
 0x53d   : > { %v4912_v27 = vpop.f32.mrf.mxu1 }
 0x53e   : > { %v1597_v5 = vmax.f32 %v4910_v26, %v4912_v27 }
 0x544   : > { %v4914_v28 = vpop.f32.mrf.mxu0 }
 0x545   : > { %v4916_v15 = vpop.f32.mrf.mxu1 }
 0x546   : > { %v1600_v4 = vmax.f32 %v4914_v28, %v4916_v15 }
 0x54c   : > { %v4918_v63 = vpop.f32.mrf.mxu0 }
 0x54d   : > { %v4920_v29 = vpop.f32.mrf.mxu1 }
 0x54e   : > { %v1603_v51 = vmax.f32 %v4918_v63, %v4920_v29 }
 0x554   : > { %v4922_v30 = vpop.f32.mrf.mxu0 }
 0x555   : > { %v4924_v31 = vpop.f32.mrf.mxu1 }
 0x556   : > { %v1606_v56 = vmax.f32 %v4922_v30, %v4924_v31 }
 0x55c   : > { %v4926_v16 = vpop.f32.mrf.mxu0 }
 0x55d   : > { %v4928_v32 = vpop.f32.mrf.mxu1 }
 0x55e   : > { %v1609_v54 = vmax.f32 %v4926_v16, %v4928_v32 }
 0x564   : > { %v4930_v17 = vpop.f32.mrf.mxu0 }
 0x565   : > { %v4932_v33 = vpop.f32.mrf.mxu1 }
 0x566   : > { %v1612_v48 = vmax.f32 %v4930_v17, %v4932_v33 }
 0x56c   : > { %v4934_v34 = vpop.f32.mrf.mxu0 }
 0x56d   : > { %v4936_v35 = vpop.f32.mrf.mxu1 }
 0x56e   : > { %v1615_v52 = vmax.f32 %v4934_v34, %v4936_v35 }
 0x574   : > { %v4938_v36 = vpop.f32.mrf.mxu0 }
 0x575   : > { %v4940_v38 = vpop.f32.mrf.mxu1 }
 0x576   : > { %v1618_v57 = vmax.f32 %v4938_v36, %v4940_v38 }
 0x57c   : > { %v4942_v41 = vpop.f32.mrf.mxu0 }
 0x57d   : > { %v4944_v37 = vpop.f32.mrf.mxu1 }
 0x57e   : > { %v1621_v61 = vmax.f32 %v4942_v41, %v4944_v37 }
 0x584   : > { %v1511_v39 = vpop.f32.mrf.mxu0 }
 0x585   : > { %v1576_v42 = vpop.f32.mrf.mxu1 }
 0x586   : > { %v1624_v43 = vmax.f32 %v1511_v39, %v1576_v42 }
 0x588   : > { %1625 = vmax.xlane.f32.xlu2 %v1624_v43 }
 0x58c   : > { %v1514_v44 = vpop.f32.mrf.mxu0 }
 0x58d   : > { %v1579_v45 = vpop.f32.mrf.mxu1 }
 0x58e   : > { %v1627_v46 = vmax.f32 %v1514_v44, %v1579_v45 }
 0x590   : > { %1628 = vmax.xlane.f32.xlu2 %v1627_v46 }
 0x594   : > { %v1517_v47 = vpop.f32.mrf.mxu0 }
 0x595   : > { %v1582_v40 = vpop.f32.mrf.mxu1 }
 0x596   : > { %v1630_v49 = vmax.f32 %v1517_v47, %v1582_v40 }
 0x598   : > { %1613 = vmax.xlane.f32.xlu2 %v1612_v48  ;;  %1631 = vmax.xlane.f32.xlu1 %v1630_v49 }
 0x59c   : > { %v4948_v50 = vpop.f32.mrf.mxu0 }
 0x59d   : > { %v4950_v53 = vpop.f32.mrf.mxu1 }
 0x59e   : > { %v1633_v55 = vmax.f32 %v4948_v50, %v4950_v53 }
 0x5a0   : > { %1610 = vmax.xlane.f32.xlu2 %v1609_v54  ;;  %1634 = vmax.xlane.f32.xlu1 %v1633_v55 }
 0x5a4   : > { %v4956_v58 = vpop.f32.mrf.mxu0 }
 0x5a5   : > { %v4958_v59 = vpop.f32.mrf.mxu1 }
 0x5a6   : > { %v1636_v62 = vmax.f32 %v4956_v58, %v4958_v59 }
 0x5a8   : > { %1595 = vmax.xlane.f32.xlu2 %v1594_v60  ;;  %1622 = vmax.xlane.f32.xlu1 %v1621_v61 }
 0x5a9   : > { %1637 = vmax.xlane.f32.xlu0 %v1636_v62 }
 0x5ac   : > { %v4966_v1 = vpop.f32.mrf.mxu0 }
 0x5ad   : > { %v4968_v2 = vpop.f32.mrf.mxu1 }
 0x5ae   : > { %v1639_v3 = vmax.f32 %v4966_v1, %v4968_v2 }
 0x5b0   : > { %1607 = vmax.xlane.f32.xlu1 %v1606_v56 }
 0x5b1   : > { %1640 = vmax.xlane.f32.xlu0 %v1639_v3 }
 0x5b8   : > { %1604 = vmax.xlane.f32.xlu1 %v1603_v51 }
 0x5b9   : > { %1619 = vmax.xlane.f32.xlu0 %v1618_v57 }
 0x5c1   : > { %1616 = vmax.xlane.f32.xlu0 %v1615_v52 }
 0x5c9   : > { %1601 = vmax.xlane.f32.xlu0 %v1600_v4 }
 0x5d1   : > { %1598 = vmax.xlane.f32.xlu0 %v1597_v5 }
 0x5fb   : > { %v1626_v6 = vpop.xlane.xlu2 %1625 }
 0x5fc   : > { %v1662_v7 = vsub.f32 %v1511_v39, %v1626_v6  ;;  %v1663_v8 = vsub.f32 %v1576_v42, %v1626_v6 }
 0x5fe   : > { %v1714_v9 = vmul.f32 1.442695, %v1662_v7  ;;  %v1716_v10 = vmul.f32 1.442695, %v1663_v8 }
 0x600   : > { %3684 = vpow2.f32 %v1714_v9 }
 0x601   : > { %3686 = vpow2.f32 %v1716_v10 }
 0x603   : > { %v1629_v11 = vpop.xlane.xlu2 %1628 }
 0x604   : > { %v1664_v12 = vsub.f32 %v1514_v44, %v1629_v11  ;;  %v1665_v13 = vsub.f32 %v1579_v45, %v1629_v11 }
 0x606   : > { %v4984_v14 = vpop.eup %3684  ;;  %v1718_v0 = vmul.f32 1.442695, %v1664_v12  ;;  %v1720_v18 = vmul.f32 1.442695, %v1665_v13 }
 0x607   : > { %v4986_v19 = vpop.eup %3686 }
 0x608   : > { %3688 = vpow2.f32 %v1718_v0  ;;  %v1768_v20 = vadd.f32 %v4986_v19, %v4984_v14 }
 0x609   : > { %3690 = vpow2.f32 %v1720_v18 }
 0x60a   : > { %1769 = vadd.xlane.f32.xlu2 %v1768_v20 }
 0x60b   : > { %v1614_v21 = vpop.xlane.xlu2 %1613  ;;  %v1632_v22 = vpop.xlane.xlu1 %1631 }
 0x60c   : > { %v1666_v23 = vsub.f32 %v1517_v47, %v1632_v22  ;;  %v1667_v39 = vsub.f32 %v1582_v40, %v1632_v22  ;;  %v1654_v46 = vsub.f32 %v4930_v17, %v1614_v21  ;;  %v1655_v49 = vsub.f32 %v4932_v33, %v1614_v21 }
 0x60e   : > { %v4990_v42 = vpop.eup %3688  ;;  %v1722_v43 = vmul.f32 1.442695, %v1666_v23  ;;  %v1724_v45 = vmul.f32 1.442695, %v1667_v39  ;;  %v1698_v47 = vmul.f32 1.442695, %v1654_v46 }
 0x60f   : > { %v4992_v44 = vpop.eup %3690  ;;  %v1700_v61 = vmul.f32 1.442695, %v1655_v49 }
 0x610   : > { %v1771_v48 = vadd.f32 %v4992_v44, %v4990_v42  ;;  %3692 = vpow2.f32 %v1722_v43 }
 0x611   : > { %3694 = vpow2.f32 %v1724_v45 }
 0x612   : > { %1772 = vadd.xlane.f32.xlu0 %v1771_v48  ;;  %3696 = vpow2.f32 %v1698_v47 }
 0x613   : > { %v1611_v54 = vpop.xlane.xlu2 %1610  ;;  %v1635_v55 = vpop.xlane.xlu1 %1634  ;;  %3698 = vpow2.f32 %v1700_v61 }
 0x614   : > { %v1668_v40 = vsub.f32 %v4948_v50, %v1635_v55  ;;  %v1669_v60 = vsub.f32 %v4950_v53, %v1635_v55  ;;  %v1652_v17 = vsub.f32 %v4926_v16, %v1611_v54  ;;  %v1653_v33 = vsub.f32 %v4928_v32, %v1611_v54 }
 0x616   : > { %v1726_v62 = vmul.f32 1.442695, %v1668_v40  ;;  %v1728_v56 = vmul.f32 1.442695, %v1669_v60  ;;  %v5000_v3 = vpop.eup %3692  ;;  %v1694_v50 = vmul.f32 1.442695, %v1652_v17 }
 0x617   : > { %v5003_v51 = vpop.eup %3694  ;;  %v1696_v52 = vmul.f32 1.442695, %v1653_v33 }
 0x618   : > { %3700 = vpow2.f32 %v1726_v62  ;;  %v1774_v57 = vadd.f32 %v5003_v51, %v5000_v3  ;;  %v5010_v16 = vpop.eup %3696 }
 0x619   : > { %3702 = vpow2.f32 %v1728_v56  ;;  %v5012_v7 = vpop.eup %3698 }
 0x61a   : > { %1775 = vadd.xlane.f32.xlu0 %v1774_v57  ;;  %3704 = vpow2.f32 %v1694_v50 }
 0x61b   : > { %v1596_v4 = vpop.xlane.xlu2 %1595  ;;  %v1623_v9 = vpop.xlane.xlu1 %1622  ;;  %3706 = vpow2.f32 %v1696_v52 }
 0x61c   : > { %v1638_v53 = vpop.xlane.xlu0 %1637  ;;  %v1642_v32 = vsub.f32 %v4906_v24, %v1596_v4  ;;  %v1643_v12 = vsub.f32 %v4908_v25, %v1596_v4  ;;  %v1660_v43 = vsub.f32 %v4942_v41, %v1623_v9  ;;  %v1661_v45 = vsub.f32 %v4944_v37, %v1623_v9 }
 0x61d   : > { %v1670_v5 = vsub.f32 %v4956_v58, %v1638_v53  ;;  %v1671_v6 = vsub.f32 %v4958_v59, %v1638_v53  ;;  %v1756_v59 = vadd.f32 %v5012_v7, %v5010_v16 }
 0x61e   : > { %v5014_v8 = vpop.eup %3700  ;;  %v1674_v0 = vmul.f32 1.442695, %v1642_v32  ;;  %v1676_v24 = vmul.f32 1.442695, %v1643_v12  ;;  %v1710_v49 = vmul.f32 1.442695, %v1660_v43 }
 0x61f   : > { %v1730_v10 = vmul.f32 1.442695, %v1670_v5  ;;  %v5017_v11 = vpop.eup %3702  ;;  %v1732_v13 = vmul.f32 1.442695, %v1671_v6  ;;  %v1712_v41 = vmul.f32 1.442695, %v1661_v45 }
 0x620   : > { %v1777_v58 = vadd.f32 %v5017_v11, %v5014_v8  ;;  %v5026_v22 = vpop.eup %3704 }
 0x621   : > { %3708 = vpow2.f32 %v1730_v10  ;;  %v5028_v25 = vpop.eup %3706 }
 0x622   : > { %1778 = vadd.xlane.f32.xlu1 %v1777_v58  ;;  %1757 = vadd.xlane.f32.xlu0 %v1756_v59  ;;  %3710 = vpow2.f32 %v1732_v13 }
 0x623   : > { %3712 = vpow2.f32 %v1674_v0  ;;  %v1608_v48 = vpop.xlane.xlu1 %1607 }
 0x624   : > { %v1641_v18 = vpop.xlane.xlu0 %1640  ;;  %3714 = vpow2.f32 %v1676_v24  ;;  %v1650_v61 = vsub.f32 %v4922_v30, %v1608_v48  ;;  %v1651_v33 = vsub.f32 %v4924_v31, %v1608_v48 }
 0x625   : > { %v1672_v20 = vsub.f32 %v4966_v1, %v1641_v18  ;;  %v1673_v21 = vsub.f32 %v4968_v2, %v1641_v18  ;;  %v1753_v1 = vadd.f32 %v5028_v25, %v5026_v22 }
 0x626   : > { %v1690_v50 = vmul.f32 1.442695, %v1650_v61  ;;  %v1692_v30 = vmul.f32 1.442695, %v1651_v33 }
 0x627   : > { %v1734_v23 = vmul.f32 1.442695, %v1672_v20  ;;  %v1736_v39 = vmul.f32 1.442695, %v1673_v21  ;;  %v5032_v46 = vpop.eup %3708 }
 0x628   : > { %v5036_v2 = vpop.eup %3710 }
 0x629   : > { %3716 = vpow2.f32 %v1734_v23  ;;  %v1780_v54 = vadd.f32 %v5036_v2, %v5032_v46  ;;  %v5042_v40 = vpop.eup %3712 }
 0x62a   : > { %3718 = vpow2.f32 %v1736_v39  ;;  %1754 = vadd.xlane.f32.xlu0 %v1753_v1  ;;  %v5044_v60 = vpop.eup %3714 }
 0x62b   : > { %1781 = vadd.xlane.f32.xlu1 %v1780_v54  ;;  %3720 = vpow2.f32 %v1710_v49  ;;  %v1605_v53 = vpop.xlane.xlu1 %1604 }
 0x62c   : > { %v1620_v55 = vpop.xlane.xlu0 %1619  ;;  %3722 = vpow2.f32 %v1712_v41  ;;  %v1648_v32 = vsub.f32 %v4918_v63, %v1605_v53  ;;  %v1649_v13 = vsub.f32 %v4920_v29, %v1605_v53 }
 0x62d   : > { %v1658_v47 = vsub.f32 %v4938_v36, %v1620_v55  ;;  %v1659_v37 = vsub.f32 %v4940_v38, %v1620_v55  ;;  %v1738_v36 = vadd.f32 %v5044_v60, %v5042_v40 }
 0x62e   : > { %v1686_v59 = vmul.f32 1.442695, %v1648_v32  ;;  %v1688_v0 = vmul.f32 1.442695, %v1649_v13 }
 0x62f   : > { %v1706_v62 = vmul.f32 1.442695, %v1658_v47  ;;  %v1708_v56 = vmul.f32 1.442695, %v1659_v37  ;;  %v5047_v17 = vpop.eup %3716 }
 0x630   : > { %v5050_v57 = vpop.eup %3718 }
 0x631   : > { %3724 = vpow2.f32 %v1706_v62  ;;  %v1783_v38 = vadd.f32 %v5050_v57, %v5047_v17  ;;  %v5058_v5 = vpop.eup %3720 }
 0x632   : > { %3726 = vpow2.f32 %v1708_v56  ;;  %1739 = vadd.xlane.f32.xlu0 %v1738_v36  ;;  %v5060_v6 = vpop.eup %3722 }
 0x633   : > { %1784 = vadd.xlane.f32.xlu2 %v1783_v38  ;;  %3728 = vpow2.f32 %v1690_v50 }
 0x634   : > { %v1617_v52 = vpop.xlane.xlu0 %1616  ;;  %3730 = vpow2.f32 %v1692_v30 }
 0x635   : > { %v1656_v4 = vsub.f32 %v4934_v34, %v1617_v52  ;;  %v1657_v31 = vsub.f32 %v4936_v35, %v1617_v52  ;;  %v1765_v34 = vadd.f32 %v5060_v6, %v5058_v5 }
 0x637   : > { %v1702_v9 = vmul.f32 1.442695, %v1656_v4  ;;  %v1704_v10 = vmul.f32 1.442695, %v1657_v31  ;;  %v5063_v12 = vpop.eup %3724 }
 0x638   : > { %v5066_v58 = vpop.eup %3726 }
 0x639   : > { %3732 = vpow2.f32 %v1702_v9  ;;  %v1762_v35 = vadd.f32 %v5066_v58, %v5063_v12  ;;  %v5072_v18 = vpop.eup %3728 }
 0x63a   : > { %3734 = vpow2.f32 %v1704_v10  ;;  %v5076_v20 = vpop.eup %3730 }
 0x63b   : > { %1766 = vadd.xlane.f32.xlu2 %v1765_v34  ;;  %1763 = vadd.xlane.f32.xlu1 %v1762_v35  ;;  %3736 = vpow2.f32 %v1686_v59 }
 0x63c   : > { %v1602_v63 = vpop.xlane.xlu0 %1601  ;;  %3738 = vpow2.f32 %v1688_v0 }
 0x63d   : > { %v1646_v24 = vsub.f32 %v4914_v28, %v1602_v63  ;;  %v1647_v29 = vsub.f32 %v4916_v15, %v1602_v63  ;;  %v1750_v28 = vadd.f32 %v5076_v20, %v5072_v18 }
 0x63f   : > { %v5078_v21 = vpop.eup %3732  ;;  %v1682_v23 = vmul.f32 1.442695, %v1646_v24  ;;  %v1684_v39 = vmul.f32 1.442695, %v1647_v29 }
 0x640   : > { %v5080_v43 = vpop.eup %3734 }
 0x641   : > { %3740 = vpow2.f32 %v1682_v23  ;;  %v1759_v45 = vadd.f32 %v5080_v43, %v5078_v21  ;;  %v5086_v48 = vpop.eup %3736 }
 0x642   : > { %3742 = vpow2.f32 %v1684_v39  ;;  %v5090_v54 = vpop.eup %3738 }
 0x643   : > { %1751 = vadd.xlane.f32.xlu2 %v1750_v28  ;;  %1760 = vadd.xlane.f32.xlu1 %v1759_v45  ;;  %v1747_v62 = vadd.f32 %v5090_v54, %v5086_v48 }
 0x644   : > { %v1599_v15 = vpop.xlane.xlu0 %1598 }
 0x645   : > { %v1644_v1 = vsub.f32 %v4910_v26, %v1599_v15  ;;  %v1645_v49 = vsub.f32 %v4912_v27, %v1599_v15 }
 0x647   : > { %v5092_v55 = vpop.eup %3740  ;;  %v1678_v41 = vmul.f32 1.442695, %v1644_v1  ;;  %v1680_v47 = vmul.f32 1.442695, %v1645_v49 }
 0x648   : > { %v5094_v37 = vpop.eup %3742 }
 0x649   : > { %3744 = vpow2.f32 %v1678_v41  ;;  %v1744_v61 = vadd.f32 %v5094_v37, %v5092_v55 }
 0x64a   : > { %3746 = vpow2.f32 %v1680_v47 }
 0x64b   : > { %1748 = vadd.xlane.f32.xlu2 %v1747_v62  ;;  %1745 = vadd.xlane.f32.xlu1 %v1744_v61 }
 0x64f   : > { %v5100_v26 = vpop.eup %3744 }
 0x650   : > { %v5102_v27 = vpop.eup %3746 }
 0x651   : > { %v1741_v56 = vadd.f32 %v5102_v27, %v5100_v26 }
 0x653   : > { %1742 = vadd.xlane.f32.xlu1 %v1741_v56 }
 0x67d   : > { %v1770_v33 = vpop.xlane.xlu2 %1769 }
 0x67e   : > { %3748 = vrcp.f32 %v1770_v33  ;;  %v1937_v53 = vand.u32 2147483648, %v1770_v33  ;;  %v1935_v4 = vand.u32 2147483647, %v1770_v33  ;;  %vm1931_vm4 = vweird.f32 %v1770_v33 }
 0x680   : > { %v1938_v9 = vor.u32 1.1754944e-38, %v1937_v53  ;;  %vm1936_vm6 = vcmp.eq.f32.partialorder %v1935_v4, 8.507059e+37 }
 0x684   : > { %v3749_v36 = vpop.eup %3748 }
 0x685   : > { %v1927_v38 = vmul.f32 %v3749_v36, %v1770_v33  ;;  %v1773_v50 = vpop.xlane.xlu0 %1772  ;;  %vm1932_vm3 = vweird.f32 %v3749_v36 }
 0x686   : > { %3750 = vrcp.f32 %v1773_v50  ;;  %vm1933_vm5 = vmor %vm1931_vm4, %vm1932_vm3  ;;  %v1951_v24 = vand.u32 2147483648, %v1773_v50  ;;  %v1949_v23 = vand.u32 2147483647, %v1773_v50  ;;  %vm1945_vm8 = vweird.f32 %v1773_v50 }
 0x687   : > { %v1928_v30 = vsub.f32 1.0, %v1927_v38 }
 0x688   : > { %v1952_v45 = vor.u32 1.1754944e-38, %v1951_v24  ;;  %vm1950_vm10 = vcmp.eq.f32.partialorder %v1949_v23, 8.507059e+37 }
 0x689   : > { %v1929_v52 = vmul.f32 %v3749_v36, %v1928_v30 }
 0x68b   : > { %v1930_v31 = vadd.f32 %v3749_v36, %v1929_v52 }
 0x68c   : > { %v3751_v32 = vpop.eup %3750 }
 0x68d   : > { %v1941_v10 = vmul.f32 %v3751_v32, %v1773_v50  ;;  %v1934_v13 = vsel %vm1933_vm5, %v3749_v36, %v1930_v31  ;;  %v1776_v59 = vpop.xlane.xlu0 %1775  ;;  %vm1946_vm7 = vweird.f32 %v3751_v32 }
 0x68e   : > { %v1939_v34 = vsel %vm1936_vm6, %v1938_v9, %v1934_v13  ;;  %3752 = vrcp.f32 %v1776_v59  ;;  %vm1947_vm9 = vmor %vm1945_vm8, %vm1946_vm7  ;;  %v1965_v56 = vand.u32 2147483648, %v1776_v59  ;;  %v1963_v33 = vand.u32 2147483647, %v1776_v59 }
 0x68f   : > { %v1942_v35 = vsub.f32 1.0, %v1941_v10  ;;  %v5107_v0 = vmul.f32 %v4984_v14, %v1939_v34  ;;  %v5110_v63 = vmul.f32 %v4986_v19, %v1939_v34  ;;  %vm1959_vm12 = vweird.f32 %v1776_v59 }
 0x690   : > { %v1966_v53 = vor.u32 1.1754944e-38, %v1965_v56  ;;  %vm1964_vm14 = vcmp.eq.f32.partialorder %v1963_v33, 8.507059e+37 }
 0x691   : > { %v1943_v29 = vmul.f32 %v3751_v32, %v1942_v35  ;;  %2062 = vst [vmem:[%s4540_s1 + $0xa0] sm:$0xff] %v5107_v0 }
 0x692   : > { %2063 = vst [vmem:[%s4540_s1 + $0xa8] sm:$0xff] %v5110_v63 }
 0x693   : > { %v1944_v39 = vadd.f32 %v3751_v32, %v1943_v29 }
 0x694   : > { %v3753_v28 = vpop.eup %3752 }
 0x695   : > { %v1948_v14 = vsel %vm1947_vm9, %v3751_v32, %v1944_v39  ;;  %v1955_v15 = vmul.f32 %v3753_v28, %v1776_v59  ;;  %v1779_v1 = vpop.xlane.xlu1 %1778  ;;  %v5116_v49 = vpop.xlane.xlu0 %1757  ;;  %vm1960_vm11 = vweird.f32 %v3753_v28 }
 0x696   : > { %v1953_v19 = vsel %vm1950_vm10, %v1952_v45, %v1948_v14  ;;  %3754 = vrcp.f32 %v1779_v1  ;;  %vm1961_vm13 = vmor %vm1959_vm12, %vm1960_vm11  ;;  %v1979_v9 = vand.u32 2147483648, %v1779_v1  ;;  %v1977_v24 = vand.u32 2147483647, %v1779_v1 }
 0x697   : > { %v5119_v41 = vmul.f32 %v4990_v42, %v1953_v19  ;;  %v5122_v47 = vmul.f32 %v4992_v44, %v1953_v19  ;;  %v1956_v61 = vsub.f32 1.0, %v1955_v15  ;;  %3756 = vrcp.f32 %v5116_v49 }
 0x698   : > { %vm1973_vm0 = vweird.f32 %v1779_v1  ;;  %v1881_v29 = vand.u32 2147483648, %v5116_v49  ;;  %vm1875_vm4 = vweird.f32 %v5116_v49  ;;  %vm1978_vm5 = vcmp.eq.f32.partialorder %v1977_v24, 8.507059e+37 }
 0x699   : > { %2064 = vst [vmem:[%s4540_s1 + $0xb0] sm:$0xff] %v5119_v41  ;;  %v1957_v62 = vmul.f32 %v3753_v28, %v1956_v61 }
 0x69a   : > { %2065 = vst [vmem:[%s4540_s1 + $0xb8] sm:$0xff] %v5122_v47 }
 0x69b   : > { %v1958_v36 = vadd.f32 %v3753_v28, %v1957_v62  ;;  %v2098_v62 = vpack.c.bf16 %v5119_v41, %v5107_v0 }
 0x69c   : > { %v3755_v38 = vpop.eup %3754 }
 0x69d   : > { %v3757_v42 = vpop.eup %3756  ;;  %v1969_v50 = vmul.f32 %v3755_v38, %v1779_v1  ;;  %v5129_v44 = vpop.xlane.xlu0 %1754  ;;  %v1962_v30 = vsel %vm1961_vm13, %v3753_v28, %v1958_v36  ;;  %vm1974_vm15 = vweird.f32 %v3755_v38  ;;  %v1980_v1 = vor.u32 1.1754944e-38, %v1979_v9 }
 0x69e   : > { %v1871_v52 = vmul.f32 %v3757_v42, %v5116_v49  ;;  %3758 = vrcp.f32 %v5129_v44  ;;  %v5133_v31 = vpop.xlane.xlu1 %1781  ;;  %v1967_v32 = vsel %vm1964_vm14, %v1966_v53, %v1962_v30  ;;  %vm5147_vm1 = vmor %vm1973_vm0, %vm1974_vm15  ;;  %vm1876_vm3 = vweird.f32 %v3757_v42 }
 0x69f   : > { %v1970_v4 = vsub.f32 1.0, %v1969_v50  ;;  %3760 = vrcp.f32 %v5133_v31  ;;  %v5137_v34 = vmul.f32 %v5000_v3, %v1967_v32  ;;  %v5140_v35 = vmul.f32 %v5003_v51, %v1967_v32  ;;  %vm1877_vm6 = vmor %vm1875_vm4, %vm1876_vm3 }
 0x6a0   : > { %v1872_v10 = vsub.f32 1.0, %v1871_v52  ;;  %v1879_v51 = vand.u32 2147483647, %v5116_v49  ;;  %v1882_v36 = vor.u32 1.1754944e-38, %v1881_v29  ;;  %v1865_v32 = vand.u32 2147483647, %v5129_v44 }
 0x6a1   : > { %v1971_v13 = vmul.f32 %v3755_v38, %v1970_v4  ;;  %2066 = vst [vmem:[%s4540_s1 + $0xc0] sm:$0xff] %v5137_v34  ;;  %vm1861_vm8 = vweird.f32 %v5129_v44  ;;  %v1867_v9 = vand.u32 2147483648, %v5129_v44  ;;  %vm1987_vm9 = vweird.f32 %v5133_v31 }
 0x6a2   : > { %v1873_v59 = vmul.f32 %v3757_v42, %v1872_v10  ;;  %2067 = vst [vmem:[%s4540_s1 + $0xc8] sm:$0xff] %v5140_v35  ;;  %vm1880_vm7 = vcmp.eq.f32.partialorder %v1879_v51, 8.507059e+37  ;;  %v1993_v10 = vand.u32 2147483648, %v5133_v31  ;;  %vm5212_vm12 = vcmp.eq.f32.partialorder %v1865_v32, 8.507059e+37 }
 0x6a3   : > { %v1972_v23 = vadd.f32 %v3755_v38, %v1971_v13 }
 0x6a4   : > { %v5145_v39 = vpop.eup %3758  ;;  %v1874_v3 = vadd.f32 %v3757_v42, %v1873_v59 }
 0x6a5   : > { %v1857_v14 = vmul.f32 %v5145_v39, %v5129_v44  ;;  %v5159_v19 = vpop.xlane.xlu0 %1739  ;;  %v1976_v15 = vsel %vm5147_vm1, %v3755_v38, %v1972_v23  ;;  %v3761_v61 = vpop.eup %3760  ;;  %v1991_v38 = vand.u32 2147483647, %v5133_v31  ;;  %vm1862_vm13 = vweird.f32 %v5145_v39 }
 0x6a6   : > { %v5157_v28 = vpop.xlane.xlu2 %1784  ;;  %v1983_v56 = vmul.f32 %v3761_v61, %v5133_v31  ;;  %v1981_v50 = vsel %vm1978_vm5, %v1980_v1, %v1976_v15  ;;  %v1878_v30 = vsel %vm1877_vm6, %v3757_v42, %v1874_v3  ;;  %vm1988_vm10 = vweird.f32 %v3761_v61  ;;  %vm1863_vm3 = vmor %vm1861_vm8, %vm1862_vm13 }
 0x6a7   : > { %3762 = vrcp.f32 %v5157_v28  ;;  %v1858_v33 = vsub.f32 1.0, %v1857_v14  ;;  %v5173_v52 = vmul.f32 %v5014_v8, %v1981_v50  ;;  %v5176_v4 = vmul.f32 %v5017_v11, %v1981_v50  ;;  %vm1989_vm14 = vmor %vm1987_vm9, %vm1988_vm10 }
 0x6a8   : > { %3764 = vrcp.f32 %v5159_v19  ;;  %v1984_v53 = vsub.f32 1.0, %v1983_v56  ;;  %v1883_v13 = vsel %vm1880_vm7, %v1882_v36, %v1878_v30  ;;  %vm5191_vm11 = vcmp.eq.f32.partialorder %v1991_v38, 8.507059e+37 }
 0x6a9   : > { %v1859_v42 = vmul.f32 %v5145_v39, %v1858_v33  ;;  %2068 = vst [vmem:[%s4540_s1 + $0xd0] sm:$0xff] %v5173_v52  ;;  %v5187_v8 = vmul.f32 %v5010_v16, %v1883_v13  ;;  %v2005_v29 = vand.u32 2147483647, %v5157_v28  ;;  %v5199_v23 = vmul.f32 %v5012_v7, %v1883_v13 }
 0x6aa   : > { %v1985_v59 = vmul.f32 %v3761_v61, %v1984_v53  ;;  %2069 = vst [vmem:[%s4540_s1 + $0xd8] sm:$0xff] %v5176_v4  ;;  %v2007_v15 = vand.u32 2147483648, %v5157_v28  ;;  %v1994_v7 = vor.u32 1.1754944e-38, %v1993_v10  ;;  %v1868_v56 = vor.u32 1.1754944e-38, %v1867_v9 }
 0x6ab   : > { %2054 = vst [vmem:[%s4540_s1 + $0x60] sm:$0xff] %v5187_v8  ;;  %v1797_v36 = vand.u32 2147483648, %v5159_v19  ;;  %v1860_v38 = vadd.f32 %v5145_v39, %v1859_v42  ;;  %vm2001_vm15 = vweird.f32 %v5157_v28  ;;  %vm5229_vm0 = vcmp.eq.f32.partialorder %v2005_v29, 8.507059e+37 }
 0x6ac   : > { %v1986_v14 = vadd.f32 %v3761_v61, %v1985_v59  ;;  %2055 = vst [vmem:[%s4540_s1 + $0x68] sm:$0xff] %v5199_v23  ;;  %v2008_v31 = vor.u32 1.1754944e-38, %v2007_v15  ;;  %v1795_v59 = vand.u32 2147483647, %v5159_v19  ;;  %vm1791_vm8 = vweird.f32 %v5159_v19 }
 0x6ad   : > { %v5189_v11 = vpop.eup %3762 }
 0x6ae   : > { %v5201_v45 = vpop.eup %3764  ;;  %v1997_v16 = vmul.f32 %v5189_v11, %v5157_v28  ;;  %v5205_v3 = vpop.xlane.xlu2 %1766  ;;  %v1990_v30 = vsel %vm1989_vm14, %v3761_v61, %v1986_v14  ;;  %vm2002_vm1 = vweird.f32 %v5189_v11  ;;  %v2100_v61 = vpack.c.bf16 %v5173_v52, %v5137_v34 }
 0x6af   : > { %v5207_v51 = vpop.xlane.xlu1 %1763  ;;  %3766 = vrcp.f32 %v5205_v3  ;;  %v1787_v50 = vmul.f32 %v5201_v45, %v5159_v19  ;;  %v1995_v9 = vsel %vm5191_vm11, %v1994_v7, %v1990_v30  ;;  %v1923_v14 = vand.u32 2147483648, %v5205_v3  ;;  %vm5256_vm4 = vmor %vm2001_vm15, %vm2002_vm1 }
 0x6b0   : > { %v1998_v33 = vsub.f32 1.0, %v1997_v16  ;;  %3768 = vrcp.f32 %v5207_v51  ;;  %v2038_v10 = vmul.f32 %v5032_v46, %v1995_v9  ;;  %v2039_v13 = vmul.f32 %v5036_v2, %v1995_v9 }
 0x6b1   : > { %v1909_v42 = vand.u32 2147483648, %v5207_v51  ;;  %v2101_v46 = vpack.c.bf16 %v5176_v4, %v5140_v35  ;;  %v1864_v2 = vsel %vm1863_vm3, %v5145_v39, %v1860_v38  ;;  %v1788_v16 = vsub.f32 1.0, %v1787_v50 }
 0x6b2   : > { %v1999_v32 = vmul.f32 %v5189_v11, %v1998_v33  ;;  %2070 = vst [vmem:[%s4540_s1 + $0xe0] sm:$0xff] %v2038_v10  ;;  %v1869_v15 = vsel %vm5212_vm12, %v1868_v56, %v1864_v2  ;;  %v5263_v7 = vor.u32 1.1754944e-38, %v1797_v36  ;;  %vm1917_vm5 = vweird.f32 %v5205_v3 }
 0x6b3   : > { %2071 = vst [vmem:[%s4540_s1 + $0xe8] sm:$0xff] %v2039_v13  ;;  %v5279_v1 = vmul.f32 %v5026_v22, %v1869_v15  ;;  %v1907_v36 = vand.u32 2147483647, %v5207_v51  ;;  %v1921_v30 = vand.u32 2147483647, %v5205_v3  ;;  %vm1903_vm6 = vweird.f32 %v5207_v51 }
 0x6b4   : > { %v2000_v24 = vadd.f32 %v5189_v11, %v1999_v32  ;;  %v1789_v22 = vmul.f32 %v5201_v45, %v1788_v16  ;;  %v1924_v2 = vor.u32 1.1754944e-38, %v1923_v14  ;;  %v5311_v14 = vmul.f32 %v5028_v25, %v1869_v15 }
 0x6b5   : > { %v5251_v29 = vpop.eup %3766  ;;  %2052 = vst [vmem:[%s4540_s1 + $0x50] sm:$0xff] %v5279_v1  ;;  %vm5300_vm9 = vcmp.eq.f32.partialorder %v1907_v36, 8.507059e+37  ;;  %vm5304_vm10 = vcmp.eq.f32.partialorder %v1921_v30, 8.507059e+37  ;;  %vm1792_vm14 = vweird.f32 %v5201_v45 }
 0x6b6   : > { %v5265_v33 = vpop.eup %3768  ;;  %v1913_v39 = vmul.f32 %v5251_v29, %v5205_v3  ;;  %v5270_v38 = vpop.xlane.xlu2 %1751  ;;  %v2004_v50 = vsel %vm5256_vm4, %v5189_v11, %v2000_v24  ;;  %v1910_v11 = vor.u32 1.1754944e-38, %v1909_v42  ;;  %vm1918_vm7 = vweird.f32 %v5251_v29  ;;  %2053 = vst [vmem:[%s4540_s1 + $0x58] sm:$0xff] %v5311_v14 }
 0x6b7   : > { %v5272_v28 = vpop.xlane.xlu1 %1760  ;;  %v1899_v56 = vmul.f32 %v5265_v33, %v5207_v51  ;;  %3770 = vrcp.f32 %v5270_v38  ;;  %v2009_v24 = vsel %vm5229_vm0, %v2008_v31, %v2004_v50  ;;  %vm1904_vm11 = vweird.f32 %v5265_v33  ;;  %vm5322_vm12 = vmor %vm1917_vm5, %vm1918_vm7 }
 0x6b8   : > { %v1914_v32 = vsub.f32 1.0, %v1913_v39  ;;  %3772 = vrcp.f32 %v5272_v28  ;;  %v2040_v39 = vmul.f32 %v5047_v17, %v2009_v24  ;;  %v2041_v49 = vmul.f32 %v5050_v57, %v2009_v24  ;;  %vm1905_vm0 = vmor %vm1903_vm6, %vm1904_vm11 }
 0x6b9   : > { %v1900_v9 = vsub.f32 1.0, %v1899_v56  ;;  %v1895_v16 = vand.u32 2147483648, %v5272_v28  ;;  %v5328_v25 = vadd.f32 %v5201_v45, %v1789_v22  ;;  %vm1847_vm13 = vweird.f32 %v5270_v38  ;;  %vm5395_vm7 = vmor %vm1791_vm8, %vm1792_vm14 }
 0x6ba   : > { %v1915_v44 = vmul.f32 %v5251_v29, %v1914_v32  ;;  %2072 = vst [vmem:[%s4540_s1 + $0xf0] sm:$0xff] %v2040_v39  ;;  %v2102_v17 = vpack.c.bf16 %v2040_v39, %v2038_v10  ;;  %v2103_v31 = vpack.c.bf16 %v2041_v49, %v2039_v13  ;;  %v1893_v13 = vand.u32 2147483647, %v5272_v28 }
 0x6bb   : > { %v1901_v42 = vmul.f32 %v5265_v33, %v1900_v9  ;;  %2073 = vst [vmem:[%s4540_s1 + $0xf8] sm:$0xff] %v2041_v49  ;;  %v1853_v22 = vand.u32 2147483648, %v5270_v38  ;;  %vm1889_vm15 = vweird.f32 %v5272_v28  ;;  %vm5376_vm4 = vcmp.eq.f32.partialorder %v1795_v59, 8.507059e+37 }
 0x6bc   : > { %v1916_v57 = vadd.f32 %v5251_v29, %v1915_v44  ;;  %2104 = vmatpush.bf16.msra.mxu2 %v2102_v17  ;;  %2123 = vmatpush.bf16.msra.mxu3 %v2103_v31  ;;  %v1851_v44 = vand.u32 2147483647, %v5270_v38  ;;  %vm5359_vm1 = vcmp.eq.f32.partialorder %v1893_v13, 8.507059e+37 }
 0x6bd   : > { %v5313_v50 = vpop.eup %3770  ;;  %v1902_v36 = vadd.f32 %v5265_v33, %v1901_v42  ;;  %v1854_v59 = vor.u32 1.1754944e-38, %v1853_v22 }
 0x6be   : > { %v5330_v15 = vpop.eup %3772  ;;  %v1843_v49 = vmul.f32 %v5313_v50, %v5270_v38  ;;  %v5335_v30 = vpop.xlane.xlu2 %1748  ;;  %v1920_v32 = vsel %vm5322_vm12, %v5251_v29, %v1916_v57  ;;  %v1896_v29 = vor.u32 1.1754944e-38, %v1895_v16  ;;  %vm1848_vm3 = vweird.f32 %v5313_v50 }
 0x6bf   : > { %v5337_v3 = vpop.xlane.xlu1 %1745  ;;  %v1885_v9 = vmul.f32 %v5330_v15, %v5272_v28  ;;  %3774 = vrcp.f32 %v5335_v30  ;;  %v1906_v42 = vsel %vm1905_vm0, %v5265_v33, %v1902_v36  ;;  %v1925_v17 = vsel %vm5304_vm10, %v1924_v2, %v1920_v32  ;;  %vm5409_vm10 = vmor %vm1847_vm13, %vm1848_vm3 }
 0x6c0   : > { %v1844_v24 = vsub.f32 1.0, %v1843_v49  ;;  %3776 = vrcp.f32 %v5337_v3  ;;  %2105 = vmatpush.bf16.msra.mxu2 %v2100_v61  ;;  %2124 = vmatpush.bf16.msra.mxu3 %v2101_v46  ;;  %v1911_v51 = vsel %vm5300_vm9, %v1910_v11, %v1906_v42  ;;  %v2028_v33 = vmul.f32 %v5058_v5, %v1925_v17  ;;  %v1254_v42 = vld [vmem:[#allocation3 + $0x8] sm:$0xff] }
 0x6c1   : > { %v1886_v39 = vsub.f32 1.0, %v1885_v9  ;;  %v2026_v52 = vmul.f32 %v5063_v12, %v1911_v51  ;;  %v2027_v35 = vmul.f32 %v5066_v58, %v1911_v51  ;;  %v2029_v4 = vmul.f32 %v5060_v6, %v1925_v17 }
 0x6c2   : > { %v1845_v57 = vmul.f32 %v5313_v50, %v1844_v24  ;;  %2060 = vst [vmem:[%s4540_s1 + $0x90] sm:$0xff] %v2028_v33  ;;  %vm1890_vm5 = vweird.f32 %v5330_v15  ;;  %vm5387_vm6 = vcmp.eq.f32.partialorder %v1851_v44, 8.507059e+37  ;;  %vm1833_vm9 = vweird.f32 %v5335_v30 }
 0x6c3   : > { %v1887_v34 = vmul.f32 %v5330_v15, %v1886_v39  ;;  %v1839_v58 = vand.u32 2147483648, %v5335_v30  ;;  %2058 = vst [vmem:[%s4540_s1 + $0x80] sm:$0xff] %v2026_v52  ;;  %v1794_v11 = vsel %vm5395_vm7, %v5201_v45, %v5328_v25  ;;  %v1825_v53 = vand.u32 2147483648, %v5337_v3  ;;  %vm1891_vm8 = vmor %vm1889_vm15, %vm1890_vm5 }
 0x6c4   : > { %v1846_v5 = vadd.f32 %v5313_v50, %v1845_v57  ;;  %2106 = vmatpush.bf16.msra.mxu2 %v2098_v62  ;;  %v6532_v38 = vpack.c.bf16 %v5122_v47, %v5110_v63  ;;  %2059 = vst [vmem:[%s4540_s1 + $0x88] sm:$0xff] %v2027_v35  ;;  %v1823_v10 = vand.u32 2147483647, %v5337_v3  ;;  %v2096_v25 = vpack.c.bf16 %v2028_v33, %v2026_v52 }
 0x6c5   : > { %v5399_v6 = vpop.eup %3774  ;;  %v1888_v46 = vadd.f32 %v5330_v15, %v1887_v34  ;;  %2061 = vst [vmem:[%s4540_s1 + $0x98] sm:$0xff] %v2029_v4  ;;  %v1837_v0 = vand.u32 2147483647, %v5335_v30  ;;  %v2097_v41 = vpack.c.bf16 %v2029_v4, %v2027_v35  ;;  %vm1819_vm12 = vweird.f32 %v5337_v3 }
 0x6c6   : > { %v3777_v16 = vpop.eup %3776  ;;  %v1829_v56 = vmul.f32 %v5399_v6, %v5335_v30  ;;  %2125 = vmatpush.bf16.msra.mxu3 %v6532_v38  ;;  %v1850_v45 = vsel %vm5409_vm10, %v5313_v50, %v1846_v5  ;;  %vm1834_vm11 = vweird.f32 %v5399_v6  ;;  %vm5460_vm14 = vcmp.eq.f32.partialorder %v1823_v10, 8.507059e+37  ;;  %v1282_v38 = vld [vmem:[#allocation3 + $0xe8] sm:$0xff]  ;;  %v2084_v10 = vld [vmem:[%s4532_s10 + $0x10] sm:$0xff] }
 0x6c7   : > { %v5426_v36 = vpop.xlane.xlu1 %1742  ;;  %v1815_v13 = vmul.f32 %v3777_v16, %v5337_v3  ;;  %v1892_v47 = vsel %vm1891_vm8, %v5330_v15, %v1888_v46  ;;  %v1855_v62 = vsel %vm5387_vm6, %v1854_v59, %v1850_v45  ;;  %vm1820_vm13 = vweird.f32 %v3777_v16  ;;  %vm5468_vm15 = vmor %vm1833_vm9, %vm1834_vm11  ;;  %v1281_v45 = vld [vmem:[#allocation3 + $0xe0] sm:$0xff] }
 0x6c8   : > { %3778 = vrcp.f32 %v5426_v36  ;;  %v1830_v63 = vsub.f32 1.0, %v1829_v56  ;;  %v1897_v49 = vsel %vm5359_vm1, %v1896_v29, %v1892_v47  ;;  %v2018_v32 = vmul.f32 %v5072_v18, %v1855_v62  ;;  %2107 = vmatpush.bf16.msra.mxu2 %v2096_v25  ;;  %vm1821_vm0 = vmor %vm1819_vm12, %vm1820_vm13  ;;  %v1264_v25 = vld [vmem:[#allocation3 + $0x58] sm:$0xff]  ;;  %v1279_v47 = vld [vmem:[#allocation3 + $0xd0] sm:$0xff] }
 0x6c9   : > { %v1816_v50 = vsub.f32 1.0, %v1815_v13  ;;  %v2019_v28 = vmul.f32 %v5076_v20, %v1855_v62  ;;  %v2024_v9 = vmul.f32 %v5078_v21, %v1897_v49  ;;  %v2025_v15 = vmul.f32 %v5080_v43, %v1897_v49  ;;  %v2085_v13 = vld [vmem:[%s4532_s10 + $0x18] sm:$0xff]  ;;  %v1262_v62 = vld [vmem:[#allocation3 + $0x48] sm:$0xff]  ;;  %v1261_v49 = vld [vmem:[#allocation3 + $0x40] sm:$0xff] }
 0x6ca   : > { %v1831_v22 = vmul.f32 %v5399_v6, %v1830_v63  ;;  %2126 = vmatpush.bf16.msra.mxu3 %v2097_v41  ;;  %2050 = vst [vmem:[%s4540_s1 + $0x40] sm:$0xff] %v2018_v32  ;;  %v1799_v18 = vsel %vm5376_vm4, %v5263_v7, %v1794_v11  ;;  %v1840_v7 = vor.u32 1.1754944e-38, %v1839_v58  ;;  %v1826_v30 = vor.u32 1.1754944e-38, %v1825_v53  ;;  %v2083_v58 = vld [vmem:[%s4532_s10 + $0x8] sm:$0xff]  ;;  %v1268_v11 = vld [vmem:[#allocation3 + $0x78] sm:$0xff]  ;;  %v1283_v53 = vld [vmem:[#allocation3 + $0xf0] sm:$0xff] }
 0x6cb   : > { %v1817_v24 = vmul.f32 %v3777_v16, %v1816_v50  ;;  %2056 = vst [vmem:[%s4540_s1 + $0x70] sm:$0xff] %v2024_v9  ;;  %v2094_v20 = vpack.c.bf16 %v2024_v9, %v5187_v8  ;;  %v2095_v29 = vpack.c.bf16 %v2025_v15, %v5199_v23  ;;  %v2010_v8 = vmul.f32 %v5042_v40, %v1799_v18  ;;  %v1263_v41 = vld [vmem:[#allocation3 + $0x50] sm:$0xff]  ;;  %v1278_v50 = vld [vmem:[#allocation3 + $0xc8] sm:$0xff]  ;;  %v1256_v21 = vld [vmem:[#allocation3 + $0x18] sm:$0xff] }
 0x6cc   : > { %v1832_v43 = vadd.f32 %v5399_v6, %v1831_v22  ;;  %2057 = vst [vmem:[%s4540_s1 + $0x78] sm:$0xff] %v2025_v15  ;;  %v2011_v23 = vmul.f32 %v5044_v60, %v1799_v18  ;;  %vm1838_vm1 = vcmp.eq.f32.partialorder %v1837_v0, 8.507059e+37  ;;  %v2092_v40 = vpack.c.bf16 %v5279_v1, %v2018_v32  ;;  %v1280_v0 = vld [vmem:[#allocation3 + $0xd8] sm:$0xff]  ;;  %v1277_v32 = vld [vmem:[#allocation3 + $0xc0] sm:$0xff]  ;;  %v1259_v9 = vld [vmem:[#allocation3 + $0x30] sm:$0xff] }
 0x6cd   : > { %v1818_v39 = vadd.f32 %v3777_v16, %v1817_v24  ;;  %2108 = vmatpush.bf16.msra.mxu2 %v2094_v20  ;;  %2051 = vst [vmem:[%s4540_s1 + $0x48] sm:$0xff] %v2019_v28  ;;  %v2093_v60 = vpack.c.bf16 %v5311_v14, %v2019_v28  ;;  %v1811_v1 = vand.u32 2147483648, %v5426_v36  ;;  %v1809_v4 = vand.u32 2147483647, %v5426_v36  ;;  %v1260_v28 = vld [vmem:[#allocation3 + $0x38] sm:$0xff]  ;;  %v1275_v15 = vld [vmem:[#allocation3 + $0xb0] sm:$0xff] }
 0x6ce   : > { %v3779_v44 = vpop.eup %3778  ;;  %2127 = vmatpush.bf16.msra.mxu3 %v2095_v29  ;;  %v1836_v31 = vsel %vm5468_vm15, %v5399_v6, %v1832_v43  ;;  %2042 = vst [vmem:[%s4540_s1] sm:$0xff] %v2010_v8  ;;  %vm1805_vm4 = vweird.f32 %v5426_v36  ;;  %v2082_v6 = vld [vmem:[%s4532_s10] sm:$0xff]  ;;  %v2087_v63 = vpack.c.bf16 %v2085_v13, %v2084_v10  ;;  %v1276_v22 = vld [vmem:[#allocation3 + $0xb8] sm:$0xff]  ;;  %v1258_v24 = vld [vmem:[#allocation3 + $0x28] sm:$0xff]  ;;  %s5541_s10 = scalar_lea.vmem [#allocation2], %s3370_s17 }
 0x6cf   : > { %v1801_v17 = vmul.f32 %v3779_v44, %v5426_v36  ;;  %v1822_v57 = vsel %vm1821_vm0, %v3777_v16, %v1818_v39  ;;  %v1841_v51 = vsel %vm1838_vm1, %v1840_v7, %v1836_v31  ;;  %2043 = vst [vmem:[%s4540_s1 + $0x8] sm:$0xff] %v2011_v23  ;;  %vm1806_vm3 = vweird.f32 %v3779_v44  ;;  %v1284_v16 = vld [vmem:[#allocation3 + $0xf8] sm:$0xff]  ;;  %v1265_v36 = vld [vmem:[#allocation3 + $0x60] sm:$0xff]  ;;  %v1274_v18 = vld [vmem:[#allocation3 + $0xa8] sm:$0xff] }
 0x6d0   : > { %v1827_v3 = vsel %vm5460_vm14, %v1826_v30, %v1822_v57  ;;  %v2016_v2 = vmul.f32 %v5086_v48, %v1841_v51  ;;  %v2017_v34 = vmul.f32 %v5090_v54, %v1841_v51  ;;  %vm1807_vm5 = vmor %vm1805_vm4, %vm1806_vm3  ;;  %vm1810_vm6 = vcmp.eq.f32.partialorder %v1809_v4, 8.507059e+37  ;;  %v1257_v20 = vld [vmem:[#allocation3 + $0x20] sm:$0xff]  ;;  %v1272_v43 = vld [vmem:[#allocation3 + $0x98] sm:$0xff] }
 0x6d1   : > { %v1802_v33 = vsub.f32 1.0, %v1801_v17  ;;  %v2014_v52 = vmul.f32 %v5092_v55, %v1827_v3  ;;  %v2015_v14 = vmul.f32 %v5094_v37, %v1827_v3  ;;  %2109 = vmatpush.bf16.msra.mxu2 %v2092_v40  ;;  %v1812_v55 = vor.u32 1.1754944e-38, %v1811_v1  ;;  %v1273_v29 = vld [vmem:[#allocation3 + $0xa0] sm:$0xff]  ;;  %v1271_v39 = vld [vmem:[#allocation3 + $0x90] sm:$0xff]  ;;  %v1270_v7 = vld [vmem:[#allocation3 + $0x88] sm:$0xff] }
 0x6d2   : > { %2128 = vmatpush.bf16.msra.mxu3 %v2093_v60  ;;  %2048 = vst [vmem:[%s4540_s1 + $0x30] sm:$0xff] %v2016_v2  ;;  %v2086_v56 = vpack.c.bf16 %v2083_v58, %v2082_v6  ;;  %v1286_v17 = vld [vmem:[%s5541_s10] sm:$0xff]  ;;  %v1287_v30 = vld [vmem:[%s5541_s10 + $0x8] sm:$0xff]  ;;  %v1288_v31 = vld [vmem:[%s5541_s10 + $0x10] sm:$0xff] }
 0x6d3   : > { %v1803_v35 = vmul.f32 %v3779_v44, %v1802_v33  ;;  %2046 = vst [vmem:[%s4540_s1 + $0x20] sm:$0xff] %v2014_v52  ;;  %v2090_v48 = vpack.c.bf16 %v2016_v2, %v2014_v52  ;;  %v2091_v54 = vpack.c.bf16 %v2017_v34, %v2015_v14  ;;  %v1289_v40 = vld [vmem:[%s5541_s10 + $0x18] sm:$0xff]  ;;  %v1290_v60 = vld [vmem:[%s5541_s10 + $0x20] sm:$0xff]  ;;  %v1291_v57 = vld [vmem:[%s5541_s10 + $0x28] sm:$0xff] }
 0x6d4   : > { %2047 = vst [vmem:[%s4540_s1 + $0x28] sm:$0xff] %v2015_v14  ;;  %v1292_v51 = vld [vmem:[%s5541_s10 + $0x30] sm:$0xff]  ;;  %v1293_v33 = vld [vmem:[%s5541_s10 + $0x38] sm:$0xff]  ;;  %v1294_v3 = vld [vmem:[%s5541_s10 + $0x40] sm:$0xff] }
 0x6d5   : > { %v1804_v5 = vadd.f32 %v3779_v44, %v1803_v35  ;;  %2049 = vst [vmem:[%s4540_s1 + $0x38] sm:$0xff] %v2017_v34  ;;  %2110 = vmatpush.bf16.msra.mxu2 %v2090_v48  ;;  %v2074_v2 = vld [vmem:[%s4546_s23] sm:$0xff]  ;;  %v2075_v34 = vld [vmem:[%s4546_s23 + $0x8] sm:$0xff]  ;;  %v2076_v48 = vld [vmem:[%s4546_s23 + $0x10] sm:$0xff] }
 0x6d6   : > { %2129 = vmatpush.bf16.msra.mxu3 %v2091_v54  ;;  %v1295_v1 = vld [vmem:[%s5541_s10 + $0x48] sm:$0xff]  ;;  %v2077_v54 = vld [vmem:[%s4546_s23 + $0x18] sm:$0xff]  ;;  %v1300_v13 = vld [vmem:[%s5541_s10 + $0x70] sm:$0xff] }
 0x6d7   : > { %v1808_v37 = vsel %vm1807_vm5, %v3779_v44, %v1804_v5  ;;  %v1255_v44 = vld [vmem:[#allocation3 + $0x10] sm:$0xff]  ;;  %v2079_v6 = vld [vmem:[%s4546_s23 + $0x28] sm:$0xff]  ;;  %v1297_v58 = vld [vmem:[%s5541_s10 + $0x58] sm:$0xff] }
 0x6d8   : > { %v1813_v61 = vsel %vm1810_vm6, %v1812_v55, %v1808_v37  ;;  %v1296_v5 = vld [vmem:[%s5541_s10 + $0x50] sm:$0xff]  ;;  %v1299_v10 = vld [vmem:[%s5541_s10 + $0x68] sm:$0xff] }
 0x6d9   : > { %v2012_v59 = vmul.f32 %v5100_v26, %v1813_v61  ;;  %v2013_v12 = vmul.f32 %v5102_v27, %v1813_v61  ;;  %v1267_v26 = vld [vmem:[#allocation3 + $0x70] sm:$0xff]  ;;  %v1266_v27 = vld [vmem:[#allocation3 + $0x68] sm:$0xff] }
 0x6db   : > { %2044 = vst [vmem:[%s4540_s1 + $0x10] sm:$0xff] %v2012_v59  ;;  %v2088_v46 = vpack.c.bf16 %v2012_v59, %v2010_v8  ;;  %v2089_v19 = vpack.c.bf16 %v2013_v12, %v2011_v23  ;;  %v1253_v8 = vld [vmem:[#allocation3] sm:$0xff] }
 0x6dc   : > { %2045 = vst [vmem:[%s4540_s1 + $0x18] sm:$0xff] %v2013_v12  ;;  %v1269_v23 = vld [vmem:[#allocation3 + $0x80] sm:$0xff] }
 0x6dd   : > { %2111 = vmatpush.bf16.msra.mxu2 %v2088_v46  ;;  %2130 = vmatpush.bf16.msra.mxu3 %v2089_v19  ;;  %v2078_v12 = vld [vmem:[%s4546_s23 + $0x20] sm:$0xff] }
 0x6e0   : > { %2112 = vmatmul.bf16.vlgmr.msra.gmra.mxu2 %v2086_v56  ;;  %2131 = vmatmul.bf16.vlgmr.msra.gmra.mxu3 %v2086_v56  ;;  %v2080_v56 = vld [vmem:[%s4546_s23 + $0x30] sm:$0xff] }
 0x6e1   : > { %3435 = vmatpush.xpose.msk.msrb.mxu2 %vm1319_vm2, %v1268_v11  ;;  %3467 = vmatpush.xpose.msk.msrb.mxu3 %vm1319_vm2, %v1284_v16 }
 0x6e5   : > { %3436 = vmatpush.xpose.msk.msrb.mxu2 %vm1319_vm2, %v1267_v26  ;;  %3468 = vmatpush.xpose.msk.msrb.mxu3 %vm1319_vm2, %v1283_v53  ;;  %v2081_v26 = vld [vmem:[%s4546_s23 + $0x38] sm:$0xff]  ;;  %v1298_v53 = vld [vmem:[%s5541_s10 + $0x60] sm:$0xff] }
 0x6e9   : > { %3437 = vmatpush.xpose.msk.msrb.mxu2 %vm1319_vm2, %v1266_v27  ;;  %3469 = vmatpush.xpose.msk.msrb.mxu3 %vm1319_vm2, %v1282_v38 }
 0x6ed   : > { %3438 = vmatpush.xpose.msk.msrb.mxu2 %vm1319_vm2, %v1265_v36  ;;  %3470 = vmatpush.xpose.msk.msrb.mxu3 %vm1319_vm2, %v1281_v45 }
 0x6f0   : > { %2117 = vmatmul.bf16.gmra.mxu2 %v2087_v63  ;;  %2136 = vmatmul.bf16.gmra.mxu3 %v2087_v63 }
 0x6f1   : > { %3439 = vmatpush.xpose.msk.msrb.mxu2 %vm1319_vm2, %v1264_v25  ;;  %3471 = vmatpush.xpose.msk.msrb.mxu3 %vm1319_vm2, %v1280_v0  ;;  %v1301_v25 = vld [vmem:[%s5541_s10 + $0x78] sm:$0xff]  ;;  %s6586_s10 = sld [smem:[#allocation53_spill]] }
 0x6f5   : > { %3440 = vmatpush.xpose.msk.msrb.mxu2 %vm1319_vm2, %v1263_v41  ;;  %3472 = vmatpush.xpose.msk.msrb.mxu3 %vm1319_vm2, %v1279_v47 }
 0x6f7   : > { %s3046_s4 = scalar_lea.hbm %s6586_s10, %s3506_s6  ;;  %s4016_s24 = scalar_lea.hbm %s6586_s10, 1024 }
 0x6f8   : > { %s3049_s0 = sshll.u32 %s3046_s4, 4  ;;  %s3050_s0 = int_to_ptr.hbm [resolvable:$true] %s3049_s0 }
 0x6f9   : > { %3441 = vmatpush.xpose.msk.msrb.mxu2 %vm1319_vm2, %v1262_v62  ;;  %3473 = vmatpush.xpose.msk.msrb.mxu3 %vm1319_vm2, %v1278_v50  ;;  %s4010_s29 = sshra.s32 %s3050_s0, 4  ;;  %s4011_s29 = int_to_ptr.hbm [resolvable:$true] %s4010_s29 }
 0x6fa   : > { %s4012_s18 = scalar_lea.hbm %s4011_s29, 256  ;;  %p4017_p1 = scmp.lt.s32.totalorder %s4011_s29, %s6586_s10 }
 0x6fb   : > { %p4013_p13 = scmp.ne.s32.totalorder %s4011_s29, %s4012_s18  ;;  %p4018_p3 = scmp.lt.s32.totalorder %s4016_s24, %s4012_s18 }
 0x6fd   : > { %3442 = vmatpush.xpose.msk.msrb.mxu2 %vm1319_vm2, %v1261_v49  ;;  %3474 = vmatpush.xpose.msk.msrb.mxu3 %vm1319_vm2, %v1277_v32  ;;  %p4014_p5 = pnand %p4013_p13, %p4418_p4  ;;  %p4019_p8 = por %p4018_p3, %p4017_p1 }
 0x6ff   : > { %p4015_p6 = pneg %p4014_p5 }
 0x701   : > { %3443 = vmatpush.xpose.msk.msrb.mxu2 %vm1319_vm2, %v1260_v28  ;;  %3475 = vmatpush.xpose.msk.msrb.mxu3 %vm1319_vm2, %v1276_v22  ;;  %p4020_p9 = pnand %p4019_p8, %p4015_p6 }
 0x705   : > { %3444 = vmatpush.xpose.msk.msrb.mxu2 %vm1319_vm2, %v1259_v9  ;;  %3476 = vmatpush.xpose.msk.msrb.mxu3 %vm1319_vm2, %v1275_v15 }
 0x709   : > { %3445 = vmatpush.xpose.msk.msrb.mxu2 %vm1319_vm2, %v1258_v24  ;;  %3477 = vmatpush.xpose.msk.msrb.mxu3 %vm1319_vm2, %v1274_v18 }
 0x70d   : > { %3446 = vmatpush.xpose.msk.msrb.mxu2 %vm1319_vm2, %v1257_v20  ;;  %3478 = vmatpush.xpose.msk.msrb.mxu3 %vm1319_vm2, %v1273_v29 }
 0x711   : > { %3447 = vmatpush.xpose.msk.msrb.mxu2 %vm1319_vm2, %v1256_v21  ;;  %3479 = vmatpush.xpose.msk.msrb.mxu3 %vm1319_vm2, %v1272_v43 }
 0x715   : > { %3448 = vmatpush.xpose.msk.msrb.mxu2 %vm1319_vm2, %v1255_v44  ;;  %3480 = vmatpush.xpose.msk.msrb.mxu3 %vm1319_vm2, %v1271_v39 }
 0x719   : > { %3449 = vmatpush.xpose.msk.msrb.mxu2 %vm1319_vm2, %v1254_v42  ;;  %3481 = vmatpush.xpose.msk.msrb.mxu3 %vm1319_vm2, %v1270_v7 }
 0x71d   : > { %3450 = vmatpush.xpose.msk.msrb.mxu2 %vm1319_vm2, %v1253_v8  ;;  %3482 = vmatpush.xpose.msk.msrb.mxu3 %vm1319_vm2, %v1269_v23 }
 0x720   : > { %3451 = vmatmul.msk.f32.vlgmr.msrb.gmra.mxu2 %vm1319_vm2, %v1286_v17  ;;  %3483 = vmatmul.msk.f32.vlgmr.msrb.gmra.mxu3 %vm1319_vm2, %v1286_v17 }
 0x728   : > { %3452 = vmatmul.msk.f32.gmra.mxu2 %vm1319_vm2, %v1287_v30  ;;  %3484 = vmatmul.msk.f32.gmra.mxu3 %vm1319_vm2, %v1287_v30 }
 0x730   : > { %3453 = vmatmul.msk.f32.gmra.mxu2 %vm1319_vm2, %v1288_v31  ;;  %3485 = vmatmul.msk.f32.gmra.mxu3 %vm1319_vm2, %v1288_v31 }
 0x738   : > { %3454 = vmatmul.msk.f32.gmra.mxu2 %vm1319_vm2, %v1289_v40  ;;  %3486 = vmatmul.msk.f32.gmra.mxu3 %vm1319_vm2, %v1289_v40 }
 0x740   : > { %3455 = vmatmul.msk.f32.gmra.mxu2 %vm1319_vm2, %v1290_v60  ;;  %3487 = vmatmul.msk.f32.gmra.mxu3 %vm1319_vm2, %v1290_v60 }
 0x748   : > { %3456 = vmatmul.msk.f32.gmra.mxu2 %vm1319_vm2, %v1291_v57  ;;  %3488 = vmatmul.msk.f32.gmra.mxu3 %vm1319_vm2, %v1291_v57 }
 0x750   : > { %3457 = vmatmul.msk.f32.gmra.mxu2 %vm1319_vm2, %v1292_v51  ;;  %3489 = vmatmul.msk.f32.gmra.mxu3 %vm1319_vm2, %v1292_v51 }
 0x758   : > { %3458 = vmatmul.msk.f32.gmra.mxu2 %vm1319_vm2, %v1293_v33  ;;  %3490 = vmatmul.msk.f32.gmra.mxu3 %vm1319_vm2, %v1293_v33 }
 0x760   : > { %3459 = vmatmul.msk.f32.gmra.mxu2 %vm1319_vm2, %v1294_v3  ;;  %3491 = vmatmul.msk.f32.gmra.mxu3 %vm1319_vm2, %v1294_v3 }
 0x763   : > { %v2113_v52 = vpop.f32.mrf.mxu2  ;;  %v2132_v14 = vpop.f32.mrf.mxu3 }
 0x764   : > { %v2142_v35 = vadd.f32 %v2113_v52, %v2074_v2  ;;  %v2143_v4 = vadd.f32 %v2132_v14, %v2075_v34 }
 0x766   : > { %2150 = vst [vmem:[%s4546_s23] sm:$0xff] %v2142_v35 }
 0x767   : > { %2151 = vst [vmem:[%s4546_s23 + $0x8] sm:$0xff] %v2143_v4 }
 0x768   : > { %3460 = vmatmul.msk.f32.gmra.mxu2 %vm1319_vm2, %v1295_v1  ;;  %3492 = vmatmul.msk.f32.gmra.mxu3 %vm1319_vm2, %v1295_v1 }
 0x76b   : > { %v2115_v55 = vpop.f32.mrf.mxu2  ;;  %v2134_v37 = vpop.f32.mrf.mxu3 }
 0x76c   : > { %v2144_v61 = vadd.f32 %v2115_v55, %v2076_v48  ;;  %v2145_v59 = vadd.f32 %v2134_v37, %v2077_v54 }
 0x76e   : > { %2152 = vst [vmem:[%s4546_s23 + $0x10] sm:$0xff] %v2144_v61 }
 0x76f   : > { %2153 = vst [vmem:[%s4546_s23 + $0x18] sm:$0xff] %v2145_v59 }
 0x770   : > { %3461 = vmatmul.msk.f32.gmra.mxu2 %vm1319_vm2, %v1296_v5  ;;  %3493 = vmatmul.msk.f32.gmra.mxu3 %vm1319_vm2, %v1296_v5 }
 0x773   : > { %v2118_v46 = vpop.f32.mrf.mxu2  ;;  %v2137_v19 = vpop.f32.mrf.mxu3 }
 0x774   : > { %v2146_v11 = vadd.f32 %v2118_v46, %v2078_v12  ;;  %v2147_v16 = vadd.f32 %v2137_v19, %v2079_v6 }
 0x776   : > { %2154 = vst [vmem:[%s4546_s23 + $0x20] sm:$0xff] %v2146_v11 }
 0x777   : > { %2155 = vst [vmem:[%s4546_s23 + $0x28] sm:$0xff] %v2147_v16 }
 0x778   : > { %3462 = vmatmul.msk.f32.gmra.mxu2 %vm1319_vm2, %v1297_v58  ;;  %3494 = vmatmul.msk.f32.gmra.mxu3 %vm1319_vm2, %v1297_v58 }
 0x77b   : > { %v2120_v27 = vpop.f32.mrf.mxu2  ;;  %v2139_v38 = vpop.f32.mrf.mxu3 }
 0x77c   : > { %v2148_v36 = vadd.f32 %v2120_v27, %v2080_v56  ;;  %v2149_v45 = vadd.f32 %v2139_v38, %v2081_v26 }
 0x77e   : > { %2156 = vst [vmem:[%s4546_s23 + $0x30] sm:$0xff] %v2148_v36 }
 0x77f   : > { %2157 = vst [vmem:[%s4546_s23 + $0x38] sm:$0xff] %v2149_v45 }
 0x780   : > { %3463 = vmatmul.msk.f32.gmra.mxu2 %vm1319_vm2, %v1298_v53  ;;  %3495 = vmatmul.msk.f32.gmra.mxu3 %vm1319_vm2, %v1298_v53 }
 0x788   : > { %3464 = vmatmul.msk.f32.gmra.mxu2 %vm1319_vm2, %v1299_v10  ;;  %3496 = vmatmul.msk.f32.gmra.mxu3 %vm1319_vm2, %v1299_v10 }
 0x790   : > { %3465 = vmatmul.msk.f32.gmra.mxu2 %vm1319_vm2, %v1300_v13  ;;  %3497 = vmatmul.msk.f32.gmra.mxu3 %vm1319_vm2, %v1300_v13 }
 0x798   : > { %3466 = vmatmul.msk.f32.gmra.mxu2 %vm1319_vm2, %v1301_v25  ;;  %3498 = vmatmul.msk.f32.gmra.mxu3 %vm1319_vm2, %v1301_v25 }
 0x7a3   : > { %v5607_v0 = vpop.f32.mrf.mxu2  ;;  %v5609_v63 = vpop.f32.mrf.mxu3 }
 0x7a4   : > { %v2432_v48 = vmax.f32 %v5607_v0, %v5609_v63 }
 0x7ab   : > { %v5611_v41 = vpop.f32.mrf.mxu2  ;;  %v5613_v47 = vpop.f32.mrf.mxu3 }
 0x7ac   : > { %v2435_v59 = vmax.f32 %v5611_v41, %v5613_v47 }
 0x7b3   : > { %v5615_v62 = vpop.f32.mrf.mxu2  ;;  %v5617_v50 = vpop.f32.mrf.mxu3 }
 0x7b4   : > { %v2438_v37 = vmax.f32 %v5615_v62, %v5617_v50 }
 0x7bb   : > { %v5619_v49 = vpop.f32.mrf.mxu2  ;;  %v5621_v32 = vpop.f32.mrf.mxu3 }
 0x7bc   : > { %v2441_v12 = vmax.f32 %v5619_v49, %v5621_v32 }
 0x7c3   : > { %v5623_v28 = vpop.f32.mrf.mxu2  ;;  %v5625_v22 = vpop.f32.mrf.mxu3 }
 0x7c4   : > { %v2444_v61 = vmax.f32 %v5623_v28, %v5625_v22 }
 0x7cb   : > { %v5627_v9 = vpop.f32.mrf.mxu2  ;;  %v5629_v15 = vpop.f32.mrf.mxu3 }
 0x7cc   : > { %v2447_v1 = vmax.f32 %v5627_v9, %v5629_v15 }
 0x7d3   : > { %v5631_v24 = vpop.f32.mrf.mxu2  ;;  %v5633_v18 = vpop.f32.mrf.mxu3 }
 0x7d4   : > { %v2450_v33 = vmax.f32 %v5631_v24, %v5633_v18 }
 0x7db   : > { %v5635_v20 = vpop.f32.mrf.mxu2  ;;  %v5637_v29 = vpop.f32.mrf.mxu3 }
 0x7dc   : > { %v2453_v5 = vmax.f32 %v5635_v20, %v5637_v29 }
 0x7e3   : > { %v5639_v21 = vpop.f32.mrf.mxu2  ;;  %v5641_v43 = vpop.f32.mrf.mxu3 }
 0x7e4   : > { %v2456_v54 = vmax.f32 %v5639_v21, %v5641_v43 }
 0x7eb   : > { %v5643_v44 = vpop.f32.mrf.mxu2  ;;  %v5645_v39 = vpop.f32.mrf.mxu3 }
 0x7ec   : > { %v2459_v55 = vmax.f32 %v5643_v44, %v5645_v39 }
 0x7f3   : > { %v2349_v42 = vpop.f32.mrf.mxu2  ;;  %v2414_v7 = vpop.f32.mrf.mxu3 }
 0x7f4   : > { %v2462_v8 = vmax.f32 %v2349_v42, %v2414_v7 }
 0x7f6   : > { %2463 = vmax.xlane.f32.xlu0 %v2462_v8 }
 0x7fb   : > { %v2352_v23 = vpop.f32.mrf.mxu2  ;;  %v2417_v17 = vpop.f32.mrf.mxu3 }
 0x7fc   : > { %v2465_v30 = vmax.f32 %v2352_v23, %v2417_v17 }
 0x7fe   : > { %2466 = vmax.xlane.f32.xlu1 %v2465_v30 }
 0x803   : > { %v2355_v31 = vpop.f32.mrf.mxu2  ;;  %v2420_v40 = vpop.f32.mrf.mxu3 }
 0x804   : > { %v2468_v60 = vmax.f32 %v2355_v31, %v2420_v40 }
 0x806   : > { %2469 = vmax.xlane.f32.xlu1 %v2468_v60 }
 0x80b   : > { %v5647_v57 = vpop.f32.mrf.mxu2  ;;  %v5649_v51 = vpop.f32.mrf.mxu3 }
 0x80c   : > { %v2471_v3 = vmax.f32 %v5647_v57, %v5649_v51 }
 0x80e   : > { %2451 = vmax.xlane.f32.xlu1 %v2450_v33  ;;  %2472 = vmax.xlane.f32.xlu2 %v2471_v3 }
 0x813   : > { %v5655_v2 = vpop.f32.mrf.mxu2  ;;  %v5657_v34 = vpop.f32.mrf.mxu3 }
 0x814   : > { %v2474_v52 = vmax.f32 %v5655_v2, %v5657_v34 }
 0x816   : > { %2448 = vmax.xlane.f32.xlu1 %v2447_v1  ;;  %2475 = vmax.xlane.f32.xlu2 %v2474_v52 }
 0x81b   : > { %v5663_v14 = vpop.f32.mrf.mxu2  ;;  %v5665_v35 = vpop.f32.mrf.mxu3 }
 0x81c   : > { %v2477_v4 = vmax.f32 %v5663_v14, %v5665_v35 }
 0x81e   : > { %2433 = vmax.xlane.f32.xlu1 %v2432_v48  ;;  %2457 = vmax.xlane.f32.xlu2 %v2456_v54 }
 0x81f   : > { %2478 = vmax.xlane.f32.xlu0 %v2477_v4 }
 0x826   : > { %2454 = vmax.xlane.f32.xlu2 %v2453_v5 }
 0x827   : > { %2460 = vmax.xlane.f32.xlu0 %v2459_v55 }
 0x82e   : > { %2439 = vmax.xlane.f32.xlu2 %v2438_v37 }
 0x82f   : > { %2445 = vmax.xlane.f32.xlu0 %v2444_v61 }
 0x836   : > { %2436 = vmax.xlane.f32.xlu2 %v2435_v59 }
 0x837   : > { %2442 = vmax.xlane.f32.xlu0 %v2441_v12 }
 0x869   : > { %v2464_v6 = vpop.xlane.xlu0 %2463 }
 0x86a   : > { %v2500_v58 = vsub.f32 %v2349_v42, %v2464_v6  ;;  %v2501_v46 = vsub.f32 %v2414_v7, %v2464_v6 }
 0x86c   : > { %v2552_v19 = vmul.f32 1.442695, %v2500_v58  ;;  %v2554_v11 = vmul.f32 1.442695, %v2501_v46 }
 0x86e   : > { %3780 = vpow2.f32 %v2552_v19 }
 0x86f   : > { %3782 = vpow2.f32 %v2554_v11 }
 0x871   : > { %v2467_v16 = vpop.xlane.xlu1 %2466 }
 0x872   : > { %v2502_v56 = vsub.f32 %v2352_v23, %v2467_v16  ;;  %v2503_v26 = vsub.f32 %v2417_v17, %v2467_v16 }
 0x874   : > { %v5685_v53 = vpop.eup %3780  ;;  %v2556_v27 = vmul.f32 1.442695, %v2502_v56  ;;  %v2558_v38 = vmul.f32 1.442695, %v2503_v26 }
 0x875   : > { %v5687_v36 = vpop.eup %3782 }
 0x876   : > { %3784 = vpow2.f32 %v2556_v27  ;;  %v2606_v45 = vadd.f32 %v5687_v36, %v5685_v53 }
 0x877   : > { %3786 = vpow2.f32 %v2558_v38 }
 0x878   : > { %2607 = vadd.xlane.f32.xlu1 %v2606_v45 }
 0x879   : > { %v2470_v10 = vpop.xlane.xlu1 %2469 }
 0x87a   : > { %v2504_v13 = vsub.f32 %v2355_v31, %v2470_v10  ;;  %v2505_v25 = vsub.f32 %v2420_v40, %v2470_v10 }
 0x87c   : > { %v5691_v42 = vpop.eup %3784  ;;  %v2560_v7 = vmul.f32 1.442695, %v2504_v13  ;;  %v2562_v8 = vmul.f32 1.442695, %v2505_v25 }
 0x87d   : > { %v5693_v23 = vpop.eup %3786 }
 0x87e   : > { %3788 = vpow2.f32 %v2560_v7  ;;  %v2609_v17 = vadd.f32 %v5693_v23, %v5691_v42 }
 0x87f   : > { %3790 = vpow2.f32 %v2562_v8 }
 0x880   : > { %2610 = vadd.xlane.f32.xlu2 %v2609_v17 }
 0x881   : > { %v2452_v30 = vpop.xlane.xlu1 %2451  ;;  %v2473_v60 = vpop.xlane.xlu2 %2472 }
 0x882   : > { %v2492_v33 = vsub.f32 %v5631_v24, %v2452_v30  ;;  %v2493_v3 = vsub.f32 %v5633_v18, %v2452_v30  ;;  %v2506_v31 = vsub.f32 %v5647_v57, %v2473_v60  ;;  %v2507_v40 = vsub.f32 %v5649_v51, %v2473_v60 }
 0x884   : > { %v5701_v1 = vpop.eup %3788  ;;  %v2536_v52 = vmul.f32 1.442695, %v2492_v33  ;;  %v2538_v4 = vmul.f32 1.442695, %v2493_v3  ;;  %v2564_v48 = vmul.f32 1.442695, %v2506_v31 }
 0x885   : > { %v5703_v54 = vpop.eup %3790  ;;  %v2566_v5 = vmul.f32 1.442695, %v2507_v40 }
 0x886   : > { %3792 = vpow2.f32 %v2536_v52  ;;  %v2612_v55 = vadd.f32 %v5703_v54, %v5701_v1 }
 0x887   : > { %3794 = vpow2.f32 %v2538_v4 }
 0x888   : > { %3796 = vpow2.f32 %v2564_v48  ;;  %2613 = vadd.xlane.f32.xlu2 %v2612_v55 }
 0x889   : > { %3798 = vpow2.f32 %v2566_v5  ;;  %v2449_v24 = vpop.xlane.xlu1 %2448  ;;  %v2476_v18 = vpop.xlane.xlu2 %2475 }
 0x88a   : > { %v2490_v57 = vsub.f32 %v5627_v9, %v2449_v24  ;;  %v2491_v51 = vsub.f32 %v5629_v15, %v2449_v24  ;;  %v2508_v37 = vsub.f32 %v5655_v2, %v2476_v18  ;;  %v2509_v61 = vsub.f32 %v5657_v34, %v2476_v18 }
 0x88c   : > { %v5711_v59 = vpop.eup %3792  ;;  %v2532_v12 = vmul.f32 1.442695, %v2490_v57  ;;  %v2534_v6 = vmul.f32 1.442695, %v2491_v51  ;;  %v2568_v58 = vmul.f32 1.442695, %v2508_v37 }
 0x88d   : > { %v5713_v46 = vpop.eup %3794  ;;  %v2570_v19 = vmul.f32 1.442695, %v2509_v61 }
 0x88e   : > { %v5715_v11 = vpop.eup %3796  ;;  %3800 = vpow2.f32 %v2532_v12  ;;  %v2594_v9 = vadd.f32 %v5713_v46, %v5711_v59 }
 0x88f   : > { %v5719_v16 = vpop.eup %3798  ;;  %3802 = vpow2.f32 %v2534_v6 }
 0x890   : > { %3804 = vpow2.f32 %v2568_v58  ;;  %2595 = vadd.xlane.f32.xlu2 %v2594_v9  ;;  %v2615_v15 = vadd.f32 %v5719_v16, %v5715_v11 }
 0x891   : > { %3806 = vpow2.f32 %v2570_v19  ;;  %v2434_v2 = vpop.xlane.xlu1 %2433  ;;  %v2458_v34 = vpop.xlane.xlu2 %2457 }
 0x892   : > { %2616 = vadd.xlane.f32.xlu0 %v2615_v15  ;;  %v2480_v56 = vsub.f32 %v5607_v0, %v2434_v2  ;;  %v2481_v26 = vsub.f32 %v5609_v63, %v2434_v2  ;;  %v2496_v27 = vsub.f32 %v5639_v21, %v2458_v34  ;;  %v2497_v38 = vsub.f32 %v5641_v43, %v2458_v34  ;;  %v2479_v45 = vpop.xlane.xlu0 %2478 }
 0x893   : > { %v2510_v10 = vsub.f32 %v5663_v14, %v2479_v45  ;;  %v2511_v13 = vsub.f32 %v5665_v35, %v2479_v45 }
 0x894   : > { %v5729_v25 = vpop.eup %3800  ;;  %v2512_v7 = vmul.f32 1.442695, %v2480_v56  ;;  %v2514_v8 = vmul.f32 1.442695, %v2481_v26  ;;  %v2544_v17 = vmul.f32 1.442695, %v2496_v27 }
 0x895   : > { %v5731_v30 = vpop.eup %3802  ;;  %v2546_v60 = vmul.f32 1.442695, %v2497_v38  ;;  %v2572_v63 = vmul.f32 1.442695, %v2510_v10  ;;  %v2574_v14 = vmul.f32 1.442695, %v2511_v13 }
 0x896   : > { %v5733_v0 = vpop.eup %3804  ;;  %3808 = vpow2.f32 %v2512_v7  ;;  %v2591_v21 = vadd.f32 %v5731_v30, %v5729_v25 }
 0x897   : > { %v5737_v43 = vpop.eup %3806  ;;  %3810 = vpow2.f32 %v2514_v8 }
 0x898   : > { %3812 = vpow2.f32 %v2544_v17  ;;  %2592 = vadd.xlane.f32.xlu2 %v2591_v21  ;;  %v2618_v35 = vadd.f32 %v5737_v43, %v5733_v0 }
 0x899   : > { %3814 = vpow2.f32 %v2546_v60  ;;  %v2455_v33 = vpop.xlane.xlu2 %2454 }
 0x89a   : > { %3816 = vpow2.f32 %v2572_v63  ;;  %2619 = vadd.xlane.f32.xlu0 %v2618_v35  ;;  %v2494_v3 = vsub.f32 %v5635_v20, %v2455_v33  ;;  %v2495_v31 = vsub.f32 %v5637_v29, %v2455_v33  ;;  %v2461_v40 = vpop.xlane.xlu0 %2460 }
 0x89b   : > { %3818 = vpow2.f32 %v2574_v14  ;;  %v2498_v52 = vsub.f32 %v5643_v44, %v2461_v40  ;;  %v2499_v4 = vsub.f32 %v5645_v39, %v2461_v40 }
 0x89c   : > { %v5745_v48 = vpop.eup %3808  ;;  %v2540_v5 = vmul.f32 1.442695, %v2494_v3  ;;  %v2542_v55 = vmul.f32 1.442695, %v2495_v31 }
 0x89d   : > { %v5747_v24 = vpop.eup %3810  ;;  %v2548_v18 = vmul.f32 1.442695, %v2498_v52  ;;  %v2550_v57 = vmul.f32 1.442695, %v2499_v4 }
 0x89e   : > { %v5749_v51 = vpop.eup %3812  ;;  %3820 = vpow2.f32 %v2540_v5  ;;  %v2576_v20 = vadd.f32 %v5747_v24, %v5745_v48 }
 0x89f   : > { %v5753_v29 = vpop.eup %3814  ;;  %3822 = vpow2.f32 %v2542_v55 }
 0x8a0   : > { %v5755_v44 = vpop.eup %3816  ;;  %3824 = vpow2.f32 %v2548_v18  ;;  %2577 = vadd.xlane.f32.xlu2 %v2576_v20  ;;  %v2600_v39 = vadd.f32 %v5753_v29, %v5749_v51 }
 0x8a1   : > { %v5759_v37 = vpop.eup %3818  ;;  %3826 = vpow2.f32 %v2550_v57  ;;  %v2440_v61 = vpop.xlane.xlu2 %2439 }
 0x8a2   : > { %2601 = vadd.xlane.f32.xlu0 %v2600_v39  ;;  %v2621_v12 = vadd.f32 %v5759_v37, %v5755_v44  ;;  %v2484_v6 = vsub.f32 %v5615_v62, %v2440_v61  ;;  %v2485_v58 = vsub.f32 %v5617_v50, %v2440_v61  ;;  %v2446_v19 = vpop.xlane.xlu0 %2445 }
 0x8a3   : > { %v2488_v9 = vsub.f32 %v5623_v28, %v2446_v19  ;;  %v2489_v15 = vsub.f32 %v5625_v22, %v2446_v19 }
 0x8a4   : > { %v5767_v2 = vpop.eup %3820  ;;  %2622 = vadd.xlane.f32.xlu1 %v2621_v12  ;;  %v2520_v34 = vmul.f32 1.442695, %v2484_v6  ;;  %v2522_v56 = vmul.f32 1.442695, %v2485_v58 }
 0x8a5   : > { %v5769_v26 = vpop.eup %3822  ;;  %v2528_v27 = vmul.f32 1.442695, %v2488_v9  ;;  %v2530_v38 = vmul.f32 1.442695, %v2489_v15 }
 0x8a6   : > { %v5771_v45 = vpop.eup %3824  ;;  %3828 = vpow2.f32 %v2520_v34  ;;  %v2597_v62 = vadd.f32 %v5769_v26, %v5767_v2 }
 0x8a7   : > { %v5775_v50 = vpop.eup %3826  ;;  %3830 = vpow2.f32 %v2522_v56 }
 0x8a8   : > { %3832 = vpow2.f32 %v2528_v27  ;;  %v2603_v28 = vadd.f32 %v5775_v50, %v5771_v45 }
 0x8a9   : > { %3834 = vpow2.f32 %v2530_v38  ;;  %v2437_v22 = vpop.xlane.xlu2 %2436 }
 0x8aa   : > { %2598 = vadd.xlane.f32.xlu0 %v2597_v62  ;;  %v2482_v10 = vsub.f32 %v5611_v41, %v2437_v22  ;;  %v2483_v13 = vsub.f32 %v5613_v47, %v2437_v22  ;;  %v2443_v7 = vpop.xlane.xlu0 %2442 }
 0x8ab   : > { %v2486_v8 = vsub.f32 %v5619_v49, %v2443_v7  ;;  %v2487_v17 = vsub.f32 %v5621_v32, %v2443_v7 }
 0x8ac   : > { %v5783_v60 = vpop.eup %3828  ;;  %2604 = vadd.xlane.f32.xlu1 %v2603_v28  ;;  %v2516_v63 = vmul.f32 1.442695, %v2482_v10  ;;  %v2518_v21 = vmul.f32 1.442695, %v2483_v13 }
 0x8ad   : > { %v5785_v14 = vpop.eup %3830  ;;  %v2524_v35 = vmul.f32 1.442695, %v2486_v8  ;;  %v2526_v33 = vmul.f32 1.442695, %v2487_v17 }
 0x8ae   : > { %v5787_v3 = vpop.eup %3832  ;;  %3836 = vpow2.f32 %v2516_v63  ;;  %v2582_v41 = vadd.f32 %v5785_v14, %v5783_v60 }
 0x8af   : > { %v5791_v47 = vpop.eup %3834  ;;  %3838 = vpow2.f32 %v2518_v21 }
 0x8b0   : > { %3840 = vpow2.f32 %v2524_v35  ;;  %v2588_v49 = vadd.f32 %v5791_v47, %v5787_v3 }
 0x8b1   : > { %3842 = vpow2.f32 %v2526_v33 }
 0x8b2   : > { %2583 = vadd.xlane.f32.xlu0 %v2582_v41 }
 0x8b4   : > { %v5795_v32 = vpop.eup %3836  ;;  %2589 = vadd.xlane.f32.xlu1 %v2588_v49 }
 0x8b5   : > { %v5797_v31 = vpop.eup %3838 }
 0x8b6   : > { %v5799_v40 = vpop.eup %3840  ;;  %v2579_v52 = vadd.f32 %v5797_v31, %v5795_v32 }
 0x8b7   : > { %6537 = vst [vmem:[#allocation42_spill] sm:$0xff] %v5799_v40  ;;  %v5803_v4 = vpop.eup %3842 }
 0x8b8   : > { %6538 = vst [vmem:[#allocation43_spill] sm:$0xff] %v5803_v4  ;;  %v2585_v5 = vadd.f32 %v5803_v4, %v5799_v40 }
 0x8ba   : > { %2580 = vadd.xlane.f32.xlu0 %v2579_v52 }
 0x8bc   : > { %2586 = vadd.xlane.f32.xlu1 %v2585_v5 }
 0x8eb   : > { %v2608_v55 = vpop.xlane.xlu1 %2607 }
 0x8ec   : > { %3844 = vrcp.f32 %v2608_v55  ;;  %v2775_v12 = vand.u32 2147483648, %v2608_v55  ;;  %v2773_v6 = vand.u32 2147483647, %v2608_v55  ;;  %vm2769_vm7 = vweird.f32 %v2608_v55 }
 0x8ee   : > { %v2776_v56 = vor.u32 1.1754944e-38, %v2775_v12  ;;  %vm2774_vm10 = vcmp.eq.f32.partialorder %v2773_v6, 8.507059e+37 }
 0x8f2   : > { %v3845_v18 = vpop.eup %3844 }
 0x8f3   : > { %v2765_v57 = vmul.f32 %v3845_v18, %v2608_v55  ;;  %v2611_v20 = vpop.xlane.xlu2 %2610  ;;  %vm2770_vm2 = vweird.f32 %v3845_v18 }
 0x8f4   : > { %3846 = vrcp.f32 %v2611_v20  ;;  %vm2771_vm9 = vmor %vm2769_vm7, %vm2770_vm2  ;;  %v2789_v62 = vand.u32 2147483648, %v2611_v20  ;;  %v2787_v13 = vand.u32 2147483647, %v2611_v20  ;;  %vm2783_vm11 = vweird.f32 %v2611_v20 }
 0x8f5   : > { %v2766_v39 = vsub.f32 1.0, %v2765_v57 }
 0x8f6   : > { %v2790_v17 = vor.u32 1.1754944e-38, %v2789_v62  ;;  %vm2788_vm13 = vcmp.eq.f32.partialorder %v2787_v13, 8.507059e+37 }
 0x8f7   : > { %v2767_v61 = vmul.f32 %v3845_v18, %v2766_v39 }
 0x8f9   : > { %v2768_v58 = vadd.f32 %v3845_v18, %v2767_v61 }
 0x8fa   : > { %v3847_v19 = vpop.eup %3846 }
 0x8fb   : > { %v2779_v9 = vmul.f32 %v3847_v19, %v2611_v20  ;;  %v2614_v15 = vpop.xlane.xlu2 %2613  ;;  %v2772_v34 = vsel %vm2771_vm9, %v3845_v18, %v2768_v58  ;;  %vm2784_vm8 = vweird.f32 %v3847_v19 }
 0x8fc   : > { %3848 = vrcp.f32 %v2614_v15  ;;  %v2777_v38 = vsel %vm2774_vm10, %v2776_v56, %v2772_v34  ;;  %vm2785_vm12 = vmor %vm2783_vm11, %vm2784_vm8  ;;  %v2803_v52 = vand.u32 2147483648, %v2614_v15  ;;  %v2801_v55 = vand.u32 2147483647, %v2614_v15 }
 0x8fd   : > { %v2780_v27 = vsub.f32 1.0, %v2779_v9  ;;  %v5808_v28 = vmul.f32 %v5685_v53, %v2777_v38  ;;  %v5811_v22 = vmul.f32 %v5687_v36, %v2777_v38  ;;  %vm2797_vm15 = vweird.f32 %v2614_v15 }
 0x8fe   : > { %v2804_v20 = vor.u32 1.1754944e-38, %v2803_v52  ;;  %vm2802_vm1 = vcmp.eq.f32.partialorder %v2801_v55, 8.507059e+37 }
 0x8ff   : > { %v2781_v10 = vmul.f32 %v3847_v19, %v2780_v27  ;;  %2900 = vst [vmem:[%s4542_s5 + $0xa0] sm:$0xff] %v5808_v28 }
 0x900   : > { %2901 = vst [vmem:[%s4542_s5 + $0xa8] sm:$0xff] %v5811_v22 }
 0x901   : > { %v2782_v7 = vadd.f32 %v3847_v19, %v2781_v10 }
 0x902   : > { %v3849_v8 = vpop.eup %3848 }
 0x903   : > { %v2793_v63 = vmul.f32 %v3849_v8, %v2614_v15  ;;  %v5817_v53 = vpop.xlane.xlu2 %2595  ;;  %v2786_v21 = vsel %vm2785_vm12, %v3847_v19, %v2782_v7  ;;  %vm2798_vm14 = vweird.f32 %v3849_v8 }
 0x904   : > { %3850 = vrcp.f32 %v5817_v53  ;;  %v2791_v36 = vsel %vm2788_vm13, %v2790_v17, %v2786_v21  ;;  %vm2799_vm0 = vmor %vm2797_vm15, %vm2798_vm14  ;;  %v2717_v15 = vand.u32 2147483647, %v5817_v53  ;;  %vm2713_vm3 = vweird.f32 %v5817_v53 }
 0x905   : > { %v2794_v35 = vsub.f32 1.0, %v2793_v63  ;;  %v2617_v33 = vpop.xlane.xlu0 %2616  ;;  %v5821_v41 = vmul.f32 %v5691_v42, %v2791_v36  ;;  %v5824_v49 = vmul.f32 %v5693_v23, %v2791_v36  ;;  %v2719_v62 = vand.u32 2147483648, %v5817_v53 }
 0x906   : > { %3852 = vrcp.f32 %v2617_v33  ;;  %v2815_v27 = vand.u32 2147483647, %v2617_v33  ;;  %vm2811_vm5 = vweird.f32 %v2617_v33  ;;  %vm5860_vm6 = vcmp.eq.f32.partialorder %v2717_v15, 8.507059e+37 }
 0x907   : > { %v2795_v5 = vmul.f32 %v3849_v8, %v2794_v35  ;;  %2902 = vst [vmem:[%s4542_s5 + $0xb0] sm:$0xff] %v5821_v41 }
 0x908   : > { %2903 = vst [vmem:[%s4542_s5 + $0xb8] sm:$0xff] %v5824_v49  ;;  %vm5866_vm2 = vcmp.eq.f32.partialorder %v2815_v27, 8.507059e+37 }
 0x909   : > { %v2796_v18 = vadd.f32 %v3849_v8, %v2795_v5 }
 0x90a   : > { %v5830_v57 = vpop.eup %3850 }
 0x90b   : > { %v2709_v42 = vmul.f32 %v5830_v57, %v5817_v53  ;;  %v5834_v23 = vpop.xlane.xlu2 %2592  ;;  %v2800_v39 = vsel %vm2799_vm0, %v3849_v8, %v2796_v18  ;;  %vm2714_vm7 = vweird.f32 %v5830_v57 }
 0x90c   : > { %v3853_v61 = vpop.eup %3852  ;;  %3854 = vrcp.f32 %v5834_v23  ;;  %v2805_v12 = vsel %vm2802_vm1, %v2804_v20, %v2800_v39  ;;  %v2720_v39 = vor.u32 1.1754944e-38, %v2719_v62  ;;  %vm5889_vm8 = vmor %vm2713_vm3, %vm2714_vm7 }
 0x90d   : > { %v2710_v6 = vsub.f32 1.0, %v2709_v42  ;;  %v2807_v58 = vmul.f32 %v3853_v61, %v2617_v33  ;;  %v5837_v19 = vpop.xlane.xlu0 %2619  ;;  %v5840_v9 = vmul.f32 %v5701_v1, %v2805_v12  ;;  %v5848_v38 = vmul.f32 %v5703_v54, %v2805_v12 }
 0x90e   : > { %3856 = vrcp.f32 %v5837_v19  ;;  %v2817_v1 = vand.u32 2147483648, %v2617_v33  ;;  %vm2812_vm4 = vweird.f32 %v3853_v61  ;;  %v2831_v52 = vand.u32 2147483648, %v5837_v19 }
 0x90f   : > { %v2711_v34 = vmul.f32 %v5830_v57, %v2710_v6  ;;  %v2808_v56 = vsub.f32 1.0, %v2807_v58  ;;  %2904 = vst [vmem:[%s4542_s5 + $0xc0] sm:$0xff] %v5840_v9  ;;  %v2829_v5 = vand.u32 2147483647, %v5837_v19  ;;  %vm2813_vm9 = vmor %vm2811_vm5, %vm2812_vm4  ;;  %v2705_v12 = vand.u32 2147483648, %v5834_v23 }
 0x910   : > { %2905 = vst [vmem:[%s4542_s5 + $0xc8] sm:$0xff] %v5848_v38  ;;  %v2818_v42 = vor.u32 1.1754944e-38, %v2817_v1  ;;  %vm2825_vm10 = vweird.f32 %v5837_v19  ;;  %vm2699_vm5 = vweird.f32 %v5834_v23 }
 0x911   : > { %v2809_v10 = vmul.f32 %v3853_v61, %v2808_v56  ;;  %v2712_v36 = vadd.f32 %v5830_v57, %v2711_v34  ;;  %vm5902_vm11 = vcmp.eq.f32.partialorder %v2829_v5, 8.507059e+37 }
 0x912   : > { %v5854_v13 = vpop.eup %3854 }
 0x913   : > { %v5864_v17 = vpop.xlane.xlu2 %2577  ;;  %v2810_v63 = vadd.f32 %v3853_v61, %v2809_v10  ;;  %v2695_v33 = vmul.f32 %v5854_v13, %v5834_v23  ;;  %v2716_v56 = vsel %vm5889_vm8, %v5830_v57, %v2712_v36  ;;  %v2832_v10 = vor.u32 1.1754944e-38, %v2831_v52 }
 0x914   : > { %v3857_v35 = vpop.eup %3856  ;;  %3858 = vrcp.f32 %v5864_v17  ;;  %v2635_v6 = vand.u32 2147483648, %v5864_v17  ;;  %v2633_v36 = vand.u32 2147483647, %v5864_v17  ;;  %v2721_v5 = vsel %vm5860_vm6, %v2720_v39, %v2716_v56 }
 0x915   : > { %v2821_v55 = vmul.f32 %v3857_v35, %v5837_v19  ;;  %v5879_v18 = vpop.xlane.xlu0 %2601  ;;  %v2814_v20 = vsel %vm2813_vm9, %v3853_v61, %v2810_v63  ;;  %v2696_v62 = vsub.f32 1.0, %v2695_v33  ;;  %vm2826_vm12 = vweird.f32 %v3857_v35 }
 0x916   : > { %3860 = vrcp.f32 %v5879_v18  ;;  %v2819_v34 = vsel %vm5866_vm2, %v2818_v42, %v2814_v20  ;;  %v5915_v33 = vor.u32 1.1754944e-38, %v2635_v6  ;;  %vm2741_vm13 = vweird.f32 %v5879_v18  ;;  %vm2827_vm14 = vmor %vm2825_vm10, %vm2826_vm12 }
 0x917   : > { %v2822_v15 = vsub.f32 1.0, %v2821_v55  ;;  %v5893_v61 = vpop.xlane.xlu1 %2622  ;;  %v5907_v63 = vmul.f32 %v5715_v11, %v2819_v34  ;;  %v5910_v21 = vmul.f32 %v5719_v16, %v2819_v34  ;;  %v5919_v55 = vor.u32 1.1754944e-38, %v2705_v12 }
 0x918   : > { %3862 = vrcp.f32 %v5893_v61  ;;  %v2845_v11 = vand.u32 2147483648, %v5893_v61  ;;  %v2843_v16 = vand.u32 2147483647, %v5893_v61  ;;  %v2697_v6 = vmul.f32 %v5854_v13, %v2696_v62 }
 0x919   : > { %v2823_v1 = vmul.f32 %v3857_v35, %v2822_v15  ;;  %2906 = vst [vmem:[%s4542_s5 + $0xd0] sm:$0xff] %v5907_v63  ;;  %v5937_v54 = vmul.f32 %v5711_v59, %v2721_v5  ;;  %v5940_v39 = vmul.f32 %v5713_v46, %v2721_v5  ;;  %v2747_v15 = vand.u32 2147483648, %v5879_v18 }
 0x91a   : > { %v5912_v57 = vpop.eup %3858  ;;  %2907 = vst [vmem:[%s4542_s5 + $0xd8] sm:$0xff] %v5910_v21  ;;  %vm2629_vm15 = vweird.f32 %v5864_v17  ;;  %vm2839_vm0 = vweird.f32 %v5893_v61  ;;  %v2745_v46 = vand.u32 2147483647, %v5879_v18  ;;  %vm5958_vm1 = vcmp.eq.f32.partialorder %v2843_v16, 8.507059e+37 }
 0x91b   : > { %v2625_v52 = vmul.f32 %v5912_v57, %v5864_v17  ;;  %v2824_v20 = vadd.f32 %v3857_v35, %v2823_v1  ;;  %2892 = vst [vmem:[%s4542_s5 + $0x60] sm:$0xff] %v5937_v54  ;;  %vm2700_vm4 = vweird.f32 %v5854_v13  ;;  %vm2630_vm6 = vweird.f32 %v5912_v57 }
 0x91c   : > { %v5927_v42 = vpop.eup %3860  ;;  %2893 = vst [vmem:[%s4542_s5 + $0x68] sm:$0xff] %v5940_v39  ;;  %vm6002_vm10 = vcmp.eq.f32.partialorder %v2745_v46, 8.507059e+37  ;;  %vm6007_vm8 = vcmp.eq.f32.partialorder %v2633_v36, 8.507059e+37  ;;  %v2698_v40 = vadd.f32 %v5854_v13, %v2697_v6  ;;  %v6557_v6 = vand.u32 2147483647, %v5834_v23 }
 0x91d   : > { %v2626_v12 = vsub.f32 1.0, %v2625_v52  ;;  %v2737_v58 = vmul.f32 %v5927_v42, %v5879_v18  ;;  %v5945_v34 = vpop.xlane.xlu0 %2598  ;;  %v2828_v19 = vsel %vm2827_vm14, %v3857_v35, %v2824_v20  ;;  %v2846_v52 = vor.u32 1.1754944e-38, %v2845_v11 }
 0x91e   : > { %v3863_v56 = vpop.eup %3862  ;;  %3864 = vrcp.f32 %v5945_v34  ;;  %v2833_v59 = vsel %vm5902_vm11, %v2832_v10, %v2828_v19  ;;  %vm2742_vm3 = vweird.f32 %v5927_v42  ;;  %v2748_v19 = vor.u32 1.1754944e-38, %v2747_v15 }
 0x91f   : > { %v2835_v62 = vmul.f32 %v3863_v56, %v5893_v61  ;;  %v2738_v1 = vsub.f32 1.0, %v2737_v58  ;;  %v5956_v5 = vpop.xlane.xlu1 %2604  ;;  %v2627_v53 = vmul.f32 %v5912_v57, %v2626_v12  ;;  %v5967_v10 = vmul.f32 %v5733_v0, %v2833_v59  ;;  %vm5998_vm9 = vmor %vm2741_vm13, %vm2742_vm3 }
 0x920   : > { %3866 = vrcp.f32 %v5956_v5  ;;  %v2761_v58 = vand.u32 2147483648, %v5956_v5  ;;  %v5974_v11 = vmul.f32 %v5737_v43, %v2833_v59  ;;  %v2733_v12 = vand.u32 2147483648, %v5945_v34  ;;  %vm6033_vm13 = vmor %vm2629_vm15, %vm2630_vm6 }
 0x921   : > { %v2836_v20 = vsub.f32 1.0, %v2835_v62  ;;  %v2739_v16 = vmul.f32 %v5927_v42, %v2738_v1  ;;  %2908 = vst [vmem:[%s4542_s5 + $0xe0] sm:$0xff] %v5967_v10  ;;  %vm2840_vm2 = vweird.f32 %v3863_v56  ;;  %v5991_v8 = vadd.f32 %v5912_v57, %v2627_v53  ;;  %vm6084_vm6 = vmor %vm2699_vm5, %vm2700_vm4 }
 0x922   : > { %2909 = vst [vmem:[%s4542_s5 + $0xe8] sm:$0xff] %v5974_v11  ;;  %vm2727_vm7 = vweird.f32 %v5945_v34  ;;  %vm2755_vm11 = vweird.f32 %v5956_v5  ;;  %v6019_v0 = vor.u32 1.1754944e-38, %v2761_v58  ;;  %vm2841_vm12 = vmor %vm2839_vm0, %vm2840_vm2  ;;  %v2731_v36 = vand.u32 2147483647, %v5945_v34 }
 0x923   : > { %v2837_v62 = vmul.f32 %v3863_v56, %v2836_v20  ;;  %v2740_v59 = vadd.f32 %v5927_v42, %v2739_v16  ;;  %v2759_v16 = vand.u32 2147483647, %v5956_v5  ;;  %v2734_v4 = vor.u32 1.1754944e-38, %v2733_v12 }
 0x924   : > { %v5988_v1 = vpop.eup %3864  ;;  %vm6045_vm14 = vcmp.eq.f32.partialorder %v6557_v6, 8.507059e+37  ;;  %vm6071_vm3 = vcmp.eq.f32.partialorder %v2731_v36, 8.507059e+37 }
 0x925   : > { %v2723_v53 = vmul.f32 %v5988_v1, %v5945_v34  ;;  %v6014_v18 = vpop.xlane.xlu0 %2583  ;;  %v2838_v43 = vadd.f32 %v3863_v56, %v2837_v62  ;;  %v2744_v46 = vsel %vm5998_vm9, %v5927_v42, %v2740_v59  ;;  %vm2728_vm15 = vweird.f32 %v5988_v1 }
 0x926   : > { %v6021_v27 = vpop.eup %3866  ;;  %3868 = vrcp.f32 %v6014_v18  ;;  %v2749_v12 = vsel %vm6002_vm10, %v2748_v19, %v2744_v46  ;;  %vm6060_vm0 = vcmp.eq.f32.partialorder %v2759_v16, 8.507059e+37  ;;  %v2663_v42 = vand.u32 2147483648, %v6014_v18  ;;  %vm6097_vm2 = vmor %vm2727_vm7, %vm2728_vm15 }
 0x927   : > { %v2751_v58 = vmul.f32 %v6021_v27, %v5956_v5  ;;  %v2724_v62 = vsub.f32 1.0, %v2723_v53  ;;  %v6039_v59 = vpop.xlane.xlu1 %2589  ;;  %v2842_v61 = vsel %vm2841_vm12, %v3863_v56, %v2838_v43  ;;  %v2632_v56 = vsel %vm6033_vm13, %v5912_v57, %v5991_v8 }
 0x928   : > { %3870 = vrcp.f32 %v6039_v59  ;;  %v2847_v17 = vsel %vm5958_vm1, %v2846_v52, %v2842_v61  ;;  %vm2756_vm1 = vweird.f32 %v6021_v27  ;;  %v6066_v35 = vmul.f32 %v5749_v51, %v2749_v12 }
 0x929   : > { %v2752_v19 = vsub.f32 1.0, %v2751_v58  ;;  %v2725_v43 = vmul.f32 %v5988_v1, %v2724_v62  ;;  %v2878_v20 = vmul.f32 %v5755_v44, %v2847_v17  ;;  %v2879_v53 = vmul.f32 %v5759_v37, %v2847_v17  ;;  %vm6124_vm7 = vmor %vm2755_vm11, %vm2756_vm1 }
 0x92a   : > { %v6069_v52 = vmul.f32 %v5753_v29, %v2749_v12  ;;  %v2691_v36 = vand.u32 2147483648, %v6039_v59  ;;  %v2689_v23 = vand.u32 2147483647, %v6039_v59  ;;  %2896 = vst [vmem:[%s4542_s5 + $0x80] sm:$0xff] %v6066_v35  ;;  %vm2685_vm4 = vweird.f32 %v6039_v59 }
 0x92b   : > { %v2753_v44 = vmul.f32 %v6021_v27, %v2752_v19  ;;  %2910 = vst [vmem:[%s4542_s5 + $0xf0] sm:$0xff] %v2878_v20  ;;  %v2940_v37 = vpack.c.bf16 %v2878_v20, %v5967_v10  ;;  %v2941_v57 = vpack.c.bf16 %v2879_v53, %v5974_v11  ;;  %v2726_v16 = vadd.f32 %v5988_v1, %v2725_v43  ;;  %v6582_v43 = vld [vmem:[#allocation42_spill] sm:$0xff] }
 0x92c   : > { %v6088_v29 = vpop.eup %3868  ;;  %2911 = vst [vmem:[%s4542_s5 + $0xf8] sm:$0xff] %v2879_v53  ;;  %v2702_v11 = vsel %vm6084_vm6, %v5854_v13, %v2698_v40  ;;  %vm2657_vm5 = vweird.f32 %v6014_v18  ;;  %v2637_v13 = vsel %vm6007_vm8, %v5915_v33, %v2632_v56  ;;  %vm6143_vm9 = vcmp.eq.f32.partialorder %v2689_v23, 8.507059e+37 }
 0x92d   : > { %v2653_v58 = vmul.f32 %v6088_v29, %v6014_v18  ;;  %2942 = vmatpush.bf16.msrb.mxu0 %v2940_v37  ;;  %2961 = vmatpush.bf16.msrb.mxu1 %v2941_v57  ;;  %v6107_v62 = vpop.xlane.xlu0 %2580  ;;  %v2754_v34 = vadd.f32 %v6021_v27, %v2753_v44  ;;  %v2730_v61 = vsel %vm6097_vm2, %v5988_v1, %v2726_v16  ;;  %v2692_v7 = vor.u32 1.1754944e-38, %v2691_v36 }
 0x92e   : > { %v6115_v12 = vpop.eup %3870  ;;  %3872 = vrcp.f32 %v6107_v62  ;;  %2897 = vst [vmem:[%s4542_s5 + $0x88] sm:$0xff] %v6069_v52  ;;  %v2735_v19 = vsel %vm6071_vm3, %v2734_v4, %v2730_v61  ;;  %v2707_v33 = vsel %vm6045_vm14, %v5919_v55, %v2702_v11  ;;  %v2647_v20 = vand.u32 2147483647, %v6107_v62 }
 0x92f   : > { %v2681_v1 = vmul.f32 %v6115_v12, %v6039_v59  ;;  %v2654_v6 = vsub.f32 1.0, %v2653_v58  ;;  %v6135_v17 = vpop.xlane.xlu1 %2586  ;;  %v2758_v5 = vsel %vm6124_vm7, %v6021_v27, %v2754_v34  ;;  %v6572_v27 = vpack.c.bf16 %v5907_v63, %v5840_v9 }
 0x930   : > { %3874 = vrcp.f32 %v6135_v17  ;;  %v6573_v4 = vpack.c.bf16 %v5910_v21, %v5848_v38  ;;  %v2661_v53 = vand.u32 2147483647, %v6014_v18  ;;  %v2664_v8 = vor.u32 1.1754944e-38, %v2663_v42 }
 0x931   : > { %v2682_v56 = vsub.f32 1.0, %v2681_v1  ;;  %2943 = vmatpush.bf16.msrb.mxu0 %v6572_v27  ;;  %v2655_v44 = vmul.f32 %v6088_v29, %v2654_v6  ;;  %v2649_v15 = vand.u32 2147483648, %v6107_v62  ;;  %v2763_v55 = vsel %vm6060_vm0, %v6019_v0, %v2758_v5 }
 0x932   : > { %2962 = vmatpush.bf16.msrb.mxu1 %v6573_v4  ;;  %v2862_v37 = vmul.f32 %v5767_v2, %v2735_v19  ;;  %vm2643_vm10 = vweird.f32 %v6107_v62  ;;  %v2866_v38 = vmul.f32 %v5771_v45, %v2763_v55  ;;  %v2867_v63 = vmul.f32 %v5775_v50, %v2763_v55 }
 0x933   : > { %v2683_v9 = vmul.f32 %v6115_v12, %v2682_v56  ;;  %v2863_v21 = vmul.f32 %v5769_v26, %v2735_v19  ;;  %v2675_v16 = vand.u32 2147483647, %v6135_v17  ;;  %vm2686_vm8 = vweird.f32 %v6115_v12 }
 0x934   : > { %v6169_v57 = vpop.eup %3872  ;;  %2894 = vst [vmem:[%s4542_s5 + $0x70] sm:$0xff] %v2862_v37  ;;  %v2932_v0 = vpack.c.bf16 %v2862_v37, %v5937_v54  ;;  %v6176_v2 = vmul.f32 %v5729_v25, %v2707_v33  ;;  %v2677_v46 = vand.u32 2147483648, %v6135_v17  ;;  %v6574_v26 = vpack.c.bf16 %v5821_v41, %v5808_v28  ;;  %vm6196_vm13 = vmor %vm2685_vm4, %vm2686_vm8 }
 0x935   : > { %v2639_v45 = vmul.f32 %v6169_v57, %v6107_v62  ;;  %v6575_v50 = vpack.c.bf16 %v5824_v49, %v5811_v22  ;;  %2898 = vst [vmem:[%s4542_s5 + $0x90] sm:$0xff] %v2866_v38  ;;  %v2859_v54 = vmul.f32 %v5731_v30, %v2707_v33  ;;  %vm2658_vm11 = vweird.f32 %v6088_v29  ;;  %v6583_v33 = vld [vmem:[#allocation43_spill] sm:$0xff] }
 0x936   : > { %2944 = vmatpush.bf16.msrb.mxu0 %v6574_v26  ;;  %v3875_v25 = vpop.eup %3874  ;;  %vm2644_vm12 = vweird.f32 %v6169_v57  ;;  %v2934_v51 = vpack.c.bf16 %v2866_v38, %v6066_v35  ;;  %2899 = vst [vmem:[%s4542_s5 + $0x98] sm:$0xff] %v2867_v63  ;;  %v2684_v28 = vadd.f32 %v6115_v12, %v2683_v9  ;;  %v2656_v22 = vadd.f32 %v6088_v29, %v2655_v44  ;;  %vm6207_vm14 = vmor %vm2657_vm5, %vm2658_vm11  ;;  %v2922_v44 = vld [vmem:[%s4525_s8 + $0x10] sm:$0xff] }
 0x937   : > { %2963 = vmatpush.bf16.msrb.mxu1 %v6575_v50  ;;  %v2667_v30 = vmul.f32 %v3875_v25, %v6135_v17  ;;  %v2640_v49 = vsub.f32 1.0, %v2639_v45  ;;  %v2935_v36 = vpack.c.bf16 %v2867_v63, %v6069_v52  ;;  %2895 = vst [vmem:[%s4542_s5 + $0x78] sm:$0xff] %v2863_v21  ;;  %v2933_v35 = vpack.c.bf16 %v2863_v21, %v5940_v39  ;;  %vm6236_vm1 = vmor %vm2643_vm10, %vm2644_vm12 }
 0x938   : > { %v2688_v59 = vsel %vm6196_vm13, %v6115_v12, %v2684_v28  ;;  %2890 = vst [vmem:[%s4542_s5 + $0x50] sm:$0xff] %v6176_v2  ;;  %v2660_v52 = vsel %vm6207_vm14, %v6088_v29, %v2656_v22  ;;  %v2848_v10 = vmul.f32 %v5745_v48, %v2637_v13  ;;  %v2849_v39 = vmul.f32 %v5747_v24, %v2637_v13 }
 0x939   : > { %v2668_v18 = vsub.f32 1.0, %v2667_v30  ;;  %v2641_v23 = vmul.f32 %v6169_v57, %v2640_v49  ;;  %v2693_v11 = vsel %vm6143_vm9, %v2692_v7, %v2688_v59  ;;  %2891 = vst [vmem:[%s4542_s5 + $0x58] sm:$0xff] %v2859_v54  ;;  %vm2662_vm15 = vcmp.eq.f32.partialorder %v2661_v53, 8.507059e+37 }
 0x93a   : > { %2945 = vmatpush.bf16.msrb.mxu0 %v2934_v51  ;;  %vm2672_vm0 = vweird.f32 %v3875_v25  ;;  %v2856_v58 = vmul.f32 %v5787_v3, %v2693_v11  ;;  %v2857_v29 = vmul.f32 %v5791_v47, %v2693_v11  ;;  %v2665_v48 = vsel %vm2662_vm15, %v2664_v8, %v2660_v52  ;;  %2880 = vst [vmem:[%s4542_s5] sm:$0xff] %v2848_v10 }
 0x93b   : > { %2964 = vmatpush.bf16.msrb.mxu1 %v2935_v36  ;;  %v2669_v24 = vmul.f32 %v3875_v25, %v2668_v18  ;;  %v2642_v34 = vadd.f32 %v6169_v57, %v2641_v23  ;;  %v2852_v61 = vmul.f32 %v5783_v60, %v2665_v48  ;;  %v2853_v12 = vmul.f32 %v5785_v14, %v2665_v48 }
 0x93c   : > { %2881 = vst [vmem:[%s4542_s5 + $0x8] sm:$0xff] %v2849_v39  ;;  %v2650_v47 = vor.u32 1.1754944e-38, %v2649_v15  ;;  %vm2671_vm3 = vweird.f32 %v6135_v17  ;;  %vm2648_vm6 = vcmp.eq.f32.partialorder %v2647_v20, 8.507059e+37  ;;  %vm2676_vm4 = vcmp.eq.f32.partialorder %v2675_v16, 8.507059e+37  ;;  %v2923_v15 = vld [vmem:[%s4525_s8 + $0x18] sm:$0xff] }
 0x93d   : > { %2888 = vst [vmem:[%s4542_s5 + $0x40] sm:$0xff] %v2856_v58  ;;  %v2670_v40 = vadd.f32 %v3875_v25, %v2669_v24  ;;  %v2646_v60 = vsel %vm6236_vm1, %v6169_v57, %v2642_v34  ;;  %vm2673_vm2 = vmor %vm2671_vm3, %vm2672_vm0  ;;  %v2678_v14 = vor.u32 1.1754944e-38, %v2677_v46  ;;  %v2930_v13 = vpack.c.bf16 %v6176_v2, %v2856_v58 }
 0x93e   : > { %2946 = vmatpush.bf16.msrb.mxu0 %v2932_v0  ;;  %2889 = vst [vmem:[%s4542_s5 + $0x48] sm:$0xff] %v2857_v29  ;;  %v2651_v1 = vsel %vm2648_vm6, %v2650_v47, %v2646_v60  ;;  %v2931_v62 = vpack.c.bf16 %v2859_v54, %v2857_v29  ;;  %v2925_v55 = vpack.c.bf16 %v2923_v15, %v2922_v44 }
 0x93f   : > { %2965 = vmatpush.bf16.msrb.mxu1 %v2933_v35  ;;  %2884 = vst [vmem:[%s4542_s5 + $0x20] sm:$0xff] %v2852_v61  ;;  %v2674_v6 = vsel %vm2673_vm2, %v3875_v25, %v2670_v40  ;;  %v2850_v17 = vmul.f32 %v5795_v32, %v2651_v1  ;;  %v2851_v5 = vmul.f32 %v5797_v31, %v2651_v1  ;;  %v2920_v32 = vld [vmem:[%s4525_s8] sm:$0xff]  ;;  %v2921_v31 = vld [vmem:[%s4525_s8 + $0x8] sm:$0xff] }
 0x940   : > { %2885 = vst [vmem:[%s4542_s5 + $0x28] sm:$0xff] %v2853_v12  ;;  %v2679_v19 = vsel %vm2676_vm4, %v2678_v14, %v2674_v6  ;;  %v2924_v8 = vpack.c.bf16 %v2921_v31, %v2920_v32 }
 0x941   : > { %v2854_v7 = vmul.f32 %v6582_v43, %v2679_v19  ;;  %v2855_v56 = vmul.f32 %v6583_v33, %v2679_v19  ;;  %2882 = vst [vmem:[%s4542_s5 + $0x10] sm:$0xff] %v2850_v17  ;;  %v2926_v4 = vpack.c.bf16 %v2850_v17, %v2848_v10  ;;  %v2927_v53 = vpack.c.bf16 %v2851_v5, %v2849_v39 }
 0x942   : > { %2947 = vmatpush.bf16.msrb.mxu0 %v2930_v13  ;;  %2883 = vst [vmem:[%s4542_s5 + $0x18] sm:$0xff] %v2851_v5 }
 0x943   : > { %2966 = vmatpush.bf16.msrb.mxu1 %v2931_v62  ;;  %2886 = vst [vmem:[%s4542_s5 + $0x30] sm:$0xff] %v2854_v7  ;;  %v2928_v20 = vpack.c.bf16 %v2854_v7, %v2852_v61  ;;  %v2929_v27 = vpack.c.bf16 %v2855_v56, %v2853_v12 }
 0x944   : > { %2887 = vst [vmem:[%s4542_s5 + $0x38] sm:$0xff] %v2855_v56 }
 0x946   : > { %2948 = vmatpush.bf16.msrb.mxu0 %v2928_v20 }
 0x947   : > { %2967 = vmatpush.bf16.msrb.mxu1 %v2929_v27 }
 0x94a   : > { %2949 = vmatpush.bf16.msrb.mxu0 %v2926_v4 }
 0x94b   : > { %2968 = vmatpush.bf16.msrb.mxu1 %v2927_v53 }
 0x94d   : > { %2950 = vmatmul.bf16.vlgmr.msrb.gmra.mxu0 %v2924_v8 }
 0x94e   : > { %2969 = vmatmul.bf16.vlgmr.msrb.gmra.mxu1 %v2924_v8 }
 0x95d   : > { %2955 = vmatmul.bf16.gmra.mxu0 %v2925_v55 }
 0x95e   : > { %2974 = vmatmul.bf16.gmra.mxu1 %v2925_v55 }
 0x95f   : > { %4023 = shalt.err (!%p4020_p9)
}
 0x960   : > { %s4235_s2 = smov 256   ;;  %s4236_s28 = smov 16  }
 0x961   : > { %3532 = dma.vmem_to_hbm [thread:$0]  (%p4418_p4), %s3048_s15, 4096, %s3050_s0, %s6278_s16, %s4235_s2, %s4235_s2, %s4236_s28  }
 0x962   : > { %s3027_s13 = sshll.u32 %s4540_s1, 4  ;;  %s3029_s6 = sshll.u32 %s3026_s12, 4  ;;  %s3028_s13 = int_to_ptr.vmem [resolvable:$true] %s3027_s13  ;;  %s3030_s6 = int_to_ptr.hbm [resolvable:$true] %s3029_s6 }
 0x963   : > { %s2997_s7 = scalar_lea.sflag [#allocation6], %s4522_s9  ;;  %s4038_s8 = sshra.s32 %s3030_s6, 4  ;;  %s4039_s8 = int_to_ptr.hbm [resolvable:$true] %s4038_s8 }
 0x964   : > { %s4040_s29 = scalar_lea.hbm %s4039_s8, 256  ;;  %s4044_s14 = scalar_lea.hbm %s6587_s3, 1024 }
 0x965   : > { %p4041_p0 = scmp.ne.s32.totalorder %s4039_s8, %s4040_s29  ;;  %p4045_p13 = scmp.lt.s32.totalorder %s4039_s8, %s6587_s3 }
 0x966   : > { %p4046_p5 = scmp.lt.s32.totalorder %s4044_s14, %s4040_s29 }
 0x967   : > { %p4042_p12 = pnand %p4041_p0, %p4418_p4 }
 0x968   : > { %p4047_p6 = por %p4046_p5, %p4045_p13 }
 0x969   : > { %p4043_p7 = pneg %p4042_p12 }
 0x96b   : > { %p4048_p1 = pnand %p4047_p6, %p4043_p7 }
 0x96d   : > { %4051 = shalt.err (!%p4048_p1)
}
 0x96e   : > { %3531 = dma.vmem_to_hbm [thread:$0]  (%p4418_p4), %s3028_s13, 4096, %s3030_s6, %s2997_s7, %s4235_s2, %s4235_s2, %s4236_s28  }
 0x96f   : > { %s6590_s12 = sld [smem:[#allocation55_spill]]  ;;  %s3081_s17 = sshll.u32 %s4546_s23, 4  ;;  %s3082_s17 = int_to_ptr.vmem [resolvable:$true] %s3081_s17 }
 0x970   : > { %s3012_s29 = scalar_lea.sflag [#allocation17], %s4502_s11 }
 0x975   : > { %s3080_s15 = scalar_lea.hbm %s6590_s12, %s6266_s20  ;;  %s4072_s13 = scalar_lea.hbm %s6590_s12, 128 }
 0x976   : > { %s3083_s8 = sshll.u32 %s3080_s15, 4  ;;  %s3084_s8 = int_to_ptr.hbm [resolvable:$true] %s3083_s8 }
 0x977   : > { %s4066_s18 = sshra.s32 %s3084_s8, 4  ;;  %s4067_s18 = int_to_ptr.hbm [resolvable:$true] %s4066_s18 }
 0x978   : > { %s4068_s22 = scalar_lea.hbm %s4067_s18, 64  ;;  %p4073_p4 = scmp.lt.s32.totalorder %s4067_s18, %s6590_s12 }
 0x979   : > { %p4069_p3 = scmp.ne.s32.totalorder %s4067_s18, %s4068_s22  ;;  %p4074_p0 = scmp.lt.s32.totalorder %s4072_s13, %s4068_s22 }
 0x97b   : > { %p4070_p8 = pnand %p4069_p3, %p4425_p2  ;;  %p4075_p12 = por %p4074_p0, %p4073_p4 }
 0x97d   : > { %p4071_p9 = pneg %p4070_p8 }
 0x97f   : > { %p4076_p7 = pnand %p4075_p12, %p4071_p9 }
 0x981   : > { %4079 = shalt.err (!%p4076_p7)
}
 0x982   : > { %3534 = dma.vmem_to_hbm [thread:$0]  (%p4425_p2), %s3082_s17, 1024, %s3084_s8, %s3012_s29, %s4235_s2, %s4235_s2, %s4236_s28  }
 0x983   : > { %v2912_v37 = vld [vmem:[%s4544_s27] sm:$0xff]  ;;  %v2913_v9 = vld [vmem:[%s4544_s27 + $0x8] sm:$0xff]  ;;  %v2914_v16 = vld [vmem:[%s4544_s27 + $0x10] sm:$0xff]  ;;  %s6591_s24 = sld [smem:[#allocation54_spill]]  ;;  %s3064_s1 = sshll.u32 %s4544_s27, 4  ;;  %s3065_s1 = int_to_ptr.vmem [resolvable:$true] %s3064_s1 }
 0x984   : > { %v2915_v0 = vld [vmem:[%s4544_s27 + $0x18] sm:$0xff]  ;;  %v2916_v50 = vld [vmem:[%s4544_s27 + $0x20] sm:$0xff]  ;;  %v2917_v54 = vld [vmem:[%s4544_s27 + $0x28] sm:$0xff] }
 0x985   : > { %v2918_v22 = vld [vmem:[%s4544_s27 + $0x30] sm:$0xff]  ;;  %v2919_v30 = vld [vmem:[%s4544_s27 + $0x38] sm:$0xff] }
 0x989   : > { %s6592_s4 = smov %s6591_s24  ;;  %s3063_s9 = scalar_lea.hbm %s6591_s24, %s6266_s20 }
 0x98a   : > { %s3066_s15 = sshll.u32 %s3063_s9, 4  ;;  %s4100_s18 = scalar_lea.hbm %s6592_s4, 128  ;;  %s3067_s15 = int_to_ptr.hbm [resolvable:$true] %s3066_s15 }
 0x98b   : > { %s4094_s17 = sshra.s32 %s3067_s15, 4  ;;  %s4095_s17 = int_to_ptr.hbm [resolvable:$true] %s4094_s17 }
 0x98c   : > { %s4096_s8 = scalar_lea.hbm %s4095_s17, 64  ;;  %p4101_p1 = scmp.lt.s32.totalorder %s4095_s17, %s6592_s4 }
 0x98d   : > { %p4097_p13 = scmp.ne.s32.totalorder %s4095_s17, %s4096_s8  ;;  %p4102_p3 = scmp.lt.s32.totalorder %s4100_s18, %s4096_s8 }
 0x98f   : > { %p4098_p5 = pnand %p4097_p13, %p4425_p2  ;;  %p4103_p8 = por %p4102_p3, %p4101_p1 }
 0x991   : > { %p4099_p6 = pneg %p4098_p5 }
 0x993   : > { %p4104_p9 = pnand %p4103_p8, %p4099_p6 }
 0x9ca   : > { %v2951_v38 = vpop.f32.mrf.mxu0 }
 0x9cb   : > { %v2970_v63 = vpop.f32.mrf.mxu1  ;;  %v2980_v21 = vadd.f32 %v2951_v38, %v2912_v37 }
 0x9cc   : > { %v2981_v57 = vadd.f32 %v2970_v63, %v2913_v9 }
 0x9cd   : > { %2988 = vst [vmem:[%s4544_s27] sm:$0xff] %v2980_v21 }
 0x9ce   : > { %2989 = vst [vmem:[%s4544_s27 + $0x8] sm:$0xff] %v2981_v57 }
 0x9d2   : > { %v2953_v2 = vpop.f32.mrf.mxu0 }
 0x9d3   : > { %v2972_v46 = vpop.f32.mrf.mxu1  ;;  %v2982_v45 = vadd.f32 %v2953_v2, %v2914_v16 }
 0x9d4   : > { %v2983_v26 = vadd.f32 %v2972_v46, %v2915_v0 }
 0x9d5   : > { %2990 = vst [vmem:[%s4544_s27 + $0x10] sm:$0xff] %v2982_v45 }
 0x9d6   : > { %2991 = vst [vmem:[%s4544_s27 + $0x18] sm:$0xff] %v2983_v26 }
 0x9da   : > { %v2956_v25 = vpop.f32.mrf.mxu0 }
 0x9db   : > { %v2975_v51 = vpop.f32.mrf.mxu1  ;;  %v2984_v28 = vadd.f32 %v2956_v25, %v2916_v50 }
 0x9dc   : > { %v2985_v41 = vadd.f32 %v2975_v51, %v2917_v54 }
 0x9dd   : > { %2992 = vst [vmem:[%s4544_s27 + $0x20] sm:$0xff] %v2984_v28 }
 0x9de   : > { %2993 = vst [vmem:[%s4544_s27 + $0x28] sm:$0xff] %v2985_v41 }
 0x9e2   : > { %v2958_v49 = vpop.f32.mrf.mxu0 }
 0x9e3   : > { %v2977_v36 = vpop.f32.mrf.mxu1  ;;  %v2986_v35 = vadd.f32 %v2958_v49, %v2918_v22 }
 0x9e4   : > { %v2987_v42 = vadd.f32 %v2977_v36, %v2919_v30 }
 0x9e5   : > { %2994 = vst [vmem:[%s4544_s27 + $0x30] sm:$0xff] %v2986_v35 }
 0x9e6   : > { %2995 = vst [vmem:[%s4544_s27 + $0x38] sm:$0xff] %v2987_v42 }
 0x9e7   : > { %4107 = shalt.err (!%p4104_p9)
}
 0x9e8   : > { %3533 = dma.vmem_to_hbm [thread:$0]  (%p4425_p2), %s3065_s1, 1024, %s3067_s15, %s6278_s16, %s4235_s2, %s4235_s2, %s4236_s28  }
 0x9e9 PF: > { %s6593_s27 = sld [smem:[#allocation32_spill]] }
 0x9ea   : > { %s6594_s14 = sld [smem:[#allocation26_spill]] }
 0x9ef   : > { %p3566_p4 = scmp.ge.s32.totalorder %s6593_s27, 2 }
 0x9f0   : > { %s3098_s6 = sand.u32 1, %s6594_s14  }
 0x9f1   : > { %p3553_p0 = pnand %p3566_p4, %p4429_p10  ;;  %s3099_s7 = scalar_lea.sflag [#allocation6], %s3098_s6 }
 0x9f3   : > { %p3554_p12 = pneg %p3553_p0 }
 0x9f5   : > { %4169 = dma.done.wait (%p3554_p12), %s3099_s7, 4096  }
 0x9f6   : > { %4171 = vsyncadd (%p3554_p12), %s3099_s7, 4294963200  ;;  %s6596_s11 = sadd.s32 4294967294, %s6593_s27  }
 0x9f7   : > { %s3108_s0 = sand.u32 1, %s6596_s11  }
 0x9f8   : > { %s3109_s23 = scalar_lea.sflag [#allocation14], %s3108_s0 }
 0x9f9   : > { %4173 = dma.done.wait (%p3554_p12), %s3109_s23, 4096  }
 0x9fa   : > { %4175 = vsyncadd (%p3554_p12), %s3109_s23, 4294963200  ;;  %p3559_p2 = pnand %p3566_p4, %p4436_p11 }
 0x9fc   : > { %p3560_p7 = pneg %p3559_p2 }
 0x9fe   : > { %4177 = dma.done.wait (%p3560_p7), %s3109_s23, 1024  }
 0x9ff   : > { %4179 = vsyncadd (%p3560_p7), %s3109_s23, 4294966272  ;;  %s6598_s16 = sld [smem:[#allocation28_spill]] }
 0xa05   : > { %s3128_s2 = sand.u32 1, %s6598_s16  }
 0xa06   : > { %s3129_s28 = scalar_lea.sflag [#allocation17], %s3128_s2 }
 0xa07   : > { %4181 = dma.done.wait (%p3560_p7), %s3129_s28, 1024  }
 0xa08   : > { %4183 = vsyncadd (%p3560_p7), %s3129_s28, 4294966272  ;;  %s40_s27 = sadd.s32 1, %s6593_s27   ;;  %s6599_s17 = sld [smem:[#allocation27_spill]] }
 0xa09   : > { %p37_p10 = scmp.ge.s32.totalorder %s40_s27, 6   ;;  %s6600_s9 = sld [smem:[#allocation36_spill]] }
 0xa0a   : > { %s6601_s1 = sld [smem:[#allocation29_spill]]  ;;  %s6605_s18 = smov %s4194_s19 }
 0xa0b   : > { %s6602_s22 = sld [smem:[#allocation35_spill]]  ;;  %s6607_s20 = smov %s4202_s21 }
 0xa0c   : > { %s6603_s15 = sld [smem:[#allocation33_spill]]  ;;  %s6609_s23 = smov %s4218_s25 }
 0xa0d   : > { %s6604_s8 = sld [smem:[#allocation34_spill]]  ;;  %s6610_s24 = smov %s4222_s26 }
 0xa0f   : > { %s6606_s19 = smov %s6600_s9  ;;  %39 = sbr.rel (!%p37_p10) target bundleno = 30 (0x1e), region = 189 }
 0xa10   : > { %s6608_s21 = smov %s6601_s1 }
 0xa12   : > { %s6611_s25 = smov %s6603_s15 }
 0xa13   : > { %s6612_s26 = smov %s6604_s8 }
 0xa14   :  { %3135 = vsyncpa [#allocation5], 1 }
 0xa15   :  { %3137 = vsyncpa [#allocation5 + $0x1], 1 }
 0xa16   :  { %3138 = vsyncpa [#allocation8], 1 }
 0xa17   :  { %3140 = vsyncpa [#allocation8 + $0x1], 1 }
 0xa18   :  { %3141 = vsyncpa [#allocation11], 1 }
 0xa19   :  { %3143 = vsyncpa [#allocation11 + $0x1], 1 }
 0xa1a   :  { %3144 = vsyncpa [#allocation6], 1 }
 0xa1b   :  { %3146 = vsyncpa [#allocation6 + $0x1], 1 }
 0xa1c   :  { %3147 = vsyncpa [#allocation14], 1 }
 0xa1d   :  { %3149 = vsyncpa [#allocation14 + $0x1], 1 }
 0xa1e   :  { %3150 = vsyncpa [#allocation17], 1 }
 0xa1f   :  { %3152 = vsyncpa [#allocation17 + $0x1], 1 }

</bundles_post_ra>
